<compile_context>
chip_gen: v6e
topology: v6e:2x2x1
jax: 0.10.0
libtpu: 0.0.40
codegen_flags: <defaults>
</compile_context>

<pallas_src>
import functools

import jax
import jax.numpy as jnp
from jax import lax
from jax.experimental import pallas as pl
from jax.experimental.pallas import tpu as pltpu


def _round_up(n, m):
    return ((n + m - 1) // m) * m


def _pad_to(a, shape):
    return jnp.pad(a, [(0, s - d) for d, s in zip(a.shape, shape)])


def make_edge_rnn_kernel(num_layers, Bp, T, Hp):
    """Builds a Pallas kernel closed over static sizes.

    Per grid step the kernel processes one padded batch block of Bp sequences
    (Bp a multiple of 8), laid out time-major and flattened: row = t*Bp + b,
    N = T*Bp rows.  Hidden size Hp is a multiple of 128 (lane-dense gates).
    """
    N = T * Bp
    unroll = True if T <= 32 else 4
    f32 = jnp.float32

    def kernel(*refs):
        # ---- unpack refs (inputs, outputs, scratch) ----
        x_ref, h0_ref, w_in, b_in = refs[0:4]      # [N,F], [L,Bp,Hp], [F,E], [1,E]
        p = 4
        layers = []
        for _ in range(num_layers):
            # w_ih_fused [in, 3Hp] (gemm dtype), w_hh_fused [Hp, 3Hp] (f32),
            # b_gi_fused [1, 3Hp] (r/z hidden biases folded), b_nh [1, Hp]
            layers.append(refs[p:p + 4])
            p += 4
        w_o1, b_o1, w_o2, b_o2 = refs[p:p + 4]     # [Hp,E],[1,E],[E,F],[1,F]
        p += 4
        y_ref = refs[p]                            # [N, F]
        hN_ref = refs[p + 1]                       # [L, Bp, Hp]
        buf_e = refs[p + 2]                        # scratch [N, E]   (gemm dtype)
        h_bufs = (refs[p + 3], refs[p + 4])        # 2x scratch [N, Hp] f32 (ping-pong)
        gi = refs[p + 5]                           # scratch [N, 3Hp] f32

        # ---- linear_in + ReLU over the whole [N, F] slab (one tiny GEMM) ----
        emb = jnp.dot(x_ref[...], w_in[...], preferred_element_type=f32) + b_in[...]
        buf_e[...] = jnp.maximum(emb, 0.0).astype(buf_e.dtype)

        # ---- stacked GRU (gate order r, z, n; gates on 128-lane boundaries) ----
        for l in range(num_layers):
            w_ih, w_hh, b_gi, b_nh = layers[l]
            in_ref = buf_e if l == 0 else h_bufs[(l - 1) % 2]
            out_ref = h_bufs[l % 2]

            # Hoisted input-to-hidden GEMM: ONE wide lane-dense [N,in]x[in,3Hp]
            # (bf16 operands, f32 accumulate); r/z hidden biases already folded.
            xin = in_ref[...].astype(w_ih.dtype)
            gi[...] = jnp.dot(xin, w_ih[...], preferred_element_type=f32) + b_gi[...]

            # Hoist the n-gate hidden-bias broadcast out of the loop (1 vreg).
            bnh = jnp.broadcast_to(b_nh[...], (Bp, Hp))

            def step(t, h, bnh=bnh, out_ref=out_ref, w_hh=w_hh):
                row = pl.multiple_of(t * Bp, Bp)      # Bp % 8 == 0 -> aligned slice
                gi_t = gi[pl.ds(row, Bp)]             # [Bp, 3Hp], aligned, lane-dense
                # ONE recurrent MXU matmul per step (fused r/z/n gates), f32.
                gh = jnp.dot(h, w_hh[...], preferred_element_type=f32)
                r = jax.nn.sigmoid(gi_t[:, :Hp] + gh[:, :Hp])
                z = jax.nn.sigmoid(gi_t[:, Hp:2 * Hp] + gh[:, Hp:2 * Hp])
                n = jnp.tanh(gi_t[:, 2 * Hp:] + r * (gh[:, 2 * Hp:] + bnh))
                h_new = (1.0 - z) * n + z * h
                out_ref[pl.ds(row, Bp)] = h_new       # [8,128]-tile aligned store
                return h_new

            h_fin = lax.fori_loop(0, T, step, h0_ref[l], unroll=unroll)
            hN_ref[l] = h_fin

        # ---- linear_out1 + ReLU (bf16 GEMM), linear_out2 + sigmoid (f32) ----
        seq = h_bufs[(num_layers - 1) % 2][...]
        o1 = jnp.dot(seq.astype(w_o1.dtype), w_o1[...],
                     preferred_element_type=f32) + b_o1[...]
        o1 = jnp.maximum(o1, 0.0)
        o2 = jnp.dot(o1, w_o2[...], preferred_element_type=f32) + b_o2[...]
        # TODO(synk): production sizes — write y lane-dense (transposed [F, N]).
        y_ref[...] = jax.nn.sigmoid(o2)

    return kernel


@functools.partial(jax.jit,
                   static_argnames=("num_layers", "num_batch_blocks", "use_bf16_gemm"))
def edge_level_rnn_forward(x, h0, params, *, num_layers, num_batch_blocks=1,
                           use_bf16_gemm=True):
    """x: [B, T, F] (batch-first, like PyTorch). Returns (y [B,T,F], hN [L,B,H]).

    num_batch_blocks: split the batch into this many independent grid steps
    (useful on v7x's two TensorCores at LARGE batch; auto-disabled when each
    block would hold fewer than 8 sequences).
    use_bf16_gemm: bf16 operands for the large non-recurrent GEMMs (recurrent
    path and all gate math stay f32).
    """
    B, T, F = x.shape
    L, _, H = h0.shape
    E = params["w_in"].shape[1]
    assert L == num_layers
    assert h0.shape == (num_layers, B, H)

    f32 = jnp.float32
    gemm_dtype = jnp.bfloat16 if use_bf16_gemm else jnp.float32

    # Megacore batch split only pays off when each core gets >= 8 rows.
    G = num_batch_blocks
    if B < 8 * G:
        G = 1
    Bb = -(-B // G)                      # ceil
    Bp = _round_up(Bb, 8)                # sublane-aligned batch block
    Hp = _round_up(H, 128)               # lane-dense hidden size
    Bt = G * Bp
    N = T * Bp

    # ---- pad + time-major flatten per batch block -> [G, N, F] slabs ----
    xp = jnp.pad(x.astype(f32), ((0, Bt - B), (0, 0), (0, 0)))
    xb = xp.reshape(G, Bp, T, F).transpose(0, 2, 1, 3).reshape(G, N, F)
    h0p = jnp.pad(h0.astype(f32), ((0, 0), (0, Bt - B), (0, Hp - H)))
    h0b = h0p.reshape(L, G, Bp, Hp).transpose(1, 0, 2, 3)

    inputs = [xb, h0b, params["w_in"].astype(f32), params["b_in"].astype(f32)]

    for l in range(num_layers):
        in_dim = E if l == 0 else H
        in_dim_p = E if l == 0 else Hp
        w_ih = params[f"w_ih_{l}"].astype(f32)      # [in_dim, 3H]
        w_hh = params[f"w_hh_{l}"].astype(f32)      # [H, 3H]
        b_ih = params[f"b_ih_{l}"].astype(f32)      # [1, 3H]
        b_hh = params[f"b_hh_{l}"].astype(f32)      # [1, 3H]

        def gates(w):
            return w[:, :H], w[:, H:2 * H], w[:, 2 * H:]

        wr, wz, wn = gates(w_ih)
        w_ih_f = jnp.concatenate([_pad_to(wr, (in_dim, Hp)),
                                  _pad_to(wz, (in_dim, Hp)),
                                  _pad_to(wn, (in_dim, Hp))], axis=1)
        w_ih_f = _pad_to(w_ih_f, (in_dim_p, 3 * Hp)).astype(gemm_dtype)

        hr, hz, hn = gates(w_hh)
        w_hh_f = jnp.concatenate([_pad_to(hr, (H, Hp)),
                                  _pad_to(hz, (H, Hp)),
                                  _pad_to(hn, (H, Hp))], axis=1)
        w_hh_f = _pad_to(w_hh_f, (Hp, 3 * Hp))       # f32 (recurrent path)

        bir, biz, bin_ = gates(b_ih)
        bhr, bhz, bhn = gates(b_hh)
        b_gi = jnp.concatenate([_pad_to(bir + bhr, (1, Hp)),
                                _pad_to(biz + bhz, (1, Hp)),
                                _pad_to(bin_, (1, Hp))], axis=1)
        b_nh = _pad_to(bhn, (1, Hp))
        inputs += [w_ih_f, w_hh_f, b_gi, b_nh]

    inputs += [_pad_to(params["w_o1"].astype(f32), (Hp, E)).astype(gemm_dtype),
               params["b_o1"].astype(f32),
               params["w_o2"].astype(f32),
               params["b_o2"].astype(f32)]

    def full_spec(a):
        zeros = (0,) * a.ndim
        return pl.BlockSpec(a.shape, lambda g, z=zeros: z)

    in_specs = [
        pl.BlockSpec((None, N, F), lambda g: (g, 0, 0)),           # x block
        pl.BlockSpec((None, L, Bp, Hp), lambda g: (g, 0, 0, 0)),   # h0 block
    ] + [full_spec(a) for a in inputs[2:]]                         # weights resident

    out_specs = (
        pl.BlockSpec((None, N, F), lambda g: (g, 0, 0)),           # y block
        pl.BlockSpec((None, L, Bp, Hp), lambda g: (g, 0, 0, 0)),   # hN block
    )

    # ---- explicit VMEM budgeting (80% of physical; v7x has only 64 MiB) ----
    def nbytes(a):
        return int(a.size) * jnp.dtype(a.dtype).itemsize

    try:
        vmem_cap = int(pltpu.get_tpu_info().vmem_capacity_bytes)
    except Exception:
        vmem_cap = 64 * 1024 * 1024                 # conservative (v7x) fallback
    vmem_budget = int(0.8 * vmem_cap)               # headroom for Mosaic scratch

    gemm_isz = jnp.dtype(gemm_dtype).itemsize
    blocked_bytes = 2 * (N * F * 4 + L * Bp * Hp * 4        # x + h0 (double-buffered)
                         + N * F * 4 + L * Bp * Hp * 4)     # y + hN
    weight_bytes = 2 * sum(nbytes(a) for a in inputs[2:])   # default double-buffered
    scratch_bytes = N * E * gemm_isz + 2 * N * Hp * 4 + N * 3 * Hp * 4
    need = blocked_bytes + weight_bytes + scratch_bytes
    if need > vmem_budget:
        # TODO(synk): time-chunk the hoisted gi GEMMs over T to bound VMEM.
        raise ValueError(
            f"EdgeLevelRNN kernel needs ~{need} B VMEM > budget {vmem_budget} B; "
            "reduce T/batch-block or enable time-chunking.")
    vmem_limit = int(min(max(2 * need, 32 * 1024 * 1024), vmem_budget))

    kernel = make_edge_rnn_kernel(num_layers, Bp, T, Hp)

    yb, hNb = pl.pallas_call(
        kernel,
        grid=(G,),
        out_shape=(
            jax.ShapeDtypeStruct((G, N, F), f32),
            jax.ShapeDtypeStruct((G, L, Bp, Hp), f32),
        ),
        in_specs=in_specs,
        out_specs=out_specs,
        scratch_shapes=[
            pltpu.VMEM((N, E), gemm_dtype),    # buf_e : relu(linear_in(x))
            pltpu.VMEM((N, Hp), f32),          # hidden-sequence ping
            pltpu.VMEM((N, Hp), f32),          # hidden-sequence pong
            pltpu.VMEM((N, 3 * Hp), f32),      # gi : fused hoisted gate pre-acts
        ],
        compiler_params=pltpu.CompilerParams(
            dimension_semantics=("parallel",),
            vmem_limit_bytes=vmem_limit),
    )(*inputs)

    # ---- un-flatten and strip batch/hidden padding ----
    y = yb.reshape(G, T, Bp, F).transpose(0, 2, 1, 3).reshape(G * Bp, T, F)[:B]
    hN = hNb.transpose(1, 0, 2, 3).reshape(L, G * Bp, Hp)[:, :B, :H]
    return y, hN


# --------------------- pure-JAX reference (sanity check) ---------------------
def ref_forward(x, h0, params, num_layers):
    B, T, F = x.shape
    H = h0.shape[-1]
    seq = jax.nn.relu(x @ params["w_in"] + params["b_in"])  # [B,T,E]
    hN = []
    for l in range(num_layers):
        h = h0[l]
        outs = []
        for t in range(T):
            x_t = seq[:, t]
            gi = x_t @ params[f"w_ih_{l}"] + params[f"b_ih_{l}"]
            gh = h @ params[f"w_hh_{l}"] + params[f"b_hh_{l}"]
            i_r, i_z, i_n = gi[:, :H], gi[:, H:2 * H], gi[:, 2 * H:]
            h_r, h_z, h_n = gh[:, :H], gh[:, H:2 * H], gh[:, 2 * H:]
            r = jax.nn.sigmoid(i_r + h_r)
            z = jax.nn.sigmoid(i_z + h_z)
            n = jnp.tanh(i_n + r * h_n)
            h = (1.0 - z) * n + z * h
            outs.append(h)
        seq = jnp.stack(outs, axis=1)
        hN.append(h)
    o1 = jax.nn.relu(seq @ params["w_o1"] + params["b_o1"])
    o2 = o1 @ params["w_o2"] + params["b_o2"]
    return jax.nn.sigmoid(o2), jnp.stack(hN, axis=0)


if __name__ == "__main__":
    # Small shapes consistent with the module's forward.
    B, T = 2, 8                 # batch, seq_len
    F = 4                       # edge_feature_len
    E = 16                      # embedding_size
    H = 32                      # hidden_size
    L = 2                       # num_layers

    key = jax.random.PRNGKey(0)
    ks = jax.random.split(key, 16)

    def init(k, shape, scale=0.1):
        return (scale * jax.random.normal(k, shape)).astype(jnp.float32)

    params = {
        "w_in": init(ks[0], (F, E)), "b_in": init(ks[1], (1, E)),
        "w_o1": init(ks[2], (H, E)), "b_o1": init(ks[3], (1, E)),
        "w_o2": init(ks[4], (E, F)), "b_o2": init(ks[5], (1, F)),
    }
    kidx = 6
    for l in range(L):
        in_dim = E if l == 0 else H
        params[f"w_ih_{l}"] = init(ks[kidx], (in_dim, 3 * H)); kidx += 1
        params[f"w_hh_{l}"] = init(ks[kidx], (H, 3 * H)); kidx += 1
        params[f"b_ih_{l}"] = init(ks[kidx], (1, 3 * H)); kidx += 1
        params[f"b_hh_{l}"] = init(ks[kidx], (1, 3 * H)); kidx += 1

    # Input edges and "set_first_layer_hidden": first layer hidden from the
    # graph-level RNN, remaining layers zero.
    x = jax.random.uniform(ks[14], (B, T, F), dtype=jnp.float32)
    h_first = init(ks[15], (B, H), scale=0.5)
    h0 = jnp.concatenate([h_first[None], jnp.zeros((L - 1, B, H), jnp.float32)], axis=0)

    y_ref, hN_ref = ref_forward(x, h0, params, L)

    # Full-f32 path (tight tolerance).
    y1, hN1 = edge_level_rnn_forward(x, h0, params, num_layers=L,
                                     num_batch_blocks=1, use_bf16_gemm=False)
    y1 = jax.block_until_ready(y1); hN1 = jax.block_until_ready(hN1)
    assert y1.shape == (B, T, F) and hN1.shape == (L, B, H)
    assert jnp.allclose(y1, y_ref, rtol=2e-3, atol=2e-3)
    assert jnp.allclose(hN1, hN_ref, rtol=2e-3, atol=2e-3)

    # bf16 non-recurrent GEMMs (perf path; looser tolerance for bf16 rounding).
    y2, hN2 = edge_level_rnn_forward(x, h0, params, num_layers=L,
                                     num_batch_blocks=1, use_bf16_gemm=True)
    y2 = jax.block_until_ready(y2); hN2 = jax.block_until_ready(hN2)
    assert jnp.allclose(y2, y_ref, rtol=3e-2, atol=3e-2)
    assert jnp.allclose(hN2, hN_ref, rtol=3e-2, atol=3e-2)

    print("KERNEL_OK")
</pallas_src>

<mosaic_0001>
module attributes {stable_mosaic.version = 11 : i64} {
  func.func @kernel(%arg0: i32, %arg1: memref<1x64x4xf32, #tpu.memory_space<vmem>>, %arg2: memref<1x2x8x128xf32, #tpu.memory_space<vmem>>, %arg3: memref<4x16xf32, #tpu.memory_space<vmem>>, %arg4: memref<1x16xf32, #tpu.memory_space<vmem>>, %arg5: memref<16x384xf32, #tpu.memory_space<vmem>>, %arg6: memref<128x384xf32, #tpu.memory_space<vmem>>, %arg7: memref<1x384xf32, #tpu.memory_space<vmem>>, %arg8: memref<1x128xf32, #tpu.memory_space<vmem>>, %arg9: memref<128x384xf32, #tpu.memory_space<vmem>>, %arg10: memref<128x384xf32, #tpu.memory_space<vmem>>, %arg11: memref<1x384xf32, #tpu.memory_space<vmem>>, %arg12: memref<1x128xf32, #tpu.memory_space<vmem>>, %arg13: memref<128x16xf32, #tpu.memory_space<vmem>>, %arg14: memref<1x16xf32, #tpu.memory_space<vmem>>, %arg15: memref<16x4xf32, #tpu.memory_space<vmem>>, %arg16: memref<1x4xf32, #tpu.memory_space<vmem>>, %arg17: memref<1x64x4xf32, #tpu.memory_space<vmem>>, %arg18: memref<1x2x8x128xf32, #tpu.memory_space<vmem>>, %arg19: memref<64x16xf32, #tpu.memory_space<vmem>>, %arg20: memref<64x128xf32, #tpu.memory_space<vmem>>, %arg21: memref<64x128xf32, #tpu.memory_space<vmem>>, %arg22: memref<64x384xf32, #tpu.memory_space<vmem>>) attributes {dimension_semantics = [#tpu.dimension_semantics<parallel>], iteration_bounds = array<i64: 1>, scalar_prefetch = 0 : i64, scratch_operands = 4 : i64, tpu.core_type = #tpu.core_type<tc>, window_params = [{transform_indices = @transform_0, window_bounds = array<i64: 1, 64, 4>}, {transform_indices = @transform_1, window_bounds = array<i64: 1, 2, 8, 128>}, {pipeline_mode = #tpu.pipeline_mode<synchronous>, transform_indices = @transform_2, window_bounds = array<i64: 4, 16>}, {pipeline_mode = #tpu.pipeline_mode<synchronous>, transform_indices = @transform_3, window_bounds = array<i64: 1, 16>}, {pipeline_mode = #tpu.pipeline_mode<synchronous>, transform_indices = @transform_4, window_bounds = array<i64: 16, 384>}, {pipeline_mode = #tpu.pipeline_mode<synchronous>, transform_indices = @transform_5, window_bounds = array<i64: 128, 384>}, {pipeline_mode = #tpu.pipeline_mode<synchronous>, transform_indices = @transform_6, window_bounds = array<i64: 1, 384>}, {pipeline_mode = #tpu.pipeline_mode<synchronous>, transform_indices = @transform_7, window_bounds = array<i64: 1, 128>}, {pipeline_mode = #tpu.pipeline_mode<synchronous>, transform_indices = @transform_8, window_bounds = array<i64: 128, 384>}, {pipeline_mode = #tpu.pipeline_mode<synchronous>, transform_indices = @transform_9, window_bounds = array<i64: 128, 384>}, {pipeline_mode = #tpu.pipeline_mode<synchronous>, transform_indices = @transform_10, window_bounds = array<i64: 1, 384>}, {pipeline_mode = #tpu.pipeline_mode<synchronous>, transform_indices = @transform_11, window_bounds = array<i64: 1, 128>}, {pipeline_mode = #tpu.pipeline_mode<synchronous>, transform_indices = @transform_12, window_bounds = array<i64: 128, 16>}, {pipeline_mode = #tpu.pipeline_mode<synchronous>, transform_indices = @transform_13, window_bounds = array<i64: 1, 16>}, {pipeline_mode = #tpu.pipeline_mode<synchronous>, transform_indices = @transform_14, window_bounds = array<i64: 16, 4>}, {pipeline_mode = #tpu.pipeline_mode<synchronous>, transform_indices = @transform_15, window_bounds = array<i64: 1, 4>}, {transform_indices = @transform_16, window_bounds = array<i64: 1, 64, 4>}, {transform_indices = @transform_17, window_bounds = array<i64: 1, 2, 8, 128>}]} {
    %c0 = arith.constant 0 : index
    %c0_0 = arith.constant 0 : index
    %c0_1 = arith.constant 0 : index
    %0 = vector.load %arg1[%c0, %c0_0, %c0_1] : memref<1x64x4xf32, #tpu.memory_space<vmem>>, vector<1x64x4xf32>
    %1 = vector.shape_cast %0 : vector<1x64x4xf32> to vector<64x4xf32>
    %c0_2 = arith.constant 0 : index
    %c0_3 = arith.constant 0 : index
    %2 = vector.load %arg3[%c0_2, %c0_3] : memref<4x16xf32, #tpu.memory_space<vmem>>, vector<4x16xf32>
    %cst = arith.constant dense<0.000000e+00> : vector<64x16xf32>
    %3 = tpu.matmul %1, %2, %cst {dimension_numbers = #tpu.dot_dimension_numbers<[1], [0], [0], [1], [0, 0, 1, 1], [], []>} : vector<64x4xf32>, vector<4x16xf32>, vector<64x16xf32> -> vector<64x16xf32>
    %c0_4 = arith.constant 0 : index
    %c0_5 = arith.constant 0 : index
    %4 = vector.load %arg4[%c0_4, %c0_5] : memref<1x16xf32, #tpu.memory_space<vmem>>, vector<1x16xf32>
    %5 = vector.broadcast %4 : vector<1x16xf32> to vector<64x16xf32>
    %6 = arith.addf %3, %5 : vector<64x16xf32>
    %cst_6 = arith.constant 0.000000e+00 : f32
    %7 = vector.broadcast %cst_6 : f32 to vector<64x16xf32>
    %8 = arith.maximumf %6, %7 : vector<64x16xf32>
    %c0_7 = arith.constant 0 : index
    %c0_8 = arith.constant 0 : index
    %9 = vector.load %arg19[%c0_7, %c0_8] : memref<64x16xf32, #tpu.memory_space<vmem>>, vector<64x16xf32>
    tpu.vector_store %arg19[%c0_7, %c0_8], %8 {strides = array<i32>} : memref<64x16xf32, #tpu.memory_space<vmem>>, vector<64x16xf32>,
    %c0_9 = arith.constant 0 : index
    %c0_10 = arith.constant 0 : index
    %10 = vector.load %arg19[%c0_9, %c0_10] : memref<64x16xf32, #tpu.memory_space<vmem>>, vector<64x16xf32>
    %c0_11 = arith.constant 0 : index
    %c0_12 = arith.constant 0 : index
    %11 = vector.load %arg5[%c0_11, %c0_12] : memref<16x384xf32, #tpu.memory_space<vmem>>, vector<16x384xf32>
    %cst_13 = arith.constant dense<0.000000e+00> : vector<64x384xf32>
    %12 = tpu.matmul %10, %11, %cst_13 {dimension_numbers = #tpu.dot_dimension_numbers<[1], [0], [0], [1], [0, 0, 1, 1], [], []>} : vector<64x16xf32>, vector<16x384xf32>, vector<64x384xf32> -> vector<64x384xf32>
    %c0_14 = arith.constant 0 : index
    %c0_15 = arith.constant 0 : index
    %13 = vector.load %arg7[%c0_14, %c0_15] : memref<1x384xf32, #tpu.memory_space<vmem>>, vector<1x384xf32>
    %14 = vector.broadcast %13 : vector<1x384xf32> to vector<64x384xf32>
    %15 = arith.addf %12, %14 : vector<64x384xf32>
    %c0_16 = arith.constant 0 : index
    %c0_17 = arith.constant 0 : index
    %16 = vector.load %arg22[%c0_16, %c0_17] : memref<64x384xf32, #tpu.memory_space<vmem>>, vector<64x384xf32>
    tpu.vector_store %arg22[%c0_16, %c0_17], %15 {strides = array<i32>} : memref<64x384xf32, #tpu.memory_space<vmem>>, vector<64x384xf32>,
    %c0_18 = arith.constant 0 : index
    %c0_19 = arith.constant 0 : index
    %17 = vector.load %arg8[%c0_18, %c0_19] : memref<1x128xf32, #tpu.memory_space<vmem>>, vector<1x128xf32>
    %18 = vector.shape_cast %17 : vector<1x128xf32> to vector<1x128xf32>
    %19 = vector.broadcast %18 : vector<1x128xf32> to vector<8x128xf32>
    %c0_20 = arith.constant 0 : index
    %c0_21 = arith.constant 0 : index
    %c0_22 = arith.constant 0 : index
    %c0_23 = arith.constant 0 : index
    %20 = vector.load %arg2[%c0_20, %c0_21, %c0_22, %c0_23] : memref<1x2x8x128xf32, #tpu.memory_space<vmem>>, vector<1x1x8x128xf32>
    %21 = vector.shape_cast %20 : vector<1x1x8x128xf32> to vector<8x128xf32>
    %c0_i32 = arith.constant 0 : i32
    %c8_i32 = arith.constant 8 : i32
    %22 = arith.muli %c0_i32, %c8_i32 : i32
    %23 = tpu.assume_multiple %22, 8 : i32
    %24 = arith.index_cast %23 : i32 to index
    %c0_24 = arith.constant 0 : index
    %25 = vector.load %arg22[%24, %c0_24] : memref<64x384xf32, #tpu.memory_space<vmem>>, vector<8x384xf32>
    %c0_25 = arith.constant 0 : index
    %c0_26 = arith.constant 0 : index
    %26 = vector.load %arg6[%c0_25, %c0_26] : memref<128x384xf32, #tpu.memory_space<vmem>>, vector<128x384xf32>
    %cst_27 = arith.constant dense<0.000000e+00> : vector<8x384xf32>
    %27 = tpu.matmul %21, %26, %cst_27 {dimension_numbers = #tpu.dot_dimension_numbers<[1], [0], [0], [1], [0, 0, 1, 1], [], []>} : vector<8x128xf32>, vector<128x384xf32>, vector<8x384xf32> -> vector<8x384xf32>
    %28 = vector.extract_strided_slice %25 {offsets = [0, 0], sizes = [8, 128], strides = [1, 1]} : vector<8x384xf32> to vector<8x128xf32>
    %29 = vector.extract_strided_slice %27 {offsets = [0, 0], sizes = [8, 128], strides = [1, 1]} : vector<8x384xf32> to vector<8x128xf32>
    %30 = arith.addf %28, %29 : vector<8x128xf32>
    %31 = arith.negf %30 : vector<8x128xf32>
    %32 = math.exp %31 : vector<8x128xf32>
    %cst_28 = arith.constant 1.000000e+00 : f32
    %33 = vector.broadcast %cst_28 : f32 to vector<8x128xf32>
    %34 = arith.addf %33, %32 : vector<8x128xf32>
    %35 = arith.divf %33, %34 : vector<8x128xf32>
    %36 = vector.extract_strided_slice %25 {offsets = [0, 128], sizes = [8, 128], strides = [1, 1]} : vector<8x384xf32> to vector<8x128xf32>
    %37 = vector.extract_strided_slice %27 {offsets = [0, 128], sizes = [8, 128], strides = [1, 1]} : vector<8x384xf32> to vector<8x128xf32>
    %38 = arith.addf %36, %37 : vector<8x128xf32>
    %39 = arith.negf %38 : vector<8x128xf32>
    %40 = math.exp %39 : vector<8x128xf32>
    %cst_29 = arith.constant 1.000000e+00 : f32
    %41 = vector.broadcast %cst_29 : f32 to vector<8x128xf32>
    %42 = arith.addf %41, %40 : vector<8x128xf32>
    %43 = arith.divf %41, %42 : vector<8x128xf32>
    %44 = vector.extract_strided_slice %25 {offsets = [0, 256], sizes = [8, 128], strides = [1, 1]} : vector<8x384xf32> to vector<8x128xf32>
    %45 = vector.extract_strided_slice %27 {offsets = [0, 256], sizes = [8, 128], strides = [1, 1]} : vector<8x384xf32> to vector<8x128xf32>
    %46 = arith.addf %45, %19 : vector<8x128xf32>
    %47 = arith.mulf %35, %46 : vector<8x128xf32>
    %48 = arith.addf %44, %47 : vector<8x128xf32>
    %49 = math.tanh %48 : vector<8x128xf32>
    %cst_30 = arith.constant 1.000000e+00 : f32
    %50 = vector.broadcast %cst_30 : f32 to vector<8x128xf32>
    %51 = arith.subf %50, %43 : vector<8x128xf32>
    %52 = arith.mulf %51, %49 : vector<8x128xf32>
    %53 = arith.mulf %43, %21 : vector<8x128xf32>
    %54 = arith.addf %52, %53 : vector<8x128xf32>
    %55 = arith.index_cast %23 : i32 to index
    %c0_31 = arith.constant 0 : index
    %56 = vector.load %arg20[%55, %c0_31] : memref<64x128xf32, #tpu.memory_space<vmem>>, vector<8x128xf32>
    tpu.vector_store %arg20[%55, %c0_31], %54 {strides = array<i32>} : memref<64x128xf32, #tpu.memory_space<vmem>>, vector<8x128xf32>,
    %c1_i32 = arith.constant 1 : i32
    %c8_i32_32 = arith.constant 8 : i32
    %57 = arith.muli %c1_i32, %c8_i32_32 : i32
    %58 = tpu.assume_multiple %57, 8 : i32
    %59 = arith.index_cast %58 : i32 to index
    %c0_33 = arith.constant 0 : index
    %60 = vector.load %arg22[%59, %c0_33] : memref<64x384xf32, #tpu.memory_space<vmem>>, vector<8x384xf32>
    %c0_34 = arith.constant 0 : index
    %c0_35 = arith.constant 0 : index
    %61 = vector.load %arg6[%c0_34, %c0_35] : memref<128x384xf32, #tpu.memory_space<vmem>>, vector<128x384xf32>
    %cst_36 = arith.constant dense<0.000000e+00> : vector<8x384xf32>
    %62 = tpu.matmul %54, %61, %cst_36 {dimension_numbers = #tpu.dot_dimension_numbers<[1], [0], [0], [1], [0, 0, 1, 1], [], []>} : vector<8x128xf32>, vector<128x384xf32>, vector<8x384xf32> -> vector<8x384xf32>
    %63 = vector.extract_strided_slice %60 {offsets = [0, 0], sizes = [8, 128], strides = [1, 1]} : vector<8x384xf32> to vector<8x128xf32>
    %64 = vector.extract_strided_slice %62 {offsets = [0, 0], sizes = [8, 128], strides = [1, 1]} : vector<8x384xf32> to vector<8x128xf32>
    %65 = arith.addf %63, %64 : vector<8x128xf32>
    %66 = arith.negf %65 : vector<8x128xf32>
    %67 = math.exp %66 : vector<8x128xf32>
    %cst_37 = arith.constant 1.000000e+00 : f32
    %68 = vector.broadcast %cst_37 : f32 to vector<8x128xf32>
    %69 = arith.addf %68, %67 : vector<8x128xf32>
    %70 = arith.divf %68, %69 : vector<8x128xf32>
    %71 = vector.extract_strided_slice %60 {offsets = [0, 128], sizes = [8, 128], strides = [1, 1]} : vector<8x384xf32> to vector<8x128xf32>
    %72 = vector.extract_strided_slice %62 {offsets = [0, 128], sizes = [8, 128], strides = [1, 1]} : vector<8x384xf32> to vector<8x128xf32>
    %73 = arith.addf %71, %72 : vector<8x128xf32>
    %74 = arith.negf %73 : vector<8x128xf32>
    %75 = math.exp %74 : vector<8x128xf32>
    %cst_38 = arith.constant 1.000000e+00 : f32
    %76 = vector.broadcast %cst_38 : f32 to vector<8x128xf32>
    %77 = arith.addf %76, %75 : vector<8x128xf32>
    %78 = arith.divf %76, %77 : vector<8x128xf32>
    %79 = vector.extract_strided_slice %60 {offsets = [0, 256], sizes = [8, 128], strides = [1, 1]} : vector<8x384xf32> to vector<8x128xf32>
    %80 = vector.extract_strided_slice %62 {offsets = [0, 256], sizes = [8, 128], strides = [1, 1]} : vector<8x384xf32> to vector<8x128xf32>
    %81 = arith.addf %80, %19 : vector<8x128xf32>
    %82 = arith.mulf %70, %81 : vector<8x128xf32>
    %83 = arith.addf %79, %82 : vector<8x128xf32>
    %84 = math.tanh %83 : vector<8x128xf32>
    %cst_39 = arith.constant 1.000000e+00 : f32
    %85 = vector.broadcast %cst_39 : f32 to vector<8x128xf32>
    %86 = arith.subf %85, %78 : vector<8x128xf32>
    %87 = arith.mulf %86, %84 : vector<8x128xf32>
    %88 = arith.mulf %78, %54 : vector<8x128xf32>
    %89 = arith.addf %87, %88 : vector<8x128xf32>
    %90 = arith.index_cast %58 : i32 to index
    %c0_40 = arith.constant 0 : index
    %91 = vector.load %arg20[%90, %c0_40] : memref<64x128xf32, #tpu.memory_space<vmem>>, vector<8x128xf32>
    tpu.vector_store %arg20[%90, %c0_40], %89 {strides = array<i32>} : memref<64x128xf32, #tpu.memory_space<vmem>>, vector<8x128xf32>,
    %c2_i32 = arith.constant 2 : i32
    %c8_i32_41 = arith.constant 8 : i32
    %92 = arith.muli %c2_i32, %c8_i32_41 : i32
    %93 = tpu.assume_multiple %92, 8 : i32
    %94 = arith.index_cast %93 : i32 to index
    %c0_42 = arith.constant 0 : index
    %95 = vector.load %arg22[%94, %c0_42] : memref<64x384xf32, #tpu.memory_space<vmem>>, vector<8x384xf32>
    %c0_43 = arith.constant 0 : index
    %c0_44 = arith.constant 0 : index
    %96 = vector.load %arg6[%c0_43, %c0_44] : memref<128x384xf32, #tpu.memory_space<vmem>>, vector<128x384xf32>
    %cst_45 = arith.constant dense<0.000000e+00> : vector<8x384xf32>
    %97 = tpu.matmul %89, %96, %cst_45 {dimension_numbers = #tpu.dot_dimension_numbers<[1], [0], [0], [1], [0, 0, 1, 1], [], []>} : vector<8x128xf32>, vector<128x384xf32>, vector<8x384xf32> -> vector<8x384xf32>
    %98 = vector.extract_strided_slice %95 {offsets = [0, 0], sizes = [8, 128], strides = [1, 1]} : vector<8x384xf32> to vector<8x128xf32>
    %99 = vector.extract_strided_slice %97 {offsets = [0, 0], sizes = [8, 128], strides = [1, 1]} : vector<8x384xf32> to vector<8x128xf32>
    %100 = arith.addf %98, %99 : vector<8x128xf32>
    %101 = arith.negf %100 : vector<8x128xf32>
    %102 = math.exp %101 : vector<8x128xf32>
    %cst_46 = arith.constant 1.000000e+00 : f32
    %103 = vector.broadcast %cst_46 : f32 to vector<8x128xf32>
    %104 = arith.addf %103, %102 : vector<8x128xf32>
    %105 = arith.divf %103, %104 : vector<8x128xf32>
    %106 = vector.extract_strided_slice %95 {offsets = [0, 128], sizes = [8, 128], strides = [1, 1]} : vector<8x384xf32> to vector<8x128xf32>
    %107 = vector.extract_strided_slice %97 {offsets = [0, 128], sizes = [8, 128], strides = [1, 1]} : vector<8x384xf32> to vector<8x128xf32>
    %108 = arith.addf %106, %107 : vector<8x128xf32>
    %109 = arith.negf %108 : vector<8x128xf32>
    %110 = math.exp %109 : vector<8x128xf32>
    %cst_47 = arith.constant 1.000000e+00 : f32
    %111 = vector.broadcast %cst_47 : f32 to vector<8x128xf32>
    %112 = arith.addf %111, %110 : vector<8x128xf32>
    %113 = arith.divf %111, %112 : vector<8x128xf32>
    %114 = vector.extract_strided_slice %95 {offsets = [0, 256], sizes = [8, 128], strides = [1, 1]} : vector<8x384xf32> to vector<8x128xf32>
    %115 = vector.extract_strided_slice %97 {offsets = [0, 256], sizes = [8, 128], strides = [1, 1]} : vector<8x384xf32> to vector<8x128xf32>
    %116 = arith.addf %115, %19 : vector<8x128xf32>
    %117 = arith.mulf %105, %116 : vector<8x128xf32>
    %118 = arith.addf %114, %117 : vector<8x128xf32>
    %119 = math.tanh %118 : vector<8x128xf32>
    %cst_48 = arith.constant 1.000000e+00 : f32
    %120 = vector.broadcast %cst_48 : f32 to vector<8x128xf32>
    %121 = arith.subf %120, %113 : vector<8x128xf32>
    %122 = arith.mulf %121, %119 : vector<8x128xf32>
    %123 = arith.mulf %113, %89 : vector<8x128xf32>
    %124 = arith.addf %122, %123 : vector<8x128xf32>
    %125 = arith.index_cast %93 : i32 to index
    %c0_49 = arith.constant 0 : index
    %126 = vector.load %arg20[%125, %c0_49] : memref<64x128xf32, #tpu.memory_space<vmem>>, vector<8x128xf32>
    tpu.vector_store %arg20[%125, %c0_49], %124 {strides = array<i32>} : memref<64x128xf32, #tpu.memory_space<vmem>>, vector<8x128xf32>,
    %c3_i32 = arith.constant 3 : i32
    %c8_i32_50 = arith.constant 8 : i32
    %127 = arith.muli %c3_i32, %c8_i32_50 : i32
    %128 = tpu.assume_multiple %127, 8 : i32
    %129 = arith.index_cast %128 : i32 to index
    %c0_51 = arith.constant 0 : index
    %130 = vector.load %arg22[%129, %c0_51] : memref<64x384xf32, #tpu.memory_space<vmem>>, vector<8x384xf32>
    %c0_52 = arith.constant 0 : index
    %c0_53 = arith.constant 0 : index
    %131 = vector.load %arg6[%c0_52, %c0_53] : memref<128x384xf32, #tpu.memory_space<vmem>>, vector<128x384xf32>
    %cst_54 = arith.constant dense<0.000000e+00> : vector<8x384xf32>
    %132 = tpu.matmul %124, %131, %cst_54 {dimension_numbers = #tpu.dot_dimension_numbers<[1], [0], [0], [1], [0, 0, 1, 1], [], []>} : vector<8x128xf32>, vector<128x384xf32>, vector<8x384xf32> -> vector<8x384xf32>
    %133 = vector.extract_strided_slice %130 {offsets = [0, 0], sizes = [8, 128], strides = [1, 1]} : vector<8x384xf32> to vector<8x128xf32>
    %134 = vector.extract_strided_slice %132 {offsets = [0, 0], sizes = [8, 128], strides = [1, 1]} : vector<8x384xf32> to vector<8x128xf32>
    %135 = arith.addf %133, %134 : vector<8x128xf32>
    %136 = arith.negf %135 : vector<8x128xf32>
    %137 = math.exp %136 : vector<8x128xf32>
    %cst_55 = arith.constant 1.000000e+00 : f32
    %138 = vector.broadcast %cst_55 : f32 to vector<8x128xf32>
    %139 = arith.addf %138, %137 : vector<8x128xf32>
    %140 = arith.divf %138, %139 : vector<8x128xf32>
    %141 = vector.extract_strided_slice %130 {offsets = [0, 128], sizes = [8, 128], strides = [1, 1]} : vector<8x384xf32> to vector<8x128xf32>
    %142 = vector.extract_strided_slice %132 {offsets = [0, 128], sizes = [8, 128], strides = [1, 1]} : vector<8x384xf32> to vector<8x128xf32>
    %143 = arith.addf %141, %142 : vector<8x128xf32>
    %144 = arith.negf %143 : vector<8x128xf32>
    %145 = math.exp %144 : vector<8x128xf32>
    %cst_56 = arith.constant 1.000000e+00 : f32
    %146 = vector.broadcast %cst_56 : f32 to vector<8x128xf32>
    %147 = arith.addf %146, %145 : vector<8x128xf32>
    %148 = arith.divf %146, %147 : vector<8x128xf32>
    %149 = vector.extract_strided_slice %130 {offsets = [0, 256], sizes = [8, 128], strides = [1, 1]} : vector<8x384xf32> to vector<8x128xf32>
    %150 = vector.extract_strided_slice %132 {offsets = [0, 256], sizes = [8, 128], strides = [1, 1]} : vector<8x384xf32> to vector<8x128xf32>
    %151 = arith.addf %150, %19 : vector<8x128xf32>
    %152 = arith.mulf %140, %151 : vector<8x128xf32>
    %153 = arith.addf %149, %152 : vector<8x128xf32>
    %154 = math.tanh %153 : vector<8x128xf32>
    %cst_57 = arith.constant 1.000000e+00 : f32
    %155 = vector.broadcast %cst_57 : f32 to vector<8x128xf32>
    %156 = arith.subf %155, %148 : vector<8x128xf32>
    %157 = arith.mulf %156, %154 : vector<8x128xf32>
    %158 = arith.mulf %148, %124 : vector<8x128xf32>
    %159 = arith.addf %157, %158 : vector<8x128xf32>
    %160 = arith.index_cast %128 : i32 to index
    %c0_58 = arith.constant 0 : index
    %161 = vector.load %arg20[%160, %c0_58] : memref<64x128xf32, #tpu.memory_space<vmem>>, vector<8x128xf32>
    tpu.vector_store %arg20[%160, %c0_58], %159 {strides = array<i32>} : memref<64x128xf32, #tpu.memory_space<vmem>>, vector<8x128xf32>,
    %c4_i32 = arith.constant 4 : i32
    %c8_i32_59 = arith.constant 8 : i32
    %162 = arith.muli %c4_i32, %c8_i32_59 : i32
    %163 = tpu.assume_multiple %162, 8 : i32
    %164 = arith.index_cast %163 : i32 to index
    %c0_60 = arith.constant 0 : index
    %165 = vector.load %arg22[%164, %c0_60] : memref<64x384xf32, #tpu.memory_space<vmem>>, vector<8x384xf32>
    %c0_61 = arith.constant 0 : index
    %c0_62 = arith.constant 0 : index
    %166 = vector.load %arg6[%c0_61, %c0_62] : memref<128x384xf32, #tpu.memory_space<vmem>>, vector<128x384xf32>
    %cst_63 = arith.constant dense<0.000000e+00> : vector<8x384xf32>
    %167 = tpu.matmul %159, %166, %cst_63 {dimension_numbers = #tpu.dot_dimension_numbers<[1], [0], [0], [1], [0, 0, 1, 1], [], []>} : vector<8x128xf32>, vector<128x384xf32>, vector<8x384xf32> -> vector<8x384xf32>
    %168 = vector.extract_strided_slice %165 {offsets = [0, 0], sizes = [8, 128], strides = [1, 1]} : vector<8x384xf32> to vector<8x128xf32>
    %169 = vector.extract_strided_slice %167 {offsets = [0, 0], sizes = [8, 128], strides = [1, 1]} : vector<8x384xf32> to vector<8x128xf32>
    %170 = arith.addf %168, %169 : vector<8x128xf32>
    %171 = arith.negf %170 : vector<8x128xf32>
    %172 = math.exp %171 : vector<8x128xf32>
    %cst_64 = arith.constant 1.000000e+00 : f32
    %173 = vector.broadcast %cst_64 : f32 to vector<8x128xf32>
    %174 = arith.addf %173, %172 : vector<8x128xf32>
    %175 = arith.divf %173, %174 : vector<8x128xf32>
    %176 = vector.extract_strided_slice %165 {offsets = [0, 128], sizes = [8, 128], strides = [1, 1]} : vector<8x384xf32> to vector<8x128xf32>
    %177 = vector.extract_strided_slice %167 {offsets = [0, 128], sizes = [8, 128], strides = [1, 1]} : vector<8x384xf32> to vector<8x128xf32>
    %178 = arith.addf %176, %177 : vector<8x128xf32>
    %179 = arith.negf %178 : vector<8x128xf32>
    %180 = math.exp %179 : vector<8x128xf32>
    %cst_65 = arith.constant 1.000000e+00 : f32
    %181 = vector.broadcast %cst_65 : f32 to vector<8x128xf32>
    %182 = arith.addf %181, %180 : vector<8x128xf32>
    %183 = arith.divf %181, %182 : vector<8x128xf32>
    %184 = vector.extract_strided_slice %165 {offsets = [0, 256], sizes = [8, 128], strides = [1, 1]} : vector<8x384xf32> to vector<8x128xf32>
    %185 = vector.extract_strided_slice %167 {offsets = [0, 256], sizes = [8, 128], strides = [1, 1]} : vector<8x384xf32> to vector<8x128xf32>
    %186 = arith.addf %185, %19 : vector<8x128xf32>
    %187 = arith.mulf %175, %186 : vector<8x128xf32>
    %188 = arith.addf %184, %187 : vector<8x128xf32>
    %189 = math.tanh %188 : vector<8x128xf32>
    %cst_66 = arith.constant 1.000000e+00 : f32
    %190 = vector.broadcast %cst_66 : f32 to vector<8x128xf32>
    %191 = arith.subf %190, %183 : vector<8x128xf32>
    %192 = arith.mulf %191, %189 : vector<8x128xf32>
    %193 = arith.mulf %183, %159 : vector<8x128xf32>
    %194 = arith.addf %192, %193 : vector<8x128xf32>
    %195 = arith.index_cast %163 : i32 to index
    %c0_67 = arith.constant 0 : index
    %196 = vector.load %arg20[%195, %c0_67] : memref<64x128xf32, #tpu.memory_space<vmem>>, vector<8x128xf32>
    tpu.vector_store %arg20[%195, %c0_67], %194 {strides = array<i32>} : memref<64x128xf32, #tpu.memory_space<vmem>>, vector<8x128xf32>,
    %c5_i32 = arith.constant 5 : i32
    %c8_i32_68 = arith.constant 8 : i32
    %197 = arith.muli %c5_i32, %c8_i32_68 : i32
    %198 = tpu.assume_multiple %197, 8 : i32
    %199 = arith.index_cast %198 : i32 to index
    %c0_69 = arith.constant 0 : index
    %200 = vector.load %arg22[%199, %c0_69] : memref<64x384xf32, #tpu.memory_space<vmem>>, vector<8x384xf32>
    %c0_70 = arith.constant 0 : index
    %c0_71 = arith.constant 0 : index
    %201 = vector.load %arg6[%c0_70, %c0_71] : memref<128x384xf32, #tpu.memory_space<vmem>>, vector<128x384xf32>
    %cst_72 = arith.constant dense<0.000000e+00> : vector<8x384xf32>
    %202 = tpu.matmul %194, %201, %cst_72 {dimension_numbers = #tpu.dot_dimension_numbers<[1], [0], [0], [1], [0, 0, 1, 1], [], []>} : vector<8x128xf32>, vector<128x384xf32>, vector<8x384xf32> -> vector<8x384xf32>
    %203 = vector.extract_strided_slice %200 {offsets = [0, 0], sizes = [8, 128], strides = [1, 1]} : vector<8x384xf32> to vector<8x128xf32>
    %204 = vector.extract_strided_slice %202 {offsets = [0, 0], sizes = [8, 128], strides = [1, 1]} : vector<8x384xf32> to vector<8x128xf32>
    %205 = arith.addf %203, %204 : vector<8x128xf32>
    %206 = arith.negf %205 : vector<8x128xf32>
    %207 = math.exp %206 : vector<8x128xf32>
    %cst_73 = arith.constant 1.000000e+00 : f32
    %208 = vector.broadcast %cst_73 : f32 to vector<8x128xf32>
    %209 = arith.addf %208, %207 : vector<8x128xf32>
    %210 = arith.divf %208, %209 : vector<8x128xf32>
    %211 = vector.extract_strided_slice %200 {offsets = [0, 128], sizes = [8, 128], strides = [1, 1]} : vector<8x384xf32> to vector<8x128xf32>
    %212 = vector.extract_strided_slice %202 {offsets = [0, 128], sizes = [8, 128], strides = [1, 1]} : vector<8x384xf32> to vector<8x128xf32>
    %213 = arith.addf %211, %212 : vector<8x128xf32>
    %214 = arith.negf %213 : vector<8x128xf32>
    %215 = math.exp %214 : vector<8x128xf32>
    %cst_74 = arith.constant 1.000000e+00 : f32
    %216 = vector.broadcast %cst_74 : f32 to vector<8x128xf32>
    %217 = arith.addf %216, %215 : vector<8x128xf32>
    %218 = arith.divf %216, %217 : vector<8x128xf32>
    %219 = vector.extract_strided_slice %200 {offsets = [0, 256], sizes = [8, 128], strides = [1, 1]} : vector<8x384xf32> to vector<8x128xf32>
    %220 = vector.extract_strided_slice %202 {offsets = [0, 256], sizes = [8, 128], strides = [1, 1]} : vector<8x384xf32> to vector<8x128xf32>
    %221 = arith.addf %220, %19 : vector<8x128xf32>
    %222 = arith.mulf %210, %221 : vector<8x128xf32>
    %223 = arith.addf %219, %222 : vector<8x128xf32>
    %224 = math.tanh %223 : vector<8x128xf32>
    %cst_75 = arith.constant 1.000000e+00 : f32
    %225 = vector.broadcast %cst_75 : f32 to vector<8x128xf32>
    %226 = arith.subf %225, %218 : vector<8x128xf32>
    %227 = arith.mulf %226, %224 : vector<8x128xf32>
    %228 = arith.mulf %218, %194 : vector<8x128xf32>
    %229 = arith.addf %227, %228 : vector<8x128xf32>
    %230 = arith.index_cast %198 : i32 to index
    %c0_76 = arith.constant 0 : index
    %231 = vector.load %arg20[%230, %c0_76] : memref<64x128xf32, #tpu.memory_space<vmem>>, vector<8x128xf32>
    tpu.vector_store %arg20[%230, %c0_76], %229 {strides = array<i32>} : memref<64x128xf32, #tpu.memory_space<vmem>>, vector<8x128xf32>,
    %c6_i32 = arith.constant 6 : i32
    %c8_i32_77 = arith.constant 8 : i32
    %232 = arith.muli %c6_i32, %c8_i32_77 : i32
    %233 = tpu.assume_multiple %232, 8 : i32
    %234 = arith.index_cast %233 : i32 to index
    %c0_78 = arith.constant 0 : index
    %235 = vector.load %arg22[%234, %c0_78] : memref<64x384xf32, #tpu.memory_space<vmem>>, vector<8x384xf32>
    %c0_79 = arith.constant 0 : index
    %c0_80 = arith.constant 0 : index
    %236 = vector.load %arg6[%c0_79, %c0_80] : memref<128x384xf32, #tpu.memory_space<vmem>>, vector<128x384xf32>
    %cst_81 = arith.constant dense<0.000000e+00> : vector<8x384xf32>
    %237 = tpu.matmul %229, %236, %cst_81 {dimension_numbers = #tpu.dot_dimension_numbers<[1], [0], [0], [1], [0, 0, 1, 1], [], []>} : vector<8x128xf32>, vector<128x384xf32>, vector<8x384xf32> -> vector<8x384xf32>
    %238 = vector.extract_strided_slice %235 {offsets = [0, 0], sizes = [8, 128], strides = [1, 1]} : vector<8x384xf32> to vector<8x128xf32>
    %239 = vector.extract_strided_slice %237 {offsets = [0, 0], sizes = [8, 128], strides = [1, 1]} : vector<8x384xf32> to vector<8x128xf32>
    %240 = arith.addf %238, %239 : vector<8x128xf32>
    %241 = arith.negf %240 : vector<8x128xf32>
    %242 = math.exp %241 : vector<8x128xf32>
    %cst_82 = arith.constant 1.000000e+00 : f32
    %243 = vector.broadcast %cst_82 : f32 to vector<8x128xf32>
    %244 = arith.addf %243, %242 : vector<8x128xf32>
    %245 = arith.divf %243, %244 : vector<8x128xf32>
    %246 = vector.extract_strided_slice %235 {offsets = [0, 128], sizes = [8, 128], strides = [1, 1]} : vector<8x384xf32> to vector<8x128xf32>
    %247 = vector.extract_strided_slice %237 {offsets = [0, 128], sizes = [8, 128], strides = [1, 1]} : vector<8x384xf32> to vector<8x128xf32>
    %248 = arith.addf %246, %247 : vector<8x128xf32>
    %249 = arith.negf %248 : vector<8x128xf32>
    %250 = math.exp %249 : vector<8x128xf32>
    %cst_83 = arith.constant 1.000000e+00 : f32
    %251 = vector.broadcast %cst_83 : f32 to vector<8x128xf32>
    %252 = arith.addf %251, %250 : vector<8x128xf32>
    %253 = arith.divf %251, %252 : vector<8x128xf32>
    %254 = vector.extract_strided_slice %235 {offsets = [0, 256], sizes = [8, 128], strides = [1, 1]} : vector<8x384xf32> to vector<8x128xf32>
    %255 = vector.extract_strided_slice %237 {offsets = [0, 256], sizes = [8, 128], strides = [1, 1]} : vector<8x384xf32> to vector<8x128xf32>
    %256 = arith.addf %255, %19 : vector<8x128xf32>
    %257 = arith.mulf %245, %256 : vector<8x128xf32>
    %258 = arith.addf %254, %257 : vector<8x128xf32>
    %259 = math.tanh %258 : vector<8x128xf32>
    %cst_84 = arith.constant 1.000000e+00 : f32
    %260 = vector.broadcast %cst_84 : f32 to vector<8x128xf32>
    %261 = arith.subf %260, %253 : vector<8x128xf32>
    %262 = arith.mulf %261, %259 : vector<8x128xf32>
    %263 = arith.mulf %253, %229 : vector<8x128xf32>
    %264 = arith.addf %262, %263 : vector<8x128xf32>
    %265 = arith.index_cast %233 : i32 to index
    %c0_85 = arith.constant 0 : index
    %266 = vector.load %arg20[%265, %c0_85] : memref<64x128xf32, #tpu.memory_space<vmem>>, vector<8x128xf32>
    tpu.vector_store %arg20[%265, %c0_85], %264 {strides = array<i32>} : memref<64x128xf32, #tpu.memory_space<vmem>>, vector<8x128xf32>,
    %c7_i32 = arith.constant 7 : i32
    %c8_i32_86 = arith.constant 8 : i32
    %267 = arith.muli %c7_i32, %c8_i32_86 : i32
    %268 = tpu.assume_multiple %267, 8 : i32
    %269 = arith.index_cast %268 : i32 to index
    %c0_87 = arith.constant 0 : index
    %270 = vector.load %arg22[%269, %c0_87] : memref<64x384xf32, #tpu.memory_space<vmem>>, vector<8x384xf32>
    %c0_88 = arith.constant 0 : index
    %c0_89 = arith.constant 0 : index
    %271 = vector.load %arg6[%c0_88, %c0_89] : memref<128x384xf32, #tpu.memory_space<vmem>>, vector<128x384xf32>
    %cst_90 = arith.constant dense<0.000000e+00> : vector<8x384xf32>
    %272 = tpu.matmul %264, %271, %cst_90 {dimension_numbers = #tpu.dot_dimension_numbers<[1], [0], [0], [1], [0, 0, 1, 1], [], []>} : vector<8x128xf32>, vector<128x384xf32>, vector<8x384xf32> -> vector<8x384xf32>
    %273 = vector.extract_strided_slice %270 {offsets = [0, 0], sizes = [8, 128], strides = [1, 1]} : vector<8x384xf32> to vector<8x128xf32>
    %274 = vector.extract_strided_slice %272 {offsets = [0, 0], sizes = [8, 128], strides = [1, 1]} : vector<8x384xf32> to vector<8x128xf32>
    %275 = arith.addf %273, %274 : vector<8x128xf32>
    %276 = arith.negf %275 : vector<8x128xf32>
    %277 = math.exp %276 : vector<8x128xf32>
    %cst_91 = arith.constant 1.000000e+00 : f32
    %278 = vector.broadcast %cst_91 : f32 to vector<8x128xf32>
    %279 = arith.addf %278, %277 : vector<8x128xf32>
    %280 = arith.divf %278, %279 : vector<8x128xf32>
    %281 = vector.extract_strided_slice %270 {offsets = [0, 128], sizes = [8, 128], strides = [1, 1]} : vector<8x384xf32> to vector<8x128xf32>
    %282 = vector.extract_strided_slice %272 {offsets = [0, 128], sizes = [8, 128], strides = [1, 1]} : vector<8x384xf32> to vector<8x128xf32>
    %283 = arith.addf %281, %282 : vector<8x128xf32>
    %284 = arith.negf %283 : vector<8x128xf32>
    %285 = math.exp %284 : vector<8x128xf32>
    %cst_92 = arith.constant 1.000000e+00 : f32
    %286 = vector.broadcast %cst_92 : f32 to vector<8x128xf32>
    %287 = arith.addf %286, %285 : vector<8x128xf32>
    %288 = arith.divf %286, %287 : vector<8x128xf32>
    %289 = vector.extract_strided_slice %270 {offsets = [0, 256], sizes = [8, 128], strides = [1, 1]} : vector<8x384xf32> to vector<8x128xf32>
    %290 = vector.extract_strided_slice %272 {offsets = [0, 256], sizes = [8, 128], strides = [1, 1]} : vector<8x384xf32> to vector<8x128xf32>
    %291 = arith.addf %290, %19 : vector<8x128xf32>
    %292 = arith.mulf %280, %291 : vector<8x128xf32>
    %293 = arith.addf %289, %292 : vector<8x128xf32>
    %294 = math.tanh %293 : vector<8x128xf32>
    %cst_93 = arith.constant 1.000000e+00 : f32
    %295 = vector.broadcast %cst_93 : f32 to vector<8x128xf32>
    %296 = arith.subf %295, %288 : vector<8x128xf32>
    %297 = arith.mulf %296, %294 : vector<8x128xf32>
    %298 = arith.mulf %288, %264 : vector<8x128xf32>
    %299 = arith.addf %297, %298 : vector<8x128xf32>
    %300 = arith.index_cast %268 : i32 to index
    %c0_94 = arith.constant 0 : index
    %301 = vector.load %arg20[%300, %c0_94] : memref<64x128xf32, #tpu.memory_space<vmem>>, vector<8x128xf32>
    tpu.vector_store %arg20[%300, %c0_94], %299 {strides = array<i32>} : memref<64x128xf32, #tpu.memory_space<vmem>>, vector<8x128xf32>,
    %c8_i32_95 = arith.constant 8 : i32
    %c0_96 = arith.constant 0 : index
    %c0_97 = arith.constant 0 : index
    %c0_98 = arith.constant 0 : index
    %c0_99 = arith.constant 0 : index
    %302 = vector.load %arg18[%c0_96, %c0_97, %c0_98, %c0_99] : memref<1x2x8x128xf32, #tpu.memory_space<vmem>>, vector<1x1x8x128xf32>
    %303 = vector.shape_cast %302 : vector<1x1x8x128xf32> to vector<8x128xf32>
    %304 = vector.shape_cast %299 : vector<8x128xf32> to vector<1x1x8x128xf32>
    tpu.vector_store %arg18[%c0_96, %c0_97, %c0_98, %c0_99], %304 {strides = array<i32>} : memref<1x2x8x128xf32, #tpu.memory_space<vmem>>, vector<1x1x8x128xf32>,
    %c0_100 = arith.constant 0 : index
    %c0_101 = arith.constant 0 : index
    %305 = vector.load %arg20[%c0_100, %c0_101] : memref<64x128xf32, #tpu.memory_space<vmem>>, vector<64x128xf32>
    %c0_102 = arith.constant 0 : index
    %c0_103 = arith.constant 0 : index
    %306 = vector.load %arg9[%c0_102, %c0_103] : memref<128x384xf32, #tpu.memory_space<vmem>>, vector<128x384xf32>
    %cst_104 = arith.constant dense<0.000000e+00> : vector<64x384xf32>
    %307 = tpu.matmul %305, %306, %cst_104 {dimension_numbers = #tpu.dot_dimension_numbers<[1], [0], [0], [1], [0, 0, 1, 1], [], []>} : vector<64x128xf32>, vector<128x384xf32>, vector<64x384xf32> -> vector<64x384xf32>
    %c0_105 = arith.constant 0 : index
    %c0_106 = arith.constant 0 : index
    %308 = vector.load %arg11[%c0_105, %c0_106] : memref<1x384xf32, #tpu.memory_space<vmem>>, vector<1x384xf32>
    %309 = vector.broadcast %308 : vector<1x384xf32> to vector<64x384xf32>
    %310 = arith.addf %307, %309 : vector<64x384xf32>
    %c0_107 = arith.constant 0 : index
    %c0_108 = arith.constant 0 : index
    %311 = vector.load %arg22[%c0_107, %c0_108] : memref<64x384xf32, #tpu.memory_space<vmem>>, vector<64x384xf32>
    tpu.vector_store %arg22[%c0_107, %c0_108], %310 {strides = array<i32>} : memref<64x384xf32, #tpu.memory_space<vmem>>, vector<64x384xf32>,
    %c0_109 = arith.constant 0 : index
    %c0_110 = arith.constant 0 : index
    %312 = vector.load %arg12[%c0_109, %c0_110] : memref<1x128xf32, #tpu.memory_space<vmem>>, vector<1x128xf32>
    %313 = vector.shape_cast %312 : vector<1x128xf32> to vector<1x128xf32>
    %314 = vector.broadcast %313 : vector<1x128xf32> to vector<8x128xf32>
    %c0_111 = arith.constant 0 : index
    %c1 = arith.constant 1 : index
    %c0_112 = arith.constant 0 : index
    %c0_113 = arith.constant 0 : index
    %315 = vector.load %arg2[%c0_111, %c1, %c0_112, %c0_113] : memref<1x2x8x128xf32, #tpu.memory_space<vmem>>, vector<1x1x8x128xf32>
    %316 = vector.shape_cast %315 : vector<1x1x8x128xf32> to vector<8x128xf32>
    %c0_i32_114 = arith.constant 0 : i32
    %c8_i32_115 = arith.constant 8 : i32
    %317 = arith.muli %c0_i32_114, %c8_i32_115 : i32
    %318 = tpu.assume_multiple %317, 8 : i32
    %319 = arith.index_cast %318 : i32 to index
    %c0_116 = arith.constant 0 : index
    %320 = vector.load %arg22[%319, %c0_116] : memref<64x384xf32, #tpu.memory_space<vmem>>, vector<8x384xf32>
    %c0_117 = arith.constant 0 : index
    %c0_118 = arith.constant 0 : index
    %321 = vector.load %arg10[%c0_117, %c0_118] : memref<128x384xf32, #tpu.memory_space<vmem>>, vector<128x384xf32>
    %cst_119 = arith.constant dense<0.000000e+00> : vector<8x384xf32>
    %322 = tpu.matmul %316, %321, %cst_119 {dimension_numbers = #tpu.dot_dimension_numbers<[1], [0], [0], [1], [0, 0, 1, 1], [], []>} : vector<8x128xf32>, vector<128x384xf32>, vector<8x384xf32> -> vector<8x384xf32>
    %323 = vector.extract_strided_slice %320 {offsets = [0, 0], sizes = [8, 128], strides = [1, 1]} : vector<8x384xf32> to vector<8x128xf32>
    %324 = vector.extract_strided_slice %322 {offsets = [0, 0], sizes = [8, 128], strides = [1, 1]} : vector<8x384xf32> to vector<8x128xf32>
    %325 = arith.addf %323, %324 : vector<8x128xf32>
    %326 = arith.negf %325 : vector<8x128xf32>
    %327 = math.exp %326 : vector<8x128xf32>
    %cst_120 = arith.constant 1.000000e+00 : f32
    %328 = vector.broadcast %cst_120 : f32 to vector<8x128xf32>
    %329 = arith.addf %328, %327 : vector<8x128xf32>
    %330 = arith.divf %328, %329 : vector<8x128xf32>
    %331 = vector.extract_strided_slice %320 {offsets = [0, 128], sizes = [8, 128], strides = [1, 1]} : vector<8x384xf32> to vector<8x128xf32>
    %332 = vector.extract_strided_slice %322 {offsets = [0, 128], sizes = [8, 128], strides = [1, 1]} : vector<8x384xf32> to vector<8x128xf32>
    %333 = arith.addf %331, %332 : vector<8x128xf32>
    %334 = arith.negf %333 : vector<8x128xf32>
    %335 = math.exp %334 : vector<8x128xf32>
    %cst_121 = arith.constant 1.000000e+00 : f32
    %336 = vector.broadcast %cst_121 : f32 to vector<8x128xf32>
    %337 = arith.addf %336, %335 : vector<8x128xf32>
    %338 = arith.divf %336, %337 : vector<8x128xf32>
    %339 = vector.extract_strided_slice %320 {offsets = [0, 256], sizes = [8, 128], strides = [1, 1]} : vector<8x384xf32> to vector<8x128xf32>
    %340 = vector.extract_strided_slice %322 {offsets = [0, 256], sizes = [8, 128], strides = [1, 1]} : vector<8x384xf32> to vector<8x128xf32>
    %341 = arith.addf %340, %314 : vector<8x128xf32>
    %342 = arith.mulf %330, %341 : vector<8x128xf32>
    %343 = arith.addf %339, %342 : vector<8x128xf32>
    %344 = math.tanh %343 : vector<8x128xf32>
    %cst_122 = arith.constant 1.000000e+00 : f32
    %345 = vector.broadcast %cst_122 : f32 to vector<8x128xf32>
    %346 = arith.subf %345, %338 : vector<8x128xf32>
    %347 = arith.mulf %346, %344 : vector<8x128xf32>
    %348 = arith.mulf %338, %316 : vector<8x128xf32>
    %349 = arith.addf %347, %348 : vector<8x128xf32>
    %350 = arith.index_cast %318 : i32 to index
    %c0_123 = arith.constant 0 : index
    %351 = vector.load %arg21[%350, %c0_123] : memref<64x128xf32, #tpu.memory_space<vmem>>, vector<8x128xf32>
    tpu.vector_store %arg21[%350, %c0_123], %349 {strides = array<i32>} : memref<64x128xf32, #tpu.memory_space<vmem>>, vector<8x128xf32>,
    %c1_i32_124 = arith.constant 1 : i32
    %c8_i32_125 = arith.constant 8 : i32
    %352 = arith.muli %c1_i32_124, %c8_i32_125 : i32
    %353 = tpu.assume_multiple %352, 8 : i32
    %354 = arith.index_cast %353 : i32 to index
    %c0_126 = arith.constant 0 : index
    %355 = vector.load %arg22[%354, %c0_126] : memref<64x384xf32, #tpu.memory_space<vmem>>, vector<8x384xf32>
    %c0_127 = arith.constant 0 : index
    %c0_128 = arith.constant 0 : index
    %356 = vector.load %arg10[%c0_127, %c0_128] : memref<128x384xf32, #tpu.memory_space<vmem>>, vector<128x384xf32>
    %cst_129 = arith.constant dense<0.000000e+00> : vector<8x384xf32>
    %357 = tpu.matmul %349, %356, %cst_129 {dimension_numbers = #tpu.dot_dimension_numbers<[1], [0], [0], [1], [0, 0, 1, 1], [], []>} : vector<8x128xf32>, vector<128x384xf32>, vector<8x384xf32> -> vector<8x384xf32>
    %358 = vector.extract_strided_slice %355 {offsets = [0, 0], sizes = [8, 128], strides = [1, 1]} : vector<8x384xf32> to vector<8x128xf32>
    %359 = vector.extract_strided_slice %357 {offsets = [0, 0], sizes = [8, 128], strides = [1, 1]} : vector<8x384xf32> to vector<8x128xf32>
    %360 = arith.addf %358, %359 : vector<8x128xf32>
    %361 = arith.negf %360 : vector<8x128xf32>
    %362 = math.exp %361 : vector<8x128xf32>
    %cst_130 = arith.constant 1.000000e+00 : f32
    %363 = vector.broadcast %cst_130 : f32 to vector<8x128xf32>
    %364 = arith.addf %363, %362 : vector<8x128xf32>
    %365 = arith.divf %363, %364 : vector<8x128xf32>
    %366 = vector.extract_strided_slice %355 {offsets = [0, 128], sizes = [8, 128], strides = [1, 1]} : vector<8x384xf32> to vector<8x128xf32>
    %367 = vector.extract_strided_slice %357 {offsets = [0, 128], sizes = [8, 128], strides = [1, 1]} : vector<8x384xf32> to vector<8x128xf32>
    %368 = arith.addf %366, %367 : vector<8x128xf32>
    %369 = arith.negf %368 : vector<8x128xf32>
    %370 = math.exp %369 : vector<8x128xf32>
    %cst_131 = arith.constant 1.000000e+00 : f32
    %371 = vector.broadcast %cst_131 : f32 to vector<8x128xf32>
    %372 = arith.addf %371, %370 : vector<8x128xf32>
    %373 = arith.divf %371, %372 : vector<8x128xf32>
    %374 = vector.extract_strided_slice %355 {offsets = [0, 256], sizes = [8, 128], strides = [1, 1]} : vector<8x384xf32> to vector<8x128xf32>
    %375 = vector.extract_strided_slice %357 {offsets = [0, 256], sizes = [8, 128], strides = [1, 1]} : vector<8x384xf32> to vector<8x128xf32>
    %376 = arith.addf %375, %314 : vector<8x128xf32>
    %377 = arith.mulf %365, %376 : vector<8x128xf32>
    %378 = arith.addf %374, %377 : vector<8x128xf32>
    %379 = math.tanh %378 : vector<8x128xf32>
    %cst_132 = arith.constant 1.000000e+00 : f32
    %380 = vector.broadcast %cst_132 : f32 to vector<8x128xf32>
    %381 = arith.subf %380, %373 : vector<8x128xf32>
    %382 = arith.mulf %381, %379 : vector<8x128xf32>
    %383 = arith.mulf %373, %349 : vector<8x128xf32>
    %384 = arith.addf %382, %383 : vector<8x128xf32>
    %385 = arith.index_cast %353 : i32 to index
    %c0_133 = arith.constant 0 : index
    %386 = vector.load %arg21[%385, %c0_133] : memref<64x128xf32, #tpu.memory_space<vmem>>, vector<8x128xf32>
    tpu.vector_store %arg21[%385, %c0_133], %384 {strides = array<i32>} : memref<64x128xf32, #tpu.memory_space<vmem>>, vector<8x128xf32>,
    %c2_i32_134 = arith.constant 2 : i32
    %c8_i32_135 = arith.constant 8 : i32
    %387 = arith.muli %c2_i32_134, %c8_i32_135 : i32
    %388 = tpu.assume_multiple %387, 8 : i32
    %389 = arith.index_cast %388 : i32 to index
    %c0_136 = arith.constant 0 : index
    %390 = vector.load %arg22[%389, %c0_136] : memref<64x384xf32, #tpu.memory_space<vmem>>, vector<8x384xf32>
    %c0_137 = arith.constant 0 : index
    %c0_138 = arith.constant 0 : index
    %391 = vector.load %arg10[%c0_137, %c0_138] : memref<128x384xf32, #tpu.memory_space<vmem>>, vector<128x384xf32>
    %cst_139 = arith.constant dense<0.000000e+00> : vector<8x384xf32>
    %392 = tpu.matmul %384, %391, %cst_139 {dimension_numbers = #tpu.dot_dimension_numbers<[1], [0], [0], [1], [0, 0, 1, 1], [], []>} : vector<8x128xf32>, vector<128x384xf32>, vector<8x384xf32> -> vector<8x384xf32>
    %393 = vector.extract_strided_slice %390 {offsets = [0, 0], sizes = [8, 128], strides = [1, 1]} : vector<8x384xf32> to vector<8x128xf32>
    %394 = vector.extract_strided_slice %392 {offsets = [0, 0], sizes = [8, 128], strides = [1, 1]} : vector<8x384xf32> to vector<8x128xf32>
    %395 = arith.addf %393, %394 : vector<8x128xf32>
    %396 = arith.negf %395 : vector<8x128xf32>
    %397 = math.exp %396 : vector<8x128xf32>
    %cst_140 = arith.constant 1.000000e+00 : f32
    %398 = vector.broadcast %cst_140 : f32 to vector<8x128xf32>
    %399 = arith.addf %398, %397 : vector<8x128xf32>
    %400 = arith.divf %398, %399 : vector<8x128xf32>
    %401 = vector.extract_strided_slice %390 {offsets = [0, 128], sizes = [8, 128], strides = [1, 1]} : vector<8x384xf32> to vector<8x128xf32>
    %402 = vector.extract_strided_slice %392 {offsets = [0, 128], sizes = [8, 128], strides = [1, 1]} : vector<8x384xf32> to vector<8x128xf32>
    %403 = arith.addf %401, %402 : vector<8x128xf32>
    %404 = arith.negf %403 : vector<8x128xf32>
    %405 = math.exp %404 : vector<8x128xf32>
    %cst_141 = arith.constant 1.000000e+00 : f32
    %406 = vector.broadcast %cst_141 : f32 to vector<8x128xf32>
    %407 = arith.addf %406, %405 : vector<8x128xf32>
    %408 = arith.divf %406, %407 : vector<8x128xf32>
    %409 = vector.extract_strided_slice %390 {offsets = [0, 256], sizes = [8, 128], strides = [1, 1]} : vector<8x384xf32> to vector<8x128xf32>
    %410 = vector.extract_strided_slice %392 {offsets = [0, 256], sizes = [8, 128], strides = [1, 1]} : vector<8x384xf32> to vector<8x128xf32>
    %411 = arith.addf %410, %314 : vector<8x128xf32>
    %412 = arith.mulf %400, %411 : vector<8x128xf32>
    %413 = arith.addf %409, %412 : vector<8x128xf32>
    %414 = math.tanh %413 : vector<8x128xf32>
    %cst_142 = arith.constant 1.000000e+00 : f32
    %415 = vector.broadcast %cst_142 : f32 to vector<8x128xf32>
    %416 = arith.subf %415, %408 : vector<8x128xf32>
    %417 = arith.mulf %416, %414 : vector<8x128xf32>
    %418 = arith.mulf %408, %384 : vector<8x128xf32>
    %419 = arith.addf %417, %418 : vector<8x128xf32>
    %420 = arith.index_cast %388 : i32 to index
    %c0_143 = arith.constant 0 : index
    %421 = vector.load %arg21[%420, %c0_143] : memref<64x128xf32, #tpu.memory_space<vmem>>, vector<8x128xf32>
    tpu.vector_store %arg21[%420, %c0_143], %419 {strides = array<i32>} : memref<64x128xf32, #tpu.memory_space<vmem>>, vector<8x128xf32>,
    %c3_i32_144 = arith.constant 3 : i32
    %c8_i32_145 = arith.constant 8 : i32
    %422 = arith.muli %c3_i32_144, %c8_i32_145 : i32
    %423 = tpu.assume_multiple %422, 8 : i32
    %424 = arith.index_cast %423 : i32 to index
    %c0_146 = arith.constant 0 : index
    %425 = vector.load %arg22[%424, %c0_146] : memref<64x384xf32, #tpu.memory_space<vmem>>, vector<8x384xf32>
    %c0_147 = arith.constant 0 : index
    %c0_148 = arith.constant 0 : index
    %426 = vector.load %arg10[%c0_147, %c0_148] : memref<128x384xf32, #tpu.memory_space<vmem>>, vector<128x384xf32>
    %cst_149 = arith.constant dense<0.000000e+00> : vector<8x384xf32>
    %427 = tpu.matmul %419, %426, %cst_149 {dimension_numbers = #tpu.dot_dimension_numbers<[1], [0], [0], [1], [0, 0, 1, 1], [], []>} : vector<8x128xf32>, vector<128x384xf32>, vector<8x384xf32> -> vector<8x384xf32>
    %428 = vector.extract_strided_slice %425 {offsets = [0, 0], sizes = [8, 128], strides = [1, 1]} : vector<8x384xf32> to vector<8x128xf32>
    %429 = vector.extract_strided_slice %427 {offsets = [0, 0], sizes = [8, 128], strides = [1, 1]} : vector<8x384xf32> to vector<8x128xf32>
    %430 = arith.addf %428, %429 : vector<8x128xf32>
    %431 = arith.negf %430 : vector<8x128xf32>
    %432 = math.exp %431 : vector<8x128xf32>
    %cst_150 = arith.constant 1.000000e+00 : f32
    %433 = vector.broadcast %cst_150 : f32 to vector<8x128xf32>
    %434 = arith.addf %433, %432 : vector<8x128xf32>
    %435 = arith.divf %433, %434 : vector<8x128xf32>
    %436 = vector.extract_strided_slice %425 {offsets = [0, 128], sizes = [8, 128], strides = [1, 1]} : vector<8x384xf32> to vector<8x128xf32>
    %437 = vector.extract_strided_slice %427 {offsets = [0, 128], sizes = [8, 128], strides = [1, 1]} : vector<8x384xf32> to vector<8x128xf32>
    %438 = arith.addf %436, %437 : vector<8x128xf32>
    %439 = arith.negf %438 : vector<8x128xf32>
    %440 = math.exp %439 : vector<8x128xf32>
    %cst_151 = arith.constant 1.000000e+00 : f32
    %441 = vector.broadcast %cst_151 : f32 to vector<8x128xf32>
    %442 = arith.addf %441, %440 : vector<8x128xf32>
    %443 = arith.divf %441, %442 : vector<8x128xf32>
    %444 = vector.extract_strided_slice %425 {offsets = [0, 256], sizes = [8, 128], strides = [1, 1]} : vector<8x384xf32> to vector<8x128xf32>
    %445 = vector.extract_strided_slice %427 {offsets = [0, 256], sizes = [8, 128], strides = [1, 1]} : vector<8x384xf32> to vector<8x128xf32>
    %446 = arith.addf %445, %314 : vector<8x128xf32>
    %447 = arith.mulf %435, %446 : vector<8x128xf32>
    %448 = arith.addf %444, %447 : vector<8x128xf32>
    %449 = math.tanh %448 : vector<8x128xf32>
    %cst_152 = arith.constant 1.000000e+00 : f32
    %450 = vector.broadcast %cst_152 : f32 to vector<8x128xf32>
    %451 = arith.subf %450, %443 : vector<8x128xf32>
    %452 = arith.mulf %451, %449 : vector<8x128xf32>
    %453 = arith.mulf %443, %419 : vector<8x128xf32>
    %454 = arith.addf %452, %453 : vector<8x128xf32>
    %455 = arith.index_cast %423 : i32 to index
    %c0_153 = arith.constant 0 : index
    %456 = vector.load %arg21[%455, %c0_153] : memref<64x128xf32, #tpu.memory_space<vmem>>, vector<8x128xf32>
    tpu.vector_store %arg21[%455, %c0_153], %454 {strides = array<i32>} : memref<64x128xf32, #tpu.memory_space<vmem>>, vector<8x128xf32>,
    %c4_i32_154 = arith.constant 4 : i32
    %c8_i32_155 = arith.constant 8 : i32
    %457 = arith.muli %c4_i32_154, %c8_i32_155 : i32
    %458 = tpu.assume_multiple %457, 8 : i32
    %459 = arith.index_cast %458 : i32 to index
    %c0_156 = arith.constant 0 : index
    %460 = vector.load %arg22[%459, %c0_156] : memref<64x384xf32, #tpu.memory_space<vmem>>, vector<8x384xf32>
    %c0_157 = arith.constant 0 : index
    %c0_158 = arith.constant 0 : index
    %461 = vector.load %arg10[%c0_157, %c0_158] : memref<128x384xf32, #tpu.memory_space<vmem>>, vector<128x384xf32>
    %cst_159 = arith.constant dense<0.000000e+00> : vector<8x384xf32>
    %462 = tpu.matmul %454, %461, %cst_159 {dimension_numbers = #tpu.dot_dimension_numbers<[1], [0], [0], [1], [0, 0, 1, 1], [], []>} : vector<8x128xf32>, vector<128x384xf32>, vector<8x384xf32> -> vector<8x384xf32>
    %463 = vector.extract_strided_slice %460 {offsets = [0, 0], sizes = [8, 128], strides = [1, 1]} : vector<8x384xf32> to vector<8x128xf32>
    %464 = vector.extract_strided_slice %462 {offsets = [0, 0], sizes = [8, 128], strides = [1, 1]} : vector<8x384xf32> to vector<8x128xf32>
    %465 = arith.addf %463, %464 : vector<8x128xf32>
    %466 = arith.negf %465 : vector<8x128xf32>
    %467 = math.exp %466 : vector<8x128xf32>
    %cst_160 = arith.constant 1.000000e+00 : f32
    %468 = vector.broadcast %cst_160 : f32 to vector<8x128xf32>
    %469 = arith.addf %468, %467 : vector<8x128xf32>
    %470 = arith.divf %468, %469 : vector<8x128xf32>
    %471 = vector.extract_strided_slice %460 {offsets = [0, 128], sizes = [8, 128], strides = [1, 1]} : vector<8x384xf32> to vector<8x128xf32>
    %472 = vector.extract_strided_slice %462 {offsets = [0, 128], sizes = [8, 128], strides = [1, 1]} : vector<8x384xf32> to vector<8x128xf32>
    %473 = arith.addf %471, %472 : vector<8x128xf32>
    %474 = arith.negf %473 : vector<8x128xf32>
    %475 = math.exp %474 : vector<8x128xf32>
    %cst_161 = arith.constant 1.000000e+00 : f32
    %476 = vector.broadcast %cst_161 : f32 to vector<8x128xf32>
    %477 = arith.addf %476, %475 : vector<8x128xf32>
    %478 = arith.divf %476, %477 : vector<8x128xf32>
    %479 = vector.extract_strided_slice %460 {offsets = [0, 256], sizes = [8, 128], strides = [1, 1]} : vector<8x384xf32> to vector<8x128xf32>
    %480 = vector.extract_strided_slice %462 {offsets = [0, 256], sizes = [8, 128], strides = [1, 1]} : vector<8x384xf32> to vector<8x128xf32>
    %481 = arith.addf %480, %314 : vector<8x128xf32>
    %482 = arith.mulf %470, %481 : vector<8x128xf32>
    %483 = arith.addf %479, %482 : vector<8x128xf32>
    %484 = math.tanh %483 : vector<8x128xf32>
    %cst_162 = arith.constant 1.000000e+00 : f32
    %485 = vector.broadcast %cst_162 : f32 to vector<8x128xf32>
    %486 = arith.subf %485, %478 : vector<8x128xf32>
    %487 = arith.mulf %486, %484 : vector<8x128xf32>
    %488 = arith.mulf %478, %454 : vector<8x128xf32>
    %489 = arith.addf %487, %488 : vector<8x128xf32>
    %490 = arith.index_cast %458 : i32 to index
    %c0_163 = arith.constant 0 : index
    %491 = vector.load %arg21[%490, %c0_163] : memref<64x128xf32, #tpu.memory_space<vmem>>, vector<8x128xf32>
    tpu.vector_store %arg21[%490, %c0_163], %489 {strides = array<i32>} : memref<64x128xf32, #tpu.memory_space<vmem>>, vector<8x128xf32>,
    %c5_i32_164 = arith.constant 5 : i32
    %c8_i32_165 = arith.constant 8 : i32
    %492 = arith.muli %c5_i32_164, %c8_i32_165 : i32
    %493 = tpu.assume_multiple %492, 8 : i32
    %494 = arith.index_cast %493 : i32 to index
    %c0_166 = arith.constant 0 : index
    %495 = vector.load %arg22[%494, %c0_166] : memref<64x384xf32, #tpu.memory_space<vmem>>, vector<8x384xf32>
    %c0_167 = arith.constant 0 : index
    %c0_168 = arith.constant 0 : index
    %496 = vector.load %arg10[%c0_167, %c0_168] : memref<128x384xf32, #tpu.memory_space<vmem>>, vector<128x384xf32>
    %cst_169 = arith.constant dense<0.000000e+00> : vector<8x384xf32>
    %497 = tpu.matmul %489, %496, %cst_169 {dimension_numbers = #tpu.dot_dimension_numbers<[1], [0], [0], [1], [0, 0, 1, 1], [], []>} : vector<8x128xf32>, vector<128x384xf32>, vector<8x384xf32> -> vector<8x384xf32>
    %498 = vector.extract_strided_slice %495 {offsets = [0, 0], sizes = [8, 128], strides = [1, 1]} : vector<8x384xf32> to vector<8x128xf32>
    %499 = vector.extract_strided_slice %497 {offsets = [0, 0], sizes = [8, 128], strides = [1, 1]} : vector<8x384xf32> to vector<8x128xf32>
    %500 = arith.addf %498, %499 : vector<8x128xf32>
    %501 = arith.negf %500 : vector<8x128xf32>
    %502 = math.exp %501 : vector<8x128xf32>
    %cst_170 = arith.constant 1.000000e+00 : f32
    %503 = vector.broadcast %cst_170 : f32 to vector<8x128xf32>
    %504 = arith.addf %503, %502 : vector<8x128xf32>
    %505 = arith.divf %503, %504 : vector<8x128xf32>
    %506 = vector.extract_strided_slice %495 {offsets = [0, 128], sizes = [8, 128], strides = [1, 1]} : vector<8x384xf32> to vector<8x128xf32>
    %507 = vector.extract_strided_slice %497 {offsets = [0, 128], sizes = [8, 128], strides = [1, 1]} : vector<8x384xf32> to vector<8x128xf32>
    %508 = arith.addf %506, %507 : vector<8x128xf32>
    %509 = arith.negf %508 : vector<8x128xf32>
    %510 = math.exp %509 : vector<8x128xf32>
    %cst_171 = arith.constant 1.000000e+00 : f32
    %511 = vector.broadcast %cst_171 : f32 to vector<8x128xf32>
    %512 = arith.addf %511, %510 : vector<8x128xf32>
    %513 = arith.divf %511, %512 : vector<8x128xf32>
    %514 = vector.extract_strided_slice %495 {offsets = [0, 256], sizes = [8, 128], strides = [1, 1]} : vector<8x384xf32> to vector<8x128xf32>
    %515 = vector.extract_strided_slice %497 {offsets = [0, 256], sizes = [8, 128], strides = [1, 1]} : vector<8x384xf32> to vector<8x128xf32>
    %516 = arith.addf %515, %314 : vector<8x128xf32>
    %517 = arith.mulf %505, %516 : vector<8x128xf32>
    %518 = arith.addf %514, %517 : vector<8x128xf32>
    %519 = math.tanh %518 : vector<8x128xf32>
    %cst_172 = arith.constant 1.000000e+00 : f32
    %520 = vector.broadcast %cst_172 : f32 to vector<8x128xf32>
    %521 = arith.subf %520, %513 : vector<8x128xf32>
    %522 = arith.mulf %521, %519 : vector<8x128xf32>
    %523 = arith.mulf %513, %489 : vector<8x128xf32>
    %524 = arith.addf %522, %523 : vector<8x128xf32>
    %525 = arith.index_cast %493 : i32 to index
    %c0_173 = arith.constant 0 : index
    %526 = vector.load %arg21[%525, %c0_173] : memref<64x128xf32, #tpu.memory_space<vmem>>, vector<8x128xf32>
    tpu.vector_store %arg21[%525, %c0_173], %524 {strides = array<i32>} : memref<64x128xf32, #tpu.memory_space<vmem>>, vector<8x128xf32>,
    %c6_i32_174 = arith.constant 6 : i32
    %c8_i32_175 = arith.constant 8 : i32
    %527 = arith.muli %c6_i32_174, %c8_i32_175 : i32
    %528 = tpu.assume_multiple %527, 8 : i32
    %529 = arith.index_cast %528 : i32 to index
    %c0_176 = arith.constant 0 : index
    %530 = vector.load %arg22[%529, %c0_176] : memref<64x384xf32, #tpu.memory_space<vmem>>, vector<8x384xf32>
    %c0_177 = arith.constant 0 : index
    %c0_178 = arith.constant 0 : index
    %531 = vector.load %arg10[%c0_177, %c0_178] : memref<128x384xf32, #tpu.memory_space<vmem>>, vector<128x384xf32>
    %cst_179 = arith.constant dense<0.000000e+00> : vector<8x384xf32>
    %532 = tpu.matmul %524, %531, %cst_179 {dimension_numbers = #tpu.dot_dimension_numbers<[1], [0], [0], [1], [0, 0, 1, 1], [], []>} : vector<8x128xf32>, vector<128x384xf32>, vector<8x384xf32> -> vector<8x384xf32>
    %533 = vector.extract_strided_slice %530 {offsets = [0, 0], sizes = [8, 128], strides = [1, 1]} : vector<8x384xf32> to vector<8x128xf32>
    %534 = vector.extract_strided_slice %532 {offsets = [0, 0], sizes = [8, 128], strides = [1, 1]} : vector<8x384xf32> to vector<8x128xf32>
    %535 = arith.addf %533, %534 : vector<8x128xf32>
    %536 = arith.negf %535 : vector<8x128xf32>
    %537 = math.exp %536 : vector<8x128xf32>
    %cst_180 = arith.constant 1.000000e+00 : f32
    %538 = vector.broadcast %cst_180 : f32 to vector<8x128xf32>
    %539 = arith.addf %538, %537 : vector<8x128xf32>
    %540 = arith.divf %538, %539 : vector<8x128xf32>
    %541 = vector.extract_strided_slice %530 {offsets = [0, 128], sizes = [8, 128], strides = [1, 1]} : vector<8x384xf32> to vector<8x128xf32>
    %542 = vector.extract_strided_slice %532 {offsets = [0, 128], sizes = [8, 128], strides = [1, 1]} : vector<8x384xf32> to vector<8x128xf32>
    %543 = arith.addf %541, %542 : vector<8x128xf32>
    %544 = arith.negf %543 : vector<8x128xf32>
    %545 = math.exp %544 : vector<8x128xf32>
    %cst_181 = arith.constant 1.000000e+00 : f32
    %546 = vector.broadcast %cst_181 : f32 to vector<8x128xf32>
    %547 = arith.addf %546, %545 : vector<8x128xf32>
    %548 = arith.divf %546, %547 : vector<8x128xf32>
    %549 = vector.extract_strided_slice %530 {offsets = [0, 256], sizes = [8, 128], strides = [1, 1]} : vector<8x384xf32> to vector<8x128xf32>
    %550 = vector.extract_strided_slice %532 {offsets = [0, 256], sizes = [8, 128], strides = [1, 1]} : vector<8x384xf32> to vector<8x128xf32>
    %551 = arith.addf %550, %314 : vector<8x128xf32>
    %552 = arith.mulf %540, %551 : vector<8x128xf32>
    %553 = arith.addf %549, %552 : vector<8x128xf32>
    %554 = math.tanh %553 : vector<8x128xf32>
    %cst_182 = arith.constant 1.000000e+00 : f32
    %555 = vector.broadcast %cst_182 : f32 to vector<8x128xf32>
    %556 = arith.subf %555, %548 : vector<8x128xf32>
    %557 = arith.mulf %556, %554 : vector<8x128xf32>
    %558 = arith.mulf %548, %524 : vector<8x128xf32>
    %559 = arith.addf %557, %558 : vector<8x128xf32>
    %560 = arith.index_cast %528 : i32 to index
    %c0_183 = arith.constant 0 : index
    %561 = vector.load %arg21[%560, %c0_183] : memref<64x128xf32, #tpu.memory_space<vmem>>, vector<8x128xf32>
    tpu.vector_store %arg21[%560, %c0_183], %559 {strides = array<i32>} : memref<64x128xf32, #tpu.memory_space<vmem>>, vector<8x128xf32>,
    %c7_i32_184 = arith.constant 7 : i32
    %c8_i32_185 = arith.constant 8 : i32
    %562 = arith.muli %c7_i32_184, %c8_i32_185 : i32
    %563 = tpu.assume_multiple %562, 8 : i32
    %564 = arith.index_cast %563 : i32 to index
    %c0_186 = arith.constant 0 : index
    %565 = vector.load %arg22[%564, %c0_186] : memref<64x384xf32, #tpu.memory_space<vmem>>, vector<8x384xf32>
    %c0_187 = arith.constant 0 : index
    %c0_188 = arith.constant 0 : index
    %566 = vector.load %arg10[%c0_187, %c0_188] : memref<128x384xf32, #tpu.memory_space<vmem>>, vector<128x384xf32>
    %cst_189 = arith.constant dense<0.000000e+00> : vector<8x384xf32>
    %567 = tpu.matmul %559, %566, %cst_189 {dimension_numbers = #tpu.dot_dimension_numbers<[1], [0], [0], [1], [0, 0, 1, 1], [], []>} : vector<8x128xf32>, vector<128x384xf32>, vector<8x384xf32> -> vector<8x384xf32>
    %568 = vector.extract_strided_slice %565 {offsets = [0, 0], sizes = [8, 128], strides = [1, 1]} : vector<8x384xf32> to vector<8x128xf32>
    %569 = vector.extract_strided_slice %567 {offsets = [0, 0], sizes = [8, 128], strides = [1, 1]} : vector<8x384xf32> to vector<8x128xf32>
    %570 = arith.addf %568, %569 : vector<8x128xf32>
    %571 = arith.negf %570 : vector<8x128xf32>
    %572 = math.exp %571 : vector<8x128xf32>
    %cst_190 = arith.constant 1.000000e+00 : f32
    %573 = vector.broadcast %cst_190 : f32 to vector<8x128xf32>
    %574 = arith.addf %573, %572 : vector<8x128xf32>
    %575 = arith.divf %573, %574 : vector<8x128xf32>
    %576 = vector.extract_strided_slice %565 {offsets = [0, 128], sizes = [8, 128], strides = [1, 1]} : vector<8x384xf32> to vector<8x128xf32>
    %577 = vector.extract_strided_slice %567 {offsets = [0, 128], sizes = [8, 128], strides = [1, 1]} : vector<8x384xf32> to vector<8x128xf32>
    %578 = arith.addf %576, %577 : vector<8x128xf32>
    %579 = arith.negf %578 : vector<8x128xf32>
    %580 = math.exp %579 : vector<8x128xf32>
    %cst_191 = arith.constant 1.000000e+00 : f32
    %581 = vector.broadcast %cst_191 : f32 to vector<8x128xf32>
    %582 = arith.addf %581, %580 : vector<8x128xf32>
    %583 = arith.divf %581, %582 : vector<8x128xf32>
    %584 = vector.extract_strided_slice %565 {offsets = [0, 256], sizes = [8, 128], strides = [1, 1]} : vector<8x384xf32> to vector<8x128xf32>
    %585 = vector.extract_strided_slice %567 {offsets = [0, 256], sizes = [8, 128], strides = [1, 1]} : vector<8x384xf32> to vector<8x128xf32>
    %586 = arith.addf %585, %314 : vector<8x128xf32>
    %587 = arith.mulf %575, %586 : vector<8x128xf32>
    %588 = arith.addf %584, %587 : vector<8x128xf32>
    %589 = math.tanh %588 : vector<8x128xf32>
    %cst_192 = arith.constant 1.000000e+00 : f32
    %590 = vector.broadcast %cst_192 : f32 to vector<8x128xf32>
    %591 = arith.subf %590, %583 : vector<8x128xf32>
    %592 = arith.mulf %591, %589 : vector<8x128xf32>
    %593 = arith.mulf %583, %559 : vector<8x128xf32>
    %594 = arith.addf %592, %593 : vector<8x128xf32>
    %595 = arith.index_cast %563 : i32 to index
    %c0_193 = arith.constant 0 : index
    %596 = vector.load %arg21[%595, %c0_193] : memref<64x128xf32, #tpu.memory_space<vmem>>, vector<8x128xf32>
    tpu.vector_store %arg21[%595, %c0_193], %594 {strides = array<i32>} : memref<64x128xf32, #tpu.memory_space<vmem>>, vector<8x128xf32>,
    %c8_i32_194 = arith.constant 8 : i32
    %c0_195 = arith.constant 0 : index
    %c1_196 = arith.constant 1 : index
    %c0_197 = arith.constant 0 : index
    %c0_198 = arith.constant 0 : index
    %597 = vector.load %arg18[%c0_195, %c1_196, %c0_197, %c0_198] : memref<1x2x8x128xf32, #tpu.memory_space<vmem>>, vector<1x1x8x128xf32>
    %598 = vector.shape_cast %597 : vector<1x1x8x128xf32> to vector<8x128xf32>
    %599 = vector.shape_cast %594 : vector<8x128xf32> to vector<1x1x8x128xf32>
    tpu.vector_store %arg18[%c0_195, %c1_196, %c0_197, %c0_198], %599 {strides = array<i32>} : memref<1x2x8x128xf32, #tpu.memory_space<vmem>>, vector<1x1x8x128xf32>,
    %c0_199 = arith.constant 0 : index
    %c0_200 = arith.constant 0 : index
    %600 = vector.load %arg21[%c0_199, %c0_200] : memref<64x128xf32, #tpu.memory_space<vmem>>, vector<64x128xf32>
    %c0_201 = arith.constant 0 : index
    %c0_202 = arith.constant 0 : index
    %601 = vector.load %arg13[%c0_201, %c0_202] : memref<128x16xf32, #tpu.memory_space<vmem>>, vector<128x16xf32>
    %cst_203 = arith.constant dense<0.000000e+00> : vector<64x16xf32>
    %602 = tpu.matmul %600, %601, %cst_203 {dimension_numbers = #tpu.dot_dimension_numbers<[1], [0], [0], [1], [0, 0, 1, 1], [], []>} : vector<64x128xf32>, vector<128x16xf32>, vector<64x16xf32> -> vector<64x16xf32>
    %c0_204 = arith.constant 0 : index
    %c0_205 = arith.constant 0 : index
    %603 = vector.load %arg14[%c0_204, %c0_205] : memref<1x16xf32, #tpu.memory_space<vmem>>, vector<1x16xf32>
    %604 = vector.broadcast %603 : vector<1x16xf32> to vector<64x16xf32>
    %605 = arith.addf %602, %604 : vector<64x16xf32>
    %cst_206 = arith.constant 0.000000e+00 : f32
    %606 = vector.broadcast %cst_206 : f32 to vector<64x16xf32>
    %607 = arith.maximumf %605, %606 : vector<64x16xf32>
    %c0_207 = arith.constant 0 : index
    %c0_208 = arith.constant 0 : index
    %608 = vector.load %arg15[%c0_207, %c0_208] : memref<16x4xf32, #tpu.memory_space<vmem>>, vector<16x4xf32>
    %cst_209 = arith.constant dense<0.000000e+00> : vector<64x4xf32>
    %609 = tpu.matmul %607, %608, %cst_209 {dimension_numbers = #tpu.dot_dimension_numbers<[1], [0], [0], [1], [0, 0, 1, 1], [], []>} : vector<64x16xf32>, vector<16x4xf32>, vector<64x4xf32> -> vector<64x4xf32>
    %c0_210 = arith.constant 0 : index
    %c0_211 = arith.constant 0 : index
    %610 = vector.load %arg16[%c0_210, %c0_211] : memref<1x4xf32, #tpu.memory_space<vmem>>, vector<1x4xf32>
    %611 = vector.broadcast %610 : vector<1x4xf32> to vector<64x4xf32>
    %612 = arith.addf %609, %611 : vector<64x4xf32>
    %613 = arith.negf %612 : vector<64x4xf32>
    %614 = math.exp %613 : vector<64x4xf32>
    %cst_212 = arith.constant 1.000000e+00 : f32
    %615 = vector.broadcast %cst_212 : f32 to vector<64x4xf32>
    %616 = arith.addf %615, %614 : vector<64x4xf32>
    %617 = arith.divf %615, %616 : vector<64x4xf32>
    %c0_213 = arith.constant 0 : index
    %c0_214 = arith.constant 0 : index
    %c0_215 = arith.constant 0 : index
    %618 = vector.load %arg17[%c0_213, %c0_214, %c0_215] : memref<1x64x4xf32, #tpu.memory_space<vmem>>, vector<1x64x4xf32>
    %619 = vector.shape_cast %618 : vector<1x64x4xf32> to vector<64x4xf32>
    %620 = vector.shape_cast %617 : vector<64x4xf32> to vector<1x64x4xf32>
    tpu.vector_store %arg17[%c0_213, %c0_214, %c0_215], %620 {strides = array<i32>} : memref<1x64x4xf32, #tpu.memory_space<vmem>>, vector<1x64x4xf32>,
    return
  }
  func.func @transform_0(%arg0: i32) -> (i32, i32, i32) {
    %c0_i32 = arith.constant 0 : i32
    %c0_i32_0 = arith.constant 0 : i32
    %c0_i32_1 = arith.constant 0 : i32
    return %arg0, %c0_i32, %c0_i32_0 : i32, i32, i32
  }
  func.func @transform_1(%arg0: i32) -> (i32, i32, i32, i32) {
    %c0_i32 = arith.constant 0 : i32
    %c0_i32_0 = arith.constant 0 : i32
    %c0_i32_1 = arith.constant 0 : i32
    %c0_i32_2 = arith.constant 0 : i32
    return %arg0, %c0_i32, %c0_i32_0, %c0_i32_1 : i32, i32, i32, i32
  }
  func.func @transform_2(%arg0: i32) -> (i32, i32) {
    %c0_i32 = arith.constant 0 : i32
    %c0_i32_0 = arith.constant 0 : i32
    %c0_i32_1 = arith.constant 0 : i32
    return %c0_i32, %c0_i32_0 : i32, i32
  }
  func.func @transform_3(%arg0: i32) -> (i32, i32) {
    %c0_i32 = arith.constant 0 : i32
    %c0_i32_0 = arith.constant 0 : i32
    %c0_i32_1 = arith.constant 0 : i32
    return %c0_i32, %c0_i32_0 : i32, i32
  }
  func.func @transform_4(%arg0: i32) -> (i32, i32) {
    %c0_i32 = arith.constant 0 : i32
    %c0_i32_0 = arith.constant 0 : i32
    %c0_i32_1 = arith.constant 0 : i32
    return %c0_i32, %c0_i32_0 : i32, i32
  }
  func.func @transform_5(%arg0: i32) -> (i32, i32) {
    %c0_i32 = arith.constant 0 : i32
    %c0_i32_0 = arith.constant 0 : i32
    %c0_i32_1 = arith.constant 0 : i32
    return %c0_i32, %c0_i32_0 : i32, i32
  }
  func.func @transform_6(%arg0: i32) -> (i32, i32) {
    %c0_i32 = arith.constant 0 : i32
    %c0_i32_0 = arith.constant 0 : i32
    %c0_i32_1 = arith.constant 0 : i32
    return %c0_i32, %c0_i32_0 : i32, i32
  }
  func.func @transform_7(%arg0: i32) -> (i32, i32) {
    %c0_i32 = arith.constant 0 : i32
    %c0_i32_0 = arith.constant 0 : i32
    %c0_i32_1 = arith.constant 0 : i32
    return %c0_i32, %c0_i32_0 : i32, i32
  }
  func.func @transform_8(%arg0: i32) -> (i32, i32) {
    %c0_i32 = arith.constant 0 : i32
    %c0_i32_0 = arith.constant 0 : i32
    %c0_i32_1 = arith.constant 0 : i32
    return %c0_i32, %c0_i32_0 : i32, i32
  }
  func.func @transform_9(%arg0: i32) -> (i32, i32) {
    %c0_i32 = arith.constant 0 : i32
    %c0_i32_0 = arith.constant 0 : i32
    %c0_i32_1 = arith.constant 0 : i32
    return %c0_i32, %c0_i32_0 : i32, i32
  }
  func.func @transform_10(%arg0: i32) -> (i32, i32) {
    %c0_i32 = arith.constant 0 : i32
    %c0_i32_0 = arith.constant 0 : i32
    %c0_i32_1 = arith.constant 0 : i32
    return %c0_i32, %c0_i32_0 : i32, i32
  }
  func.func @transform_11(%arg0: i32) -> (i32, i32) {
    %c0_i32 = arith.constant 0 : i32
    %c0_i32_0 = arith.constant 0 : i32
    %c0_i32_1 = arith.constant 0 : i32
    return %c0_i32, %c0_i32_0 : i32, i32
  }
  func.func @transform_12(%arg0: i32) -> (i32, i32) {
    %c0_i32 = arith.constant 0 : i32
    %c0_i32_0 = arith.constant 0 : i32
    %c0_i32_1 = arith.constant 0 : i32
    return %c0_i32, %c0_i32_0 : i32, i32
  }
  func.func @transform_13(%arg0: i32) -> (i32, i32) {
    %c0_i32 = arith.constant 0 : i32
    %c0_i32_0 = arith.constant 0 : i32
    %c0_i32_1 = arith.constant 0 : i32
    return %c0_i32, %c0_i32_0 : i32, i32
  }
  func.func @transform_14(%arg0: i32) -> (i32, i32) {
    %c0_i32 = arith.constant 0 : i32
    %c0_i32_0 = arith.constant 0 : i32
    %c0_i32_1 = arith.constant 0 : i32
    return %c0_i32, %c0_i32_0 : i32, i32
  }
  func.func @transform_15(%arg0: i32) -> (i32, i32) {
    %c0_i32 = arith.constant 0 : i32
    %c0_i32_0 = arith.constant 0 : i32
    %c0_i32_1 = arith.constant 0 : i32
    return %c0_i32, %c0_i32_0 : i32, i32
  }
  func.func @transform_16(%arg0: i32) -> (i32, i32, i32) {
    %c0_i32 = arith.constant 0 : i32
    %c0_i32_0 = arith.constant 0 : i32
    %c0_i32_1 = arith.constant 0 : i32
    return %arg0, %c0_i32, %c0_i32_0 : i32, i32, i32
  }
  func.func @transform_17(%arg0: i32) -> (i32, i32, i32, i32) {
    %c0_i32 = arith.constant 0 : i32
    %c0_i32_0 = arith.constant 0 : i32
    %c0_i32_1 = arith.constant 0 : i32
    %c0_i32_2 = arith.constant 0 : i32
    return %arg0, %c0_i32, %c0_i32_0, %c0_i32_1 : i32, i32, i32, i32
  }
}

</mosaic_0001>

<bundles_post_ra>
// kernel: edge_level_rnn_forward.1
= control target key start
LH: loop header
LB: loop body
LE: loop exit
PB: predicated region body
PF: predicated region fallthrough
CT: control target
= control target key end

     0   :  { %vm96_vm0 = vcmask 1043456   ;;  %vm71_vm1 = vcmask 31744   ;;  %v8863_v15 = vmov 0.0   ;;  %vm213_vm2 = vcmask 130048   ;;  %s8843_s2 = inlined_call_operand.vmem [shape: f32[4,16], index: 2, kind: input, shape index: {}]   ;;  %s8844_s0 = inlined_call_operand.vmem [shape: f32[1,64,4], index: 0, kind: input, shape index: {}]   ;;  %s8845_s4 = inlined_call_operand.vmem [shape: f32[16,384], index: 4, kind: input, shape index: {}]   ;;  %s8846_s5 = inlined_call_operand.vmem [shape: f32[128,384], index: 5, kind: input, shape index: {}]   ;;  %s8847_s3 = inlined_call_operand.vmem [shape: f32[1,16], index: 3, kind: input, shape index: {}]   ;;  %s8848_s1 = inlined_call_operand.vmem [shape: f32[1,2,8,128], index: 1, kind: input, shape index: {}]   ;;  %s8849_s6 = inlined_call_operand.vmem [shape: f32[1,384], index: 6, kind: input, shape index: {}]   ;;  %s8850_s7 = inlined_call_operand.vmem [shape: f32[1,128], index: 7, kind: input, shape index: {}]   ;;  %s8851_s8 = inlined_call_operand.vmem [shape: f32[128,384], index: 8, kind: input, shape index: {}]   ;;  %s8852_s9 = inlined_call_operand.vmem [shape: f32[128,384], index: 9, kind: input, shape index: {}]   ;;  %s8853_s17 = inlined_call_operand.vmem [shape: f32[1,2,8,128], index: 17, kind: output, shape index: {1}]   ;;  %s8854_s10 = inlined_call_operand.vmem [shape: f32[1,384], index: 10, kind: input, shape index: {}]   ;;  %s8855_s11 = inlined_call_operand.vmem [shape: f32[1,128], index: 11, kind: input, shape index: {}]   ;;  %s8856_s12 = inlined_call_operand.vmem [shape: f32[128,16], index: 12, kind: input, shape index: {}]   ;;  %s8857_s14 = inlined_call_operand.vmem [shape: f32[16,4], index: 14, kind: input, shape index: {}]   ;;  %s8858_s13 = inlined_call_operand.vmem [shape: f32[1,16], index: 13, kind: input, shape index: {}]   ;;  %s8859_s15 = inlined_call_operand.vmem [shape: f32[1,4], index: 15, kind: input, shape index: {}]   ;;  %s8860_s16 = inlined_call_operand.vmem [shape: f32[1,64,4], index: 16, kind: output, shape index: {0}]  }
   0x1   :  { %8922 = sst [smem:[#allocation35_spill]] %s8843_s2  ;;  %v234_v9 = vld [vmem:[%s8845_s4 + $0x20] sm:$0xff]  ;;  %v233_v10 = vld [vmem:[%s8845_s4 + $0x18] sm:$0xff]  ;;  %v235_v11 = vld [vmem:[%s8845_s4 + $0x28] sm:$0xff]  ;;  %341 = vmatprep.mubr.f32.mxu1 %v8863_v15  ;;  %vm6005_vm3 = vmmov 0  }
   0x2   :  { %8923 = sst [smem:[#allocation36_spill]] %s8844_s0  ;;  %305 = vmatprep.subr.mxu1 %v234_v9  ;;  %v231_v12 = vld [vmem:[%s8845_s4 + $0x8] sm:$0xff]  ;;  %v230_v13 = vld [vmem:[%s8845_s4] sm:$0xff]  ;;  %v232_v14 = vld [vmem:[%s8845_s4 + $0x10] sm:$0xff] }
   0x3   :  { %s8924_s26 = sld [smem:[#allocation35_spill]]  ;;  %306 = vmatpush1.msra.mxu1 %v233_v10  ;;  %v6153_v16 = vld [vmem:[%s8846_s5 + $0x170] sm:$0xff]  ;;  %v4685_v17 = vld [vmem:[%s8847_s3] ss:$0 sm:$0xff]  ;;  %v6168_v37 = vld [vmem:[%s8846_s5 + $0x168] sm:$0xff] }
   0x4   :  { %s8925_s29 = sld [smem:[#allocation36_spill]]  ;;  %307 = vmatprep.subr.mxu1 %v231_v12  ;;  %v6173_v40 = vld [vmem:[%s8846_s5 + $0x158] sm:$0xff]  ;;  %v6181_v43 = vld [vmem:[%s8846_s5 + $0x150] sm:$0xff]  ;;  %v6193_v47 = vld [vmem:[%s8846_s5 + $0x140] sm:$0xff] }
   0x5   :  { %308 = vmatpush1.msra.mxu1 %v230_v13  ;;  %v6186_v46 = vld [vmem:[%s8846_s5 + $0x178] sm:$0xff]  ;;  %v6207_v52 = vld [vmem:[%s8846_s5 + $0x128] sm:$0xff]  ;;  %v6216_v53 = vld [vmem:[%s8846_s5 + $0x120] sm:$0xff] }
   0x6   :  { %581 = vmatprep.subr.mxu1 %v6153_v16  ;;  %v6201_v48 = vld [vmem:[%s8846_s5 + $0x138] sm:$0xff]  ;;  %v6223_v54 = vld [vmem:[%s8846_s5 + $0x110] sm:$0xff]  ;;  %v6230_v55 = vld [vmem:[%s8846_s5 + $0x108] sm:$0xff] }
   0x7   :  { %v6237_v56 = vld [vmem:[%s8846_s5 + $0xf8] sm:$0xff]  ;;  %v6244_v58 = vld [vmem:[%s8846_s5 + $0xf0] sm:$0xff]  ;;  %v6251_v60 = vld [vmem:[%s8846_s5 + $0xe0] sm:$0xff] }
   0x8   :  { %v6258_v61 = vld [vmem:[%s8846_s5 + $0xd8] sm:$0xff]  ;;  %v6265_v62 = vld [vmem:[%s8846_s5 + $0xc8] sm:$0xff]  ;;  %v6333_v10 = vld [vmem:[%s8846_s5 + $0x60] sm:$0xff] }
   0x9   :  { %v63_v0 = vld [vmem:[%s8924_s26] sm:$0xf]  ;;  %v6325_v9 = vld [vmem:[%s8846_s5 + $0x68] sm:$0xff]  ;;  %v6345_v12 = vld [vmem:[%s8846_s5 + $0x50] sm:$0xff] }
   0xa   :  { %v55_v1 = vld [vmem:[%s8925_s29] sm:$0xff]  ;;  %v56_v2 = vld [vmem:[%s8925_s29 + $0x8] sm:$0xff]  ;;  %5114 = vmatprep.subr.msk.mxu0 %vm96_vm0, %v63_v0  ;;  %v57_v3 = vld [vmem:[%s8925_s29 + $0x10] sm:$0xff] }
   0xb   :  { %5116 = vmatprep.mubr.msk.f32.mxu0 %vm71_vm1, %v55_v1  ;;  %5115 = vmatpush3.msk.msra.mxu0 %vm96_vm0, %v63_v0  ;;  %v58_v4 = vld [vmem:[%s8925_s29 + $0x18] sm:$0xff]  ;;  %v59_v5 = vld [vmem:[%s8925_s29 + $0x20] sm:$0xff]  ;;  %v60_v6 = vld [vmem:[%s8925_s29 + $0x28] sm:$0xff] }
   0xc   :  { %5117 = vmatmul.mubr.msk.f32.vlgmr.msra.gmra.mxu0 %vm71_vm1, %v56_v2  ;;  %v61_v7 = vld [vmem:[%s8925_s29 + $0x30] sm:$0xff]  ;;  %v62_v8 = vld [vmem:[%s8925_s29 + $0x38] sm:$0xff]  ;;  %5128 = vmatprep.subr.mxu0 %v235_v11  ;;  %v6272_v0 = vld [vmem:[%s8846_s5 + $0xc0] sm:$0xff] }
   0xd   :  { %5119 = vmatprep.mubr.msk.f32.mxu0 %vm71_vm1, %v57_v3  ;;  %5129 = vmatpush3.msra.mxu0 %v235_v11  ;;  %v6279_v2 = vld [vmem:[%s8846_s5 + $0xb0] sm:$0xff]  ;;  %v6285_v3 = vld [vmem:[%s8846_s5 + $0xa8] sm:$0xff] }
   0xe   :  { %5130 = vmatprep.subr.mxu0 %v232_v14  ;;  %v6338_v11 = vld [vmem:[%s8846_s5 + $0x148] sm:$0xff] }
   0xf   :  { %5131 = vmatpush3.msra.mxu0 %v232_v14  ;;  %v6351_v13 = vld [vmem:[%s8846_s5 + $0x48] sm:$0xff]  ;;  %v6358_v14 = vld [vmem:[%s8846_s5 + $0x38] sm:$0xff] }
  0x10   :  { %5120 = vmatmul.mubr.msk.f32.gmra.mxu0 %vm71_vm1, %v58_v4  ;;  %5144 = vmatprep.subr.mxu0 %v8863_v15  ;;  %v6292_v4 = vld [vmem:[%s8846_s5 + $0x98] sm:$0xff] }
  0x11   :  { %5122 = vmatprep.mubr.msk.f32.mxu0 %vm71_vm1, %v59_v5  ;;  %v6300_v5 = vld [vmem:[%s8846_s5 + $0x90] sm:$0xff] }
  0x14   :  { %5123 = vmatmul.mubr.msk.f32.gmra.mxu0 %vm71_vm1, %v60_v6  ;;  %v6305_v6 = vld [vmem:[%s8846_s5 + $0x160] sm:$0xff] }
  0x15   :  { %5125 = vmatprep.mubr.msk.f32.mxu0 %vm71_vm1, %v61_v7  ;;  %v6312_v7 = vld [vmem:[%s8846_s5 + $0x80] sm:$0xff] }
  0x18   :  { %5126 = vmatmul.mubr.msk.f32.gmra.mxu0 %vm71_vm1, %v62_v8  ;;  %v6318_v8 = vld [vmem:[%s8846_s5 + $0x78] sm:$0xff] }
  0xcc   :  { %v5118_v18 = vpop.f32.mrf.mxu0 }
  0xcd   :  { %v172_v19 = vadd.f32 %v5118_v18, %v4685_v17  ;;  %v6371_v18 = vld [vmem:[%s8846_s5 + $0x130] sm:$0xff] }
  0xce   :  { %v166_v20 = vpop.f32.mrf.mxu0 }
  0xcf   :  { %v206_v21 = vmax.f32 %v172_v19, 0.0  ;;  %v167_v22 = vadd.f32 %v4685_v17, %v166_v20  ;;  %v6378_v19 = vld [vmem:[%s8846_s5 + $0x20] sm:$0xff]  ;;  %v6384_v20 = vld [vmem:[%s8846_s5 + $0x18] sm:$0xff] }
  0xd0   :  { %v5121_v23 = vpop.f32.mrf.mxu0  ;;  %8926 = vst [vmem:[#allocation6_spill] sm:$0xff] %v6378_v19  ;;  %8927 = vst [vmem:[#allocation7_spill] sm:$0xff] %v6384_v20 }
  0xd1   :  { %215 = vst.msk [vmem:[#allocation2 + $0x8] sm:$0xff] %vm213_vm2, %v206_v21  ;;  %v205_v24 = vmax.f32 %v167_v22, 0.0  ;;  %v182_v25 = vadd.f32 %v5121_v23, %v4685_v17  ;;  %v6391_v21 = vld [vmem:[%s8846_s5 + $0x8] sm:$0xff]  ;;  %v6399_v22 = vld [vmem:[%s8846_s5] sm:$0xff]  ;;  %v6404_v23 = vld [vmem:[%s8846_s5 + $0x118] sm:$0xff] }
  0xd2   :  { %v176_v26 = vpop.f32.mrf.mxu0  ;;  %8928 = vst [vmem:[#allocation8_spill] sm:$0xff] %v6391_v21  ;;  %8929 = vst [vmem:[#allocation9_spill] sm:$0xff] %v6399_v22 }
  0xd3   :  { %214 = vst.msk [vmem:[#allocation2] sm:$0xff] %vm213_vm2, %v205_v24  ;;  %v208_v27 = vmax.f32 %v182_v25, 0.0  ;;  %v177_v28 = vadd.f32 %v4685_v17, %v176_v26  ;;  %v6411_v24 = vld [vmem:[%s8848_s1] sm:$0xff]  ;;  %v6427_v26 = vld [vmem:[%s8846_s5 + $0xe8] sm:$0xff] }
  0xd4   :  { %v5124_v29 = vpop.f32.mrf.mxu0  ;;  %v6418_v25 = vld [vmem:[%s8846_s5 + $0x100] sm:$0xff] }
  0xd5   :  { %217 = vst.msk [vmem:[#allocation2 + $0x18] sm:$0xff] %vm213_vm2, %v208_v27  ;;  %v207_v30 = vmax.f32 %v177_v28, 0.0  ;;  %v192_v31 = vadd.f32 %v5124_v29, %v4685_v17  ;;  %v6436_v27 = vld [vmem:[%s8846_s5 + $0xd0] sm:$0xff]  ;;  %v6445_v28 = vld [vmem:[%s8846_s5 + $0xb8] sm:$0xff]  ;;  %v6454_v29 = vld [vmem:[%s8846_s5 + $0xa0] sm:$0xff] }
  0xd6   :  { %v186_v32 = vpop.f32.mrf.mxu0 }
  0xd7   :  { %216 = vst.msk [vmem:[#allocation2 + $0x10] sm:$0xff] %vm213_vm2, %v207_v30  ;;  %v210_v33 = vmax.f32 %v192_v31, 0.0  ;;  %v187_v34 = vadd.f32 %v4685_v17, %v186_v32  ;;  %v6463_v30 = vld [vmem:[%s8846_s5 + $0x88] sm:$0xff]  ;;  %v6472_v31 = vld [vmem:[%s8846_s5 + $0x70] sm:$0xff]  ;;  %v6481_v32 = vld [vmem:[%s8846_s5 + $0x58] sm:$0xff] }
  0xd8   :  { %v5127_v35 = vpop.f32.mrf.mxu0  ;;  %v223_v42 = vld [vmem:[#allocation2 + $0x8] sm:$0xff] }
  0xd9   :  { %219 = vst.msk [vmem:[#allocation2 + $0x28] sm:$0xff] %vm213_vm2, %v210_v33  ;;  %v209_v36 = vmax.f32 %v187_v34, 0.0  ;;  %v202_v38 = vadd.f32 %v5127_v35, %v4685_v17  ;;  %v6490_v33 = vld [vmem:[%s8846_s5 + $0x40] sm:$0xff]  ;;  %v6499_v34 = vld [vmem:[%s8846_s5 + $0x28] sm:$0xff]  ;;  %v6508_v35 = vld [vmem:[%s8846_s5 + $0x10] sm:$0xff] }
  0xda   :  { %v222_v39 = vld [vmem:[#allocation2] sm:$0xff]  ;;  %v196_v41 = vpop.f32.mrf.mxu0  ;;  %8930 = vst [vmem:[#allocation10_spill] sm:$0xff] %v6499_v34  ;;  %8931 = vst [vmem:[#allocation11_spill] sm:$0xff] %v6508_v35 }
  0xdb   :  { %218 = vst.msk [vmem:[#allocation2 + $0x20] sm:$0xff] %vm213_vm2, %v209_v36  ;;  %4695 = vmatmul.mubr.msk.f32.vlgmr.msra.gmra.mxu1 %vm213_vm2, %v222_v39  ;;  %5132 = vmatprep.mubr.msk.f32.mxu0 %vm213_vm2, %v222_v39  ;;  %v212_v44 = vmax.f32 %v202_v38, 0.0  ;;  %v197_v45 = vadd.f32 %v4685_v17, %v196_v41  ;;  %v6366_v17 = vld [vmem:[%s8846_s5 + $0x30] sm:$0xff]  ;;  %v236_v39 = vld [vmem:[%s8849_s6] sm:$0x7] }
  0xdc   :  { %582 = vmatpush1.msra.mxu1 %v6168_v37  ;;  %5133 = vmatmul.mubr.msk.f32.vlgmr.msra.gmra.mxu0 %vm213_vm2, %v223_v42  ;;  %v225_v51 = vld [vmem:[#allocation2 + $0x18] sm:$0xff] }
  0xdd   :  { %583 = vmatprep.subr.mxu1 %v6173_v40  ;;  %347 = vmatprep.mubr.f32.mxu1 %v8863_v15  ;;  %221 = vst.msk [vmem:[#allocation2 + $0x38] sm:$0xff] %vm213_vm2, %v212_v44  ;;  %v211_v49 = vmax.f32 %v197_v45, 0.0 }
  0xde   :  { %584 = vmatpush1.msra.mxu1 %v6181_v43  ;;  %v224_v50 = vld [vmem:[#allocation2 + $0x10] sm:$0xff]  ;;  %5145 = vmatpush3.msra.mxu0 %v6186_v46 }
  0xdf   :  { %585 = vmatprep.subr.mxu1 %v6193_v47  ;;  %4696 = vmatmul.mubr.msk.f32.gmra.mxu1 %vm213_vm2, %v223_v42  ;;  %220 = vst.msk [vmem:[#allocation2 + $0x30] sm:$0xff] %vm213_vm2, %v211_v49 }
  0xe0   :  { %5135 = vmatprep.mubr.msk.f32.mxu0 %vm213_vm2, %v224_v50  ;;  %586 = vmatpush1.msra.mxu1 %v6201_v48  ;;  %v227_v59 = vld [vmem:[#allocation2 + $0x28] sm:$0xff] }
  0xe1   :  { %5136 = vmatmul.mubr.msk.f32.gmra.mxu0 %vm213_vm2, %v225_v51  ;;  %587 = vmatprep.subr.mxu1 %v6207_v52 }
  0xe2   :  { %588 = vmatpush1.msra.mxu1 %v6216_v53  ;;  %353 = vmatprep.mubr.f32.mxu1 %v8863_v15  ;;  %v226_v57 = vld [vmem:[#allocation2 + $0x20] sm:$0xff] }
  0xe3   :  { %589 = vmatprep.subr.mxu1 %v6223_v54  ;;  %4697 = vmatmul.mubr.msk.f32.gmra.mxu1 %vm213_vm2, %v224_v50 }
  0xe4   :  { %590 = vmatpush1.msra.mxu1 %v6230_v55  ;;  %359 = vmatprep.mubr.f32.mxu1 %v8863_v15  ;;  %v229_v1 = vld [vmem:[#allocation2 + $0x38] sm:$0xff] }
  0xe5   :  { %591 = vmatprep.subr.mxu1 %v6237_v56  ;;  %5138 = vmatprep.mubr.msk.f32.mxu0 %vm213_vm2, %v226_v57 }
  0xe6   :  { %592 = vmatpush1.msra.mxu1 %v6244_v58  ;;  %5139 = vmatmul.mubr.msk.f32.gmra.mxu0 %vm213_vm2, %v227_v59  ;;  %v228_v63 = vld [vmem:[#allocation2 + $0x30] sm:$0xff] }
  0xe7   :  { %593 = vmatprep.subr.mxu1 %v6251_v60  ;;  %4698 = vmatmul.mubr.msk.f32.gmra.mxu1 %vm213_vm2, %v225_v51 }
  0xe8   :  { %594 = vmatpush1.msra.mxu1 %v6258_v61  ;;  %365 = vmatprep.mubr.f32.mxu1 %v8863_v15 }
  0xe9   :  { %595 = vmatprep.subr.mxu1 %v6265_v62  ;;  %5141 = vmatprep.mubr.msk.f32.mxu0 %vm213_vm2, %v228_v63 }
  0xea   :  { %596 = vmatpush1.msra.mxu1 %v6272_v0  ;;  %5142 = vmatmul.mubr.msk.f32.gmra.mxu0 %vm213_vm2, %v229_v1 }
  0xeb   :  { %597 = vmatprep.subr.mxu1 %v6279_v2  ;;  %4699 = vmatmul.mubr.msk.f32.gmra.mxu1 %vm213_vm2, %v226_v57 }
  0xec   :  { %598 = vmatpush1.msra.mxu1 %v6285_v3  ;;  %371 = vmatprep.mubr.f32.mxu1 %v8863_v15 }
  0xed   :  { %599 = vmatprep.subr.mxu1 %v6292_v4  ;;  %5146 = vmatprep.subr.mxu0 %v8863_v15 }
  0xee   :  { %600 = vmatpush1.msra.mxu1 %v6300_v5  ;;  %5147 = vmatpush3.msra.mxu0 %v6305_v6 }
  0xef   :  { %601 = vmatprep.subr.mxu1 %v6312_v7  ;;  %4700 = vmatmul.mubr.msk.f32.gmra.mxu1 %vm213_vm2, %v227_v59 }
  0xf0   :  { %602 = vmatpush1.msra.mxu1 %v6318_v8  ;;  %377 = vmatprep.mubr.f32.mxu1 %v8863_v15 }
  0xf1   :  { %603 = vmatprep.subr.mxu1 %v6325_v9  ;;  %5148 = vmatprep.subr.mxu0 %v8863_v15 }
  0xf2   :  { %604 = vmatpush1.msra.mxu1 %v6333_v10  ;;  %5149 = vmatpush3.msra.mxu0 %v6338_v11 }
  0xf3   :  { %605 = vmatprep.subr.mxu1 %v6345_v12  ;;  %4701 = vmatmul.mubr.msk.f32.gmra.mxu1 %vm213_vm2, %v228_v63 }
  0xf4   :  { %606 = vmatpush1.msra.mxu1 %v6351_v13  ;;  %383 = vmatprep.mubr.f32.mxu1 %v8863_v15 }
  0xf5   :  { %607 = vmatprep.subr.mxu1 %v6358_v14  ;;  %5150 = vmatprep.subr.mxu0 %v8863_v15 }
  0xf6   :  { %608 = vmatpush1.msra.mxu1 %v6366_v17  ;;  %5151 = vmatpush3.msra.mxu0 %v6371_v18 }
  0xf7   :  { %609 = vmatprep.subr.mxu1 %v6378_v19  ;;  %4702 = vmatmul.mubr.msk.f32.gmra.mxu1 %vm213_vm2, %v229_v1 }
  0xf8   :  { %610 = vmatpush1.msra.mxu1 %v6384_v20  ;;  %645 = vmatprep.mubr.f32.mxu1 %v8863_v15 }
  0xf9   :  { %611 = vmatprep.subr.mxu1 %v6391_v21  ;;  %5152 = vmatprep.subr.mxu0 %v8863_v15 }
  0xfa   :  { %612 = vmatpush1.msra.mxu1 %v6399_v22  ;;  %5153 = vmatpush3.msra.mxu0 %v6404_v23 }
  0xfb   :  { %646 = vmatmul.mubr.f32.vlgmr.msra.gmra.mxu1 %v6411_v24  ;;  %5154 = vmatprep.subr.mxu0 %v8863_v15 }
  0xfc   :  { %5155 = vmatpush3.msra.mxu0 %v6418_v25  ;;  %5176 = vmatprep.mubr.msk.f32.mxu0 %vm6005_vm3, %v8863_v15 }
  0xfd   :  { %5156 = vmatprep.subr.mxu0 %v8863_v15  ;;  %799 = vmatprep.subr.mxu1 %v6153_v16 }
  0xfe   :  { %5157 = vmatpush3.msra.mxu0 %v6427_v26  ;;  %800 = vmatpush1.msra.mxu1 %v6168_v37 }
  0xff   :  { %5158 = vmatprep.subr.mxu0 %v8863_v15  ;;  %801 = vmatprep.subr.mxu1 %v6173_v40 }
 0x100   :  { %5159 = vmatpush3.msra.mxu0 %v6436_v27  ;;  %802 = vmatpush1.msra.mxu1 %v6181_v43 }
 0x101   :  { %5160 = vmatprep.subr.mxu0 %v8863_v15  ;;  %803 = vmatprep.subr.mxu1 %v6193_v47 }
 0x102   :  { %5161 = vmatpush3.msra.mxu0 %v6445_v28  ;;  %804 = vmatpush1.msra.mxu1 %v6201_v48 }
 0x103   :  { %5162 = vmatprep.subr.mxu0 %v8863_v15  ;;  %805 = vmatprep.subr.mxu1 %v6207_v52 }
 0x104   :  { %5163 = vmatpush3.msra.mxu0 %v6454_v29  ;;  %806 = vmatpush1.msra.mxu1 %v6216_v53 }
 0x105   :  { %5164 = vmatprep.subr.mxu0 %v8863_v15  ;;  %807 = vmatprep.subr.mxu1 %v6223_v54 }
 0x106   :  { %5165 = vmatpush3.msra.mxu0 %v6463_v30  ;;  %808 = vmatpush1.msra.mxu1 %v6230_v55 }
 0x107   :  { %5166 = vmatprep.subr.mxu0 %v8863_v15  ;;  %809 = vmatprep.subr.mxu1 %v6237_v56 }
 0x108   :  { %5167 = vmatpush3.msra.mxu0 %v6472_v31  ;;  %810 = vmatpush1.msra.mxu1 %v6244_v58 }
 0x109   :  { %5168 = vmatprep.subr.mxu0 %v8863_v15  ;;  %811 = vmatprep.subr.mxu1 %v6251_v60 }
 0x10a   :  { %5169 = vmatpush3.msra.mxu0 %v6481_v32  ;;  %812 = vmatpush1.msra.mxu1 %v6258_v61 }
 0x10b   :  { %5170 = vmatprep.subr.mxu0 %v8863_v15  ;;  %813 = vmatprep.subr.mxu1 %v6265_v62 }
 0x10c   :  { %5171 = vmatpush3.msra.mxu0 %v6490_v33  ;;  %814 = vmatpush1.msra.mxu1 %v6272_v0 }
 0x10d   :  { %5172 = vmatprep.subr.mxu0 %v8863_v15  ;;  %815 = vmatprep.subr.mxu1 %v6279_v2 }
 0x10e   :  { %5173 = vmatpush3.msra.mxu0 %v6499_v34  ;;  %816 = vmatpush1.msra.mxu1 %v6285_v3 }
 0x10f   :  { %5174 = vmatprep.subr.mxu0 %v8863_v15  ;;  %817 = vmatprep.subr.mxu1 %v6292_v4 }
 0x110   :  { %5175 = vmatpush3.msra.mxu0 %v6508_v35  ;;  %818 = vmatpush1.msra.mxu1 %v6300_v5 }
 0x111   :  { %5177 = vmatmul.mubr.f32.vlgmr.msra.gmra.mxu0 %v6411_v24  ;;  %5179 = vmatprep.subr.mxu0 %v8863_v15 }
 0x112   :  { %5180 = vmatpush3.msra.mxu0 %v6186_v46  ;;  %819 = vmatprep.subr.mxu1 %v6312_v7 }
 0x113   :  { %5181 = vmatprep.subr.mxu0 %v8863_v15  ;;  %820 = vmatpush1.msra.mxu1 %v6318_v8 }
 0x114   :  { %5182 = vmatpush3.msra.mxu0 %v6305_v6  ;;  %821 = vmatprep.subr.mxu1 %v6325_v9 }
 0x115   :  { %5183 = vmatprep.subr.mxu0 %v8863_v15  ;;  %822 = vmatpush1.msra.mxu1 %v6333_v10 }
 0x116   :  { %5184 = vmatpush3.msra.mxu0 %v6338_v11  ;;  %823 = vmatprep.subr.mxu1 %v6345_v12 }
 0x117   :  { %5185 = vmatprep.subr.mxu0 %v8863_v15  ;;  %824 = vmatpush1.msra.mxu1 %v6351_v13 }
 0x118   :  { %5186 = vmatpush3.msra.mxu0 %v6371_v18  ;;  %825 = vmatprep.subr.mxu1 %v6358_v14 }
 0x119   :  { %5187 = vmatprep.subr.mxu0 %v8863_v15  ;;  %826 = vmatpush1.msra.mxu1 %v6366_v17 }
 0x11a   :  { %5188 = vmatpush3.msra.mxu0 %v6404_v23  ;;  %827 = vmatprep.subr.mxu1 %v6378_v19 }
 0x11b   :  { %5189 = vmatprep.subr.mxu0 %v8863_v15  ;;  %828 = vmatpush1.msra.mxu1 %v6384_v20 }
 0x11c   :  { %5190 = vmatpush3.msra.mxu0 %v6418_v25  ;;  %829 = vmatprep.subr.mxu1 %v6391_v21 }
 0x11d   :  { %5191 = vmatprep.subr.mxu0 %v8863_v15  ;;  %830 = vmatpush1.msra.mxu1 %v6399_v22 }
 0x11e   :  { %5192 = vmatpush3.msra.mxu0 %v6427_v26  ;;  %863 = vmatprep.mubr.f32.mxu1 %v8863_v15 }
 0x11f   :  { %5193 = vmatprep.subr.mxu0 %v8863_v15  ;;  %5211 = vmatprep.mubr.msk.f32.mxu0 %vm6005_vm3, %v8863_v15 }
 0x120   :  { %5194 = vmatpush3.msra.mxu0 %v6436_v27  ;;  %1018 = vmatprep.subr.mxu1 %v6153_v16  ;;  %v238_v16 = vlaneseq }
 0x121   :  { %5195 = vmatprep.subr.mxu0 %v8863_v15 }
 0x122   :  { %5196 = vmatpush3.msra.mxu0 %v6445_v28  ;;  %v6567_v36 = vshrl.u32 %v238_v16, 7 }
 0x123   :  { %5197 = vmatprep.subr.mxu0 %v8863_v15 }
 0x124   :  { %5198 = vmatpush3.msra.mxu0 %v6454_v29  ;;  %8932 = vst [vmem:[#allocation12_spill] sm:$0xff] %v6567_v36  ;;  %v8862_v38 = vsub.s32 2, %v6567_v36  ;;  %v8869_v42 = vsub.s32 0, %v6567_v36  ;;  %v8873_v49 = vsub.s32 1, %v6567_v36 }
 0x125   :  { %5199 = vmatprep.subr.mxu0 %v8863_v15 }
 0x126   :  { %5200 = vmatpush3.msra.mxu0 %v6463_v30  ;;  %v6575_v41 = vrot.slane %v236_v39, %v8862_v38  ;;  %v241_v57 = vrot.slane %v236_v39, %v8869_v42  ;;  %v245_v1 = vrot.slane %v236_v39, %v8873_v49 }
 0x127   :  { %5201 = vmatprep.subr.mxu0 %v8863_v15 }
 0x128   :  { %5202 = vmatpush3.msra.mxu0 %v6472_v31 }
 0x129   :  { %5203 = vmatprep.subr.mxu0 %v8863_v15 }
 0x12a   :  { %5204 = vmatpush3.msra.mxu0 %v6481_v32 }
 0x12b   :  { %5205 = vmatprep.subr.mxu0 %v8863_v15 }
 0x12c   :  { %5206 = vmatpush3.msra.mxu0 %v6490_v33 }
 0x12d   :  { %5207 = vmatprep.subr.mxu0 %v8863_v15 }
 0x12e   :  { %5208 = vmatpush3.msra.mxu0 %v6499_v34 }
 0x12f   :  { %5209 = vmatprep.subr.mxu0 %v8863_v15 }
 0x130   :  { %5210 = vmatpush3.msra.mxu0 %v6508_v35 }
 0x131   :  { %5214 = vmatprep.subr.mxu0 %v8863_v15 }
 0x19b   :  { %v343_v44 = vpop.f32.mrf.mxu1 }
 0x19c   :  { %v5134_v45 = vpop.f32.mrf.mxu0 }
 0x19d   :  { %v6580_v50 = vadd.f32 %v5134_v45, %v6575_v41  ;;  %v345_v51 = vpop.f32.mrf.mxu1 }
 0x19e   :  { %v6584_v59 = vpop.f32.mrf.mxu0  ;;  %v346_v19 = vadd.f32 %v345_v51, %v245_v1 }
 0x19f   :  { %8933 = vst [vmem:[#allocation13_spill] sm:$0xff] %v6580_v50  ;;  %v349_v63 = vpop.f32.mrf.mxu1 }
 0x1a0   :  { %v6588_v16 = vadd.f32 %v349_v63, %v241_v57 }
 0x1a1   :  { %v5137_v38 = vpop.f32.mrf.mxu0  ;;  %v351_v15 = vpop.f32.mrf.mxu1 }
 0x1a2   :  { %8934 = vst [vmem:[#allocation14_spill] sm:$0xff] %v6588_v16  ;;  %v6591_v35 = vadd.f32 %v5137_v38, %v6575_v41  ;;  %v6593_v22 = vadd.f32 %v351_v15, %v245_v1 }
 0x1a3   :  { %v466_v45 = vpop.f32.mrf.mxu0  ;;  %v355_v50 = vpop.f32.mrf.mxu1 }
 0x1a4   :  { %8935 = vst [vmem:[#allocation15_spill] sm:$0xff] %v6591_v35  ;;  %8936 = vst [vmem:[#allocation16_spill] sm:$0xff] %v6593_v22  ;;  %v6596_v21 = vadd.f32 %v466_v45, %v6575_v41  ;;  %v6598_v42 = vadd.f32 %v355_v50, %v241_v57 }
 0x1a5   :  { %v357_v34 = vpop.f32.mrf.mxu1 }
 0x1a6   :  { %8937 = vst [vmem:[#allocation17_spill] sm:$0xff] %v6596_v21  ;;  %8938 = vst [vmem:[#allocation18_spill] sm:$0xff] %v6598_v42  ;;  %v6600_v20 = vadd.f32 %v357_v34, %v245_v1  ;;  %v5140_v39 = vpop.f32.mrf.mxu0 }
 0x1a7   :  { %v361_v63 = vpop.f32.mrf.mxu1  ;;  %v6603_v49 = vadd.f32 %v5140_v39, %v6575_v41 }
 0x1a8   :  { %8939 = vst [vmem:[#allocation19_spill] sm:$0xff] %v6600_v20  ;;  %v6605_v36 = vadd.f32 %v361_v63, %v241_v57  ;;  %v476_v38 = vpop.f32.mrf.mxu0 }
 0x1a9   :  { %8940 = vst [vmem:[#allocation20_spill] sm:$0xff] %v6603_v49  ;;  %v363_v15 = vpop.f32.mrf.mxu1  ;;  %v6608_v35 = vadd.f32 %v476_v38, %v6575_v41 }
 0x1aa   :  { %8941 = vst [vmem:[#allocation21_spill] sm:$0xff] %v6605_v36  ;;  %v6610_v22 = vadd.f32 %v363_v15, %v245_v1  ;;  %v5143_v45 = vpop.f32.mrf.mxu0 }
 0x1ab   :  { %8942 = vst [vmem:[#allocation22_spill] sm:$0xff] %v6608_v35  ;;  %v367_v50 = vpop.f32.mrf.mxu1  ;;  %v6613_v21 = vadd.f32 %v5143_v45, %v6575_v41 }
 0x1ac   :  { %8943 = vst [vmem:[#allocation23_spill] sm:$0xff] %v6610_v22  ;;  %v6615_v34 = vadd.f32 %v367_v50, %v241_v57  ;;  %v486_v20 = vpop.f32.mrf.mxu0 }
 0x1ad   :  { %8944 = vst [vmem:[#allocation24_spill] sm:$0xff] %v6613_v21  ;;  %v369_v42 = vpop.f32.mrf.mxu1  ;;  %v6618_v39 = vadd.f32 %v486_v20, %v6575_v41  ;;  %v344_v20 = vadd.f32 %v343_v44, %v241_v57  ;;  %v6637_v44 = vld [vmem:[%s8850_s7] ss:$0 sm:$0xff] }
 0x1ae   :  { %8945 = vst [vmem:[#allocation25_spill] sm:$0xff] %v6615_v34  ;;  %v6620_v63 = vadd.f32 %v369_v42, %v245_v1 }
 0x1af   :  { %8946 = vst [vmem:[#allocation26_spill] sm:$0xff] %v6618_v39  ;;  %v373_v49 = vpop.f32.mrf.mxu1 }
 0x1b0   :  { %8947 = vst [vmem:[#allocation27_spill] sm:$0xff] %v6620_v63  ;;  %v6622_v36 = vadd.f32 %v373_v49, %v241_v57 }
 0x1b1   :  { %v375_v38 = vpop.f32.mrf.mxu1 }
 0x1b2   :  { %8948 = vst [vmem:[#allocation28_spill] sm:$0xff] %v6622_v36  ;;  %v6624_v15 = vadd.f32 %v375_v38, %v245_v1 }
 0x1b3   :  { %v379_v35 = vpop.f32.mrf.mxu1 }
 0x1b4   :  { %8949 = vst [vmem:[#allocation29_spill] sm:$0xff] %v6624_v15  ;;  %v6626_v22 = vadd.f32 %v379_v35, %v241_v57 }
 0x1b5   :  { %v381_v45 = vpop.f32.mrf.mxu1 }
 0x1b6   :  { %8950 = vst [vmem:[#allocation30_spill] sm:$0xff] %v6626_v22  ;;  %v6628_v21 = vadd.f32 %v381_v45, %v245_v1 }
 0x1b7   :  { %v385_v50 = vpop.f32.mrf.mxu1 }
 0x1b8   :  { %8951 = vst [vmem:[#allocation31_spill] sm:$0xff] %v6628_v21  ;;  %v6630_v34 = vadd.f32 %v385_v50, %v241_v57 }
 0x1b9   :  { %v387_v16 = vpop.f32.mrf.mxu1 }
 0x1ba   :  { %8952 = vst [vmem:[#allocation32_spill] sm:$0xff] %v6630_v34  ;;  %v6632_v39 = vadd.f32 %v387_v16, %v245_v1 }
 0x1bb   :  { %v647_v42 = vpop.f32.mrf.mxu1 }
 0x1bc   :  { %8953 = vst [vmem:[#allocation33_spill] sm:$0xff] %v6632_v39  ;;  %v722_v63 = vadd.f32 %v647_v42, %v344_v20 }
 0x1bd   :  { %v649_v36 = vpop.f32.mrf.mxu1 }
 0x1be   :  { %v4712_v49 = vmul.f32 -1.442695, %v722_v63  ;;  %v729_v38 = vadd.f32 %v649_v36, %v346_v19  ;;  %v457_v19 = vadd.f32 %v6584_v59, %v6575_v41  ;;  %v8955_v41 = vmov 0.0   ;;  %v8957_v59 = vld [vmem:[#allocation7_spill] sm:$0xff] }
 0x1c0   :  { %5810 = vpow2.f32 %v4712_v49  ;;  %v4713_v15 = vmul.f32 -1.442695, %v729_v38  ;;  %v8958_v49 = vld [vmem:[#allocation10_spill] sm:$0xff]  ;;  %v8959_v38 = vld [vmem:[#allocation8_spill] sm:$0xff] }
 0x1c2   :  { %5812 = vpow2.f32 %v4713_v15 }
 0x1cd   :  { %v5811_v35 = vpop.eup %5810 }
 0x1ce   :  { %v726_v22 = vadd.f32 1.0, %v5811_v35  ;;  %v8960_v35 = vld [vmem:[#allocation9_spill] sm:$0xff] }
 0x1cf   :  { %v5813_v50 = vpop.eup %5812 }
 0x1d0   :  { %5814 = vrcp.f32 %v726_v22  ;;  %v733_v57 = vadd.f32 1.0, %v5813_v50  ;;  %v8962_v50 = vld [vmem:[#allocation14_spill] sm:$0xff] }
 0x1d1   :  { %v718_v45 = vpop.f32.mrf.mxu0 }
 0x1d2   :  { %v736_v16 = vadd.f32 %v6637_v44, %v718_v45  ;;  %5816 = vrcp.f32 %v733_v57 }
 0x1d3   :  { %v5178_v21 = vpop.f32.mrf.mxu0 }
 0x1dd   :  { %v5815_v63 = vpop.eup %5814 }
 0x1de   :  { %v737_v36 = vmul.f32 %v5815_v63, %v736_v16 }
 0x1df   :  { %v5817_v22 = vpop.eup %5816 }
 0x1e0   :  { %v738_v51 = vadd.f32 %v737_v36, %v457_v19  ;;  %v740_v1 = vsub.f32 1.0, %v5817_v22  ;;  %v742_v20 = vmul.f32 %v5817_v22, %v6411_v24  ;;  %v8956_v24 = vld [vmem:[#allocation6_spill] sm:$0xff]  ;;  %v8963_v36 = vld [vmem:[#allocation16_spill] sm:$0xff] }
 0x1e2   :  { %5818 = vtanh.f32 %v738_v51 }
 0x1ef   :  { %v5819_v21 = vpop.eup %5818 }
 0x1f0   :  { %v741_v15 = vmul.f32 %v5819_v21, %v740_v1 }
 0x1f2   :  { %v6643_v42 = vadd.f32 %v742_v20, %v741_v15 }
 0x1f4   :  { %8954 = vst [vmem:[#allocation34_spill] sm:$0xff] %v6643_v42  ;;  %864 = vmatmul.mubr.f32.vlgmr.msra.gmra.mxu1 %v6643_v42  ;;  %5212 = vmatmul.mubr.f32.vlgmr.msra.gmra.mxu0 %v6643_v42 }
 0x1f5   :  { %1019 = vmatpush1.msra.mxu1 %v6168_v37  ;;  %5215 = vmatpush3.msra.mxu0 %v6186_v46 }
 0x1f6   :  { %1020 = vmatprep.subr.mxu1 %v6173_v40  ;;  %5216 = vmatprep.subr.mxu0 %v8955_v41 }
 0x1f7   :  { %1021 = vmatpush1.msra.mxu1 %v6181_v43  ;;  %5217 = vmatpush3.msra.mxu0 %v6305_v6 }
 0x1f8   :  { %1022 = vmatprep.subr.mxu1 %v6193_v47  ;;  %5218 = vmatprep.subr.mxu0 %v8955_v41 }
 0x1f9   :  { %1023 = vmatpush1.msra.mxu1 %v6201_v48  ;;  %5219 = vmatpush3.msra.mxu0 %v6338_v11 }
 0x1fa   :  { %1024 = vmatprep.subr.mxu1 %v6207_v52  ;;  %5220 = vmatprep.subr.mxu0 %v8955_v41 }
 0x1fb   :  { %1025 = vmatpush1.msra.mxu1 %v6216_v53  ;;  %5221 = vmatpush3.msra.mxu0 %v6371_v18 }
 0x1fc   :  { %1026 = vmatprep.subr.mxu1 %v6223_v54  ;;  %5222 = vmatprep.subr.mxu0 %v8955_v41 }
 0x1fd   :  { %1027 = vmatpush1.msra.mxu1 %v6230_v55  ;;  %5223 = vmatpush3.msra.mxu0 %v6404_v23 }
 0x1fe   :  { %1028 = vmatprep.subr.mxu1 %v6237_v56  ;;  %5224 = vmatprep.subr.mxu0 %v8955_v41 }
 0x1ff   :  { %1029 = vmatpush1.msra.mxu1 %v6244_v58  ;;  %5225 = vmatpush3.msra.mxu0 %v6418_v25 }
 0x200   :  { %1030 = vmatprep.subr.mxu1 %v6251_v60  ;;  %5226 = vmatprep.subr.mxu0 %v8955_v41 }
 0x201   :  { %1031 = vmatpush1.msra.mxu1 %v6258_v61  ;;  %5227 = vmatpush3.msra.mxu0 %v6427_v26 }
 0x202   :  { %1032 = vmatprep.subr.mxu1 %v6265_v62  ;;  %5228 = vmatprep.subr.mxu0 %v8955_v41 }
 0x203   :  { %1033 = vmatpush1.msra.mxu1 %v6272_v0  ;;  %5229 = vmatpush3.msra.mxu0 %v6436_v27 }
 0x204   :  { %1034 = vmatprep.subr.mxu1 %v6279_v2  ;;  %5230 = vmatprep.subr.mxu0 %v8955_v41 }
 0x205   :  { %1035 = vmatpush1.msra.mxu1 %v6285_v3  ;;  %5231 = vmatpush3.msra.mxu0 %v6445_v28 }
 0x206   :  { %1036 = vmatprep.subr.mxu1 %v6292_v4  ;;  %5232 = vmatprep.subr.mxu0 %v8955_v41 }
 0x207   :  { %1037 = vmatpush1.msra.mxu1 %v6300_v5  ;;  %5233 = vmatpush3.msra.mxu0 %v6454_v29 }
 0x208   :  { %1038 = vmatprep.subr.mxu1 %v6312_v7  ;;  %5234 = vmatprep.subr.mxu0 %v8955_v41 }
 0x209   :  { %1039 = vmatpush1.msra.mxu1 %v6318_v8  ;;  %5235 = vmatpush3.msra.mxu0 %v6463_v30 }
 0x20a   :  { %1040 = vmatprep.subr.mxu1 %v6325_v9  ;;  %5236 = vmatprep.subr.mxu0 %v8955_v41 }
 0x20b   :  { %1041 = vmatpush1.msra.mxu1 %v6333_v10  ;;  %5237 = vmatpush3.msra.mxu0 %v6472_v31 }
 0x20c   :  { %1042 = vmatprep.subr.mxu1 %v6345_v12  ;;  %5238 = vmatprep.subr.mxu0 %v8955_v41 }
 0x20d   :  { %1043 = vmatpush1.msra.mxu1 %v6351_v13  ;;  %5239 = vmatpush3.msra.mxu0 %v6481_v32 }
 0x20e   :  { %1044 = vmatprep.subr.mxu1 %v6358_v14  ;;  %5240 = vmatprep.subr.mxu0 %v8955_v41  ;;  %v8961_v14 = vld [vmem:[#allocation11_spill] sm:$0xff] }
 0x20f   :  { %1045 = vmatpush1.msra.mxu1 %v6366_v17  ;;  %5241 = vmatpush3.msra.mxu0 %v6490_v33 }
 0x210   :  { %1046 = vmatprep.subr.mxu1 %v8956_v24  ;;  %5242 = vmatprep.subr.mxu0 %v8955_v41 }
 0x211   :  { %1047 = vmatpush1.msra.mxu1 %v8957_v59  ;;  %5243 = vmatpush3.msra.mxu0 %v8958_v49 }
 0x212   :  { %1048 = vmatprep.subr.mxu1 %v8959_v38  ;;  %5244 = vmatprep.subr.mxu0 %v8955_v41 }
 0x213   :  { %1049 = vmatpush1.msra.mxu1 %v8960_v35  ;;  %1082 = vmatprep.mubr.f32.mxu1 %v8955_v41  ;;  %v8964_v35 = vld [vmem:[#allocation13_spill] sm:$0xff] }
 0x214   :  { %5245 = vmatpush3.msra.mxu0 %v8961_v14  ;;  %5246 = vmatprep.mubr.msk.f32.mxu0 %vm6005_vm3, %v8955_v41 }
 0x215   :  { %5249 = vmatprep.subr.mxu0 %v8955_v41 }
 0x2b4   :  { %v865_v17 = vpop.f32.mrf.mxu1  ;;  %v936_v45 = vpop.f32.mrf.mxu0 }
 0x2b5   :  { %v940_v57 = vadd.f32 %v865_v17, %v8962_v50  ;;  %v954_v24 = vadd.f32 %v6637_v44, %v936_v45  ;;  %v6897_v45 = vld [vmem:[%s8846_s5 + $0x120] sm:$0xff] }
 0x2b6   :  { %v5213_v16 = vpop.f32.mrf.mxu0  ;;  %v867_v19 = vpop.f32.mrf.mxu1 }
 0x2b7   :  { %v4714_v63 = vmul.f32 -1.442695, %v940_v57  ;;  %v947_v51 = vadd.f32 %v867_v19, %v8963_v36 }
 0x2b9   :  { %5820 = vpow2.f32 %v4714_v63  ;;  %v4715_v22 = vmul.f32 -1.442695, %v947_v51  ;;  %v6902_v51 = vld [vmem:[%s8846_s5 + $0x130] sm:$0xff] }
 0x2bb   :  { %5822 = vpow2.f32 %v4715_v22  ;;  %v6909_v22 = vld [vmem:[%s8846_s5 + $0x110] sm:$0xff] }
 0x2c6   :  { %v5821_v1 = vpop.eup %5820 }
 0x2c7   :  { %v944_v21 = vadd.f32 1.0, %v5821_v1  ;;  %v6916_v1 = vld [vmem:[%s8846_s5 + $0x108] sm:$0xff] }
 0x2c8   :  { %v5823_v15 = vpop.eup %5822 }
 0x2c9   :  { %5824 = vrcp.f32 %v944_v21  ;;  %v951_v20 = vadd.f32 1.0, %v5823_v15  ;;  %v6921_v21 = vld [vmem:[%s8846_s5 + $0x118] sm:$0xff] }
 0x2ca   :  { %v6928_v15 = vld [vmem:[%s8846_s5 + $0xf8] sm:$0xff] }
 0x2cb   :  { %5826 = vrcp.f32 %v951_v20  ;;  %v6935_v20 = vld [vmem:[%s8846_s5 + $0xf0] sm:$0xff] }
 0x2d6   :  { %v5825_v59 = vpop.eup %5824 }
 0x2d7   :  { %v955_v38 = vmul.f32 %v5825_v59, %v954_v24  ;;  %v6940_v24 = vld [vmem:[%s8846_s5 + $0x100] sm:$0xff] }
 0x2d8   :  { %v5827_v50 = vpop.eup %5826  ;;  %v6947_v59 = vld [vmem:[%s8846_s5 + $0xe0] sm:$0xff] }
 0x2d9   :  { %v956_v17 = vadd.f32 %v955_v38, %v8964_v35  ;;  %v958_v57 = vsub.f32 1.0, %v5827_v50  ;;  %v960_v19 = vmul.f32 %v5827_v50, %v6643_v42  ;;  %v6954_v38 = vld [vmem:[%s8846_s5 + $0xd8] sm:$0xff]  ;;  %v6959_v35 = vld [vmem:[%s8846_s5 + $0xe8] sm:$0xff]  ;;  %v6971_v50 = vld [vmem:[%s8846_s5 + $0xc0] sm:$0xff] }
 0x2db   :  { %5828 = vtanh.f32 %v956_v17  ;;  %v6966_v17 = vld [vmem:[%s8846_s5 + $0xc8] sm:$0xff] }
 0x2e8   :  { %v5829_v16 = vpop.eup %5828 }
 0x2e9   :  { %v959_v63 = vmul.f32 %v5829_v16, %v958_v57  ;;  %v6976_v57 = vld [vmem:[%s8846_s5 + $0xd0] sm:$0xff] }
 0x2ea   :  { %v6983_v16 = vld [vmem:[%s8846_s5 + $0xb0] sm:$0xff] }
 0x2eb   :  { %v6718_v36 = vadd.f32 %v960_v19, %v959_v63  ;;  %v6988_v63 = vld [vmem:[%s8846_s5 + $0xa8] sm:$0xff]  ;;  %v6993_v19 = vld [vmem:[%s8846_s5 + $0xb8] sm:$0xff] }
 0x2ed   :  { %8965 = vst [vmem:[#allocation6_spill] sm:$0xff] %v6718_v36  ;;  %1083 = vmatmul.mubr.f32.vlgmr.msra.gmra.mxu1 %v6718_v36  ;;  %5247 = vmatmul.mubr.f32.vlgmr.msra.gmra.mxu0 %v6718_v36 }
 0x2ee   :  { %5250 = vmatpush3.msra.mxu0 %v6186_v46  ;;  %1301 = vmatprep.mubr.f32.mxu1 %v8955_v41  ;;  %v6760_v46 = vld [vmem:[%s8846_s5 + $0x170] sm:$0xff] }
 0x2ef   :  { %5251 = vmatprep.subr.mxu0 %v8955_v41  ;;  %5281 = vmatprep.mubr.msk.f32.mxu0 %vm6005_vm3, %v8955_v41  ;;  %8966 = vst [vmem:[#allocation7_spill] sm:$0xff] %v6760_v46 }
 0x2f0   :  { %5252 = vmatpush3.msra.mxu0 %v6305_v6  ;;  %1237 = vmatprep.subr.mxu1 %v6760_v46 }
 0x2f1   :  { %5253 = vmatprep.subr.mxu0 %v8955_v41  ;;  %1238 = vmatpush1.msra.mxu1 %v6168_v37  ;;  %v6789_v37 = vld [vmem:[%s8846_s5 + $0x38] sm:$0xff] }
 0x2f2   :  { %5254 = vmatpush3.msra.mxu0 %v6338_v11  ;;  %1239 = vmatprep.subr.mxu1 %v6173_v40  ;;  %v6795_v40 = vld [vmem:[%s8846_s5 + $0x30] sm:$0xff] }
 0x2f3   :  { %5255 = vmatprep.subr.mxu0 %v8955_v41  ;;  %1240 = vmatpush1.msra.mxu1 %v6181_v43  ;;  %v6801_v43 = vld [vmem:[%s8846_s5 + $0x20] sm:$0xff] }
 0x2f4   :  { %5256 = vmatpush3.msra.mxu0 %v6371_v18  ;;  %1241 = vmatprep.subr.mxu1 %v6193_v47  ;;  %v6807_v47 = vld [vmem:[%s8846_s5 + $0x18] sm:$0xff] }
 0x2f5   :  { %5257 = vmatprep.subr.mxu0 %v8955_v41  ;;  %1242 = vmatpush1.msra.mxu1 %v6201_v48  ;;  %v6813_v48 = vld [vmem:[%s8846_s5 + $0x8] sm:$0xff] }
 0x2f6   :  { %5258 = vmatpush3.msra.mxu0 %v6404_v23  ;;  %1243 = vmatprep.subr.mxu1 %v6207_v52  ;;  %8967 = vst [vmem:[#allocation10_spill] sm:$0xff] %v6813_v48  ;;  %v6819_v52 = vld [vmem:[%s8846_s5] sm:$0xff] }
 0x2f7   :  { %5259 = vmatprep.subr.mxu0 %v8955_v41  ;;  %1244 = vmatpush1.msra.mxu1 %v6216_v53  ;;  %8968 = vst [vmem:[#allocation8_spill] sm:$0xff] %v6819_v52 }
 0x2f8   :  { %5260 = vmatpush3.msra.mxu0 %v6418_v25  ;;  %1245 = vmatprep.subr.mxu1 %v6223_v54 }
 0x2f9   :  { %5261 = vmatprep.subr.mxu0 %v8955_v41  ;;  %1246 = vmatpush1.msra.mxu1 %v6230_v55  ;;  %v8969_v55 = vld [vmem:[#allocation18_spill] sm:$0xff] }
 0x2fa   :  { %5262 = vmatpush3.msra.mxu0 %v6427_v26  ;;  %1247 = vmatprep.subr.mxu1 %v6237_v56 }
 0x2fb   :  { %5263 = vmatprep.subr.mxu0 %v8955_v41  ;;  %1248 = vmatpush1.msra.mxu1 %v6244_v58 }
 0x2fc   :  { %5264 = vmatpush3.msra.mxu0 %v6436_v27  ;;  %1249 = vmatprep.subr.mxu1 %v6251_v60  ;;  %v6840_v27 = vld [vmem:[%s8846_s5 + $0x168] sm:$0xff] }
 0x2fd   :  { %5265 = vmatprep.subr.mxu0 %v8955_v41  ;;  %1250 = vmatpush1.msra.mxu1 %v6258_v61 }
 0x2fe   :  { %5266 = vmatpush3.msra.mxu0 %v6445_v28  ;;  %1251 = vmatprep.subr.mxu1 %v6265_v62  ;;  %v8970_v62 = vld [vmem:[#allocation19_spill] sm:$0xff]  ;;  %v6845_v28 = vld [vmem:[%s8846_s5 + $0x178] sm:$0xff] }
 0x2ff   :  { %5267 = vmatprep.subr.mxu0 %v8955_v41  ;;  %1252 = vmatpush1.msra.mxu1 %v6272_v0 }
 0x300   :  { %5268 = vmatpush3.msra.mxu0 %v6454_v29  ;;  %1253 = vmatprep.subr.mxu1 %v6279_v2  ;;  %v6852_v29 = vld [vmem:[%s8846_s5 + $0x158] sm:$0xff] }
 0x301   :  { %5269 = vmatprep.subr.mxu0 %v8955_v41  ;;  %1254 = vmatpush1.msra.mxu1 %v6285_v3 }
 0x302   :  { %5270 = vmatpush3.msra.mxu0 %v6463_v30  ;;  %1255 = vmatprep.subr.mxu1 %v6292_v4  ;;  %v6859_v30 = vld [vmem:[%s8846_s5 + $0x150] sm:$0xff] }
 0x303   :  { %5271 = vmatprep.subr.mxu0 %v8955_v41  ;;  %1256 = vmatpush1.msra.mxu1 %v6300_v5 }
 0x304   :  { %5272 = vmatpush3.msra.mxu0 %v6472_v31  ;;  %1257 = vmatprep.subr.mxu1 %v6312_v7  ;;  %v6864_v31 = vld [vmem:[%s8846_s5 + $0x160] sm:$0xff] }
 0x305   :  { %5273 = vmatprep.subr.mxu0 %v8955_v41  ;;  %1258 = vmatpush1.msra.mxu1 %v6318_v8 }
 0x306   :  { %5274 = vmatpush3.msra.mxu0 %v6481_v32  ;;  %1259 = vmatprep.subr.mxu1 %v6325_v9  ;;  %v6871_v32 = vld [vmem:[%s8846_s5 + $0x140] sm:$0xff] }
 0x307   :  { %5275 = vmatprep.subr.mxu0 %v8955_v41  ;;  %1260 = vmatpush1.msra.mxu1 %v6333_v10  ;;  %v8971_v10 = vld [vmem:[#allocation17_spill] sm:$0xff] }
 0x308   :  { %5276 = vmatpush3.msra.mxu0 %v6490_v33  ;;  %1261 = vmatprep.subr.mxu1 %v6345_v12  ;;  %v6878_v33 = vld [vmem:[%s8846_s5 + $0x138] sm:$0xff] }
 0x309   :  { %5277 = vmatprep.subr.mxu0 %v8955_v41  ;;  %1262 = vmatpush1.msra.mxu1 %v6351_v13 }
 0x30a   :  { %5278 = vmatpush3.msra.mxu0 %v8958_v49  ;;  %1263 = vmatprep.subr.mxu1 %v6789_v37  ;;  %v6883_v49 = vld [vmem:[%s8846_s5 + $0x148] sm:$0xff] }
 0x30b   :  { %5279 = vmatprep.subr.mxu0 %v8955_v41  ;;  %1264 = vmatpush1.msra.mxu1 %v6795_v40 }
 0x30c   :  { %5280 = vmatpush3.msra.mxu0 %v8961_v14  ;;  %1265 = vmatprep.subr.mxu1 %v6801_v43  ;;  %v6890_v14 = vld [vmem:[%s8846_s5 + $0x128] sm:$0xff] }
 0x30d   :  { %5284 = vmatprep.subr.mxu0 %v8955_v41  ;;  %1266 = vmatpush1.msra.mxu1 %v6807_v47 }
 0x30e   :  { %1267 = vmatprep.subr.mxu1 %v6813_v48 }
 0x30f   :  { %1268 = vmatpush1.msra.mxu1 %v6819_v52 }
 0x310   :  { %1456 = vmatprep.subr.mxu1 %v6760_v46 }
 0x3ad   :  { %v1084_v53 = vpop.f32.mrf.mxu1  ;;  %v1155_v54 = vpop.f32.mrf.mxu0 }
 0x3ae   :  { %v1159_v56 = vadd.f32 %v1084_v53, %v8969_v55  ;;  %v1173_v7 = vadd.f32 %v6637_v44, %v1155_v54  ;;  %v7000_v53 = vld [vmem:[%s8846_s5 + $0x98] sm:$0xff]  ;;  %v7007_v54 = vld [vmem:[%s8846_s5 + $0x90] sm:$0xff]  ;;  %v7012_v55 = vld [vmem:[%s8846_s5 + $0xa0] sm:$0xff] }
 0x3af   :  { %v5248_v58 = vpop.f32.mrf.mxu0  ;;  %v1086_v61 = vpop.f32.mrf.mxu1 }
 0x3b0   :  { %v4716_v60 = vmul.f32 -1.442695, %v1159_v56  ;;  %v1166_v0 = vadd.f32 %v1086_v61, %v8970_v62  ;;  %v7019_v56 = vld [vmem:[%s8846_s5 + $0x80] sm:$0xff]  ;;  %v7026_v58 = vld [vmem:[%s8846_s5 + $0x78] sm:$0xff]  ;;  %v7038_v61 = vld [vmem:[%s8846_s5 + $0x68] sm:$0xff] }
 0x3b1   :  { %v7045_v62 = vld [vmem:[%s8846_s5 + $0x60] sm:$0xff] }
 0x3b2   :  { %5830 = vpow2.f32 %v4716_v60  ;;  %v4717_v2 = vmul.f32 -1.442695, %v1166_v0  ;;  %v7031_v60 = vld [vmem:[%s8846_s5 + $0x88] sm:$0xff]  ;;  %v7050_v0 = vld [vmem:[%s8846_s5 + $0x70] sm:$0xff] }
 0x3b4   :  { %5832 = vpow2.f32 %v4717_v2  ;;  %v7057_v2 = vld [vmem:[%s8846_s5 + $0x50] sm:$0xff] }
 0x3bf   :  { %v5831_v3 = vpop.eup %5830 }
 0x3c0   :  { %v1163_v4 = vadd.f32 1.0, %v5831_v3  ;;  %v7064_v3 = vld [vmem:[%s8846_s5 + $0x48] sm:$0xff] }
 0x3c1   :  { %v5833_v5 = vpop.eup %5832 }
 0x3c2   :  { %5834 = vrcp.f32 %v1163_v4  ;;  %v1170_v6 = vadd.f32 1.0, %v5833_v5  ;;  %v7069_v4 = vld [vmem:[%s8846_s5 + $0x58] sm:$0xff]  ;;  %v7078_v5 = vld [vmem:[%s8846_s5 + $0x40] sm:$0xff] }
 0x3c4   :  { %5836 = vrcp.f32 %v1170_v6  ;;  %v7087_v6 = vld [vmem:[%s8846_s5 + $0x28] sm:$0xff] }
 0x3c5   :  { %8973 = vst [vmem:[#allocation11_spill] sm:$0xff] %v7087_v6 }
 0x3cf   :  { %v5835_v8 = vpop.eup %5834 }
 0x3d0   :  { %v1174_v9 = vmul.f32 %v5835_v8, %v1173_v7  ;;  %v7096_v7 = vld [vmem:[%s8846_s5 + $0x10] sm:$0xff] }
 0x3d1   :  { %v5837_v12 = vpop.eup %5836  ;;  %8974 = vst [vmem:[#allocation14_spill] sm:$0xff] %v7096_v7 }
 0x3d2   :  { %v1175_v11 = vadd.f32 %v1174_v9, %v8971_v10  ;;  %v1177_v13 = vsub.f32 1.0, %v5837_v12  ;;  %v1179_v25 = vmul.f32 %v5837_v12, %v6718_v36  ;;  %v8975_v10 = vld [vmem:[#allocation21_spill] sm:$0xff] }
 0x3d4   :  { %5838 = vtanh.f32 %v1175_v11 }
 0x3e1   :  { %v5839_v18 = vpop.eup %5838 }
 0x3e2   :  { %v1178_v23 = vmul.f32 %v5839_v18, %v1177_v13 }
 0x3e4   :  { %v6830_v26 = vadd.f32 %v1179_v25, %v1178_v23  ;;  %v8976_v23 = vld [vmem:[#allocation23_spill] sm:$0xff] }
 0x3e6   :  { %8972 = vst [vmem:[#allocation9_spill] sm:$0xff] %v6830_v26  ;;  %1302 = vmatmul.mubr.f32.vlgmr.msra.gmra.mxu1 %v6830_v26  ;;  %5282 = vmatmul.mubr.f32.vlgmr.msra.gmra.mxu0 %v6830_v26 }
 0x3e7   :  { %1520 = vmatprep.mubr.f32.mxu1 %v8955_v41  ;;  %5316 = vmatprep.mubr.msk.f32.mxu0 %vm6005_vm3, %v8955_v41 }
 0x3e8   :  { %1457 = vmatpush1.msra.mxu1 %v6840_v27  ;;  %5285 = vmatpush3.msra.mxu0 %v6845_v28 }
 0x3e9   :  { %1458 = vmatprep.subr.mxu1 %v6852_v29  ;;  %5286 = vmatprep.subr.mxu0 %v8955_v41 }
 0x3ea   :  { %1459 = vmatpush1.msra.mxu1 %v6859_v30  ;;  %5287 = vmatpush3.msra.mxu0 %v6864_v31 }
 0x3eb   :  { %1460 = vmatprep.subr.mxu1 %v6871_v32  ;;  %5288 = vmatprep.subr.mxu0 %v8955_v41 }
 0x3ec   :  { %1461 = vmatpush1.msra.mxu1 %v6878_v33  ;;  %5289 = vmatpush3.msra.mxu0 %v6883_v49 }
 0x3ed   :  { %1462 = vmatprep.subr.mxu1 %v6890_v14  ;;  %5290 = vmatprep.subr.mxu0 %v8955_v41 }
 0x3ee   :  { %1463 = vmatpush1.msra.mxu1 %v6897_v45  ;;  %5291 = vmatpush3.msra.mxu0 %v6902_v51 }
 0x3ef   :  { %1464 = vmatprep.subr.mxu1 %v6909_v22  ;;  %5292 = vmatprep.subr.mxu0 %v8955_v41 }
 0x3f0   :  { %1465 = vmatpush1.msra.mxu1 %v6916_v1  ;;  %5293 = vmatpush3.msra.mxu0 %v6921_v21 }
 0x3f1   :  { %1466 = vmatprep.subr.mxu1 %v6928_v15  ;;  %5294 = vmatprep.subr.mxu0 %v8955_v41 }
 0x3f2   :  { %1467 = vmatpush1.msra.mxu1 %v6935_v20  ;;  %5295 = vmatpush3.msra.mxu0 %v6940_v24 }
 0x3f3   :  { %1468 = vmatprep.subr.mxu1 %v6947_v59  ;;  %5296 = vmatprep.subr.mxu0 %v8955_v41 }
 0x3f4   :  { %1469 = vmatpush1.msra.mxu1 %v6954_v38  ;;  %5297 = vmatpush3.msra.mxu0 %v6959_v35 }
 0x3f5   :  { %1470 = vmatprep.subr.mxu1 %v6966_v17  ;;  %5298 = vmatprep.subr.mxu0 %v8955_v41 }
 0x3f6   :  { %1471 = vmatpush1.msra.mxu1 %v6971_v50  ;;  %5299 = vmatpush3.msra.mxu0 %v6976_v57 }
 0x3f7   :  { %1472 = vmatprep.subr.mxu1 %v6983_v16  ;;  %5300 = vmatprep.subr.mxu0 %v8955_v41 }
 0x3f8   :  { %1473 = vmatpush1.msra.mxu1 %v6988_v63  ;;  %5301 = vmatpush3.msra.mxu0 %v6993_v19 }
 0x3f9   :  { %1474 = vmatprep.subr.mxu1 %v7000_v53  ;;  %5302 = vmatprep.subr.mxu0 %v8955_v41 }
 0x3fa   :  { %1475 = vmatpush1.msra.mxu1 %v7007_v54  ;;  %5303 = vmatpush3.msra.mxu0 %v7012_v55 }
 0x3fb   :  { %1476 = vmatprep.subr.mxu1 %v7019_v56  ;;  %5304 = vmatprep.subr.mxu0 %v8955_v41 }
 0x3fc   :  { %1477 = vmatpush1.msra.mxu1 %v7026_v58  ;;  %5305 = vmatpush3.msra.mxu0 %v7031_v60 }
 0x3fd   :  { %1478 = vmatprep.subr.mxu1 %v7038_v61  ;;  %5306 = vmatprep.subr.mxu0 %v8955_v41 }
 0x3fe   :  { %1479 = vmatpush1.msra.mxu1 %v7045_v62  ;;  %5307 = vmatpush3.msra.mxu0 %v7050_v0 }
 0x3ff   :  { %1480 = vmatprep.subr.mxu1 %v7057_v2  ;;  %5308 = vmatprep.subr.mxu0 %v8955_v41 }
 0x400   :  { %1481 = vmatpush1.msra.mxu1 %v7064_v3  ;;  %5309 = vmatpush3.msra.mxu0 %v7069_v4 }
 0x401   :  { %1482 = vmatprep.subr.mxu1 %v6789_v37  ;;  %5310 = vmatprep.subr.mxu0 %v8955_v41 }
 0x402   :  { %1483 = vmatpush1.msra.mxu1 %v6795_v40  ;;  %5311 = vmatpush3.msra.mxu0 %v7078_v5 }
 0x403   :  { %1484 = vmatprep.subr.mxu1 %v6801_v43  ;;  %5312 = vmatprep.subr.mxu0 %v8955_v41 }
 0x404   :  { %1485 = vmatpush1.msra.mxu1 %v6807_v47  ;;  %5313 = vmatpush3.msra.mxu0 %v7087_v6  ;;  %v8977_v6 = vld [vmem:[#allocation15_spill] sm:$0xff] }
 0x405   :  { %1486 = vmatprep.subr.mxu1 %v6813_v48  ;;  %5314 = vmatprep.subr.mxu0 %v8955_v41 }
 0x406   :  { %1487 = vmatpush1.msra.mxu1 %v6819_v52  ;;  %5315 = vmatpush3.msra.mxu0 %v7096_v7 }
 0x407   :  { %1675 = vmatprep.subr.mxu1 %v6760_v46  ;;  %5319 = vmatprep.subr.mxu0 %v8955_v41 }
 0x4a6   :  { %v1303_v8 = vpop.f32.mrf.mxu1  ;;  %v1374_v9 = vpop.f32.mrf.mxu0 }
 0x4a7   :  { %v1378_v11 = vadd.f32 %v1303_v8, %v8975_v10  ;;  %v1392_v46 = vadd.f32 %v6637_v44, %v1374_v9 }
 0x4a8   :  { %v5283_v12 = vpop.f32.mrf.mxu0  ;;  %v1305_v18 = vpop.f32.mrf.mxu1 }
 0x4a9   :  { %v4718_v13 = vmul.f32 -1.442695, %v1378_v11  ;;  %v1385_v25 = vadd.f32 %v1305_v18, %v8976_v23 }
 0x4ab   :  { %5840 = vpow2.f32 %v4718_v13  ;;  %v4719_v39 = vmul.f32 -1.442695, %v1385_v25 }
 0x4ad   :  { %5842 = vpow2.f32 %v4719_v39 }
 0x4b8   :  { %v5841_v34 = vpop.eup %5840 }
 0x4b9   :  { %v1382_v36 = vadd.f32 1.0, %v5841_v34  ;;  %v8978_v34 = vld [vmem:[#allocation11_spill] sm:$0xff] }
 0x4ba   :  { %v5843_v42 = vpop.eup %5842 }
 0x4bb   :  { %5844 = vrcp.f32 %v1382_v36  ;;  %v1389_v7 = vadd.f32 1.0, %v5843_v42  ;;  %v8979_v42 = vld [vmem:[#allocation10_spill] sm:$0xff]  ;;  %v8980_v36 = vld [vmem:[#allocation8_spill] sm:$0xff] }
 0x4bd   :  { %5846 = vrcp.f32 %v1389_v7  ;;  %v8983_v7 = vld [vmem:[#allocation25_spill] sm:$0xff] }
 0x4c8   :  { %v5845_v52 = vpop.eup %5844 }
 0x4c9   :  { %v1393_v48 = vmul.f32 %v5845_v52, %v1392_v46  ;;  %v8981_v46 = vld [vmem:[#allocation14_spill] sm:$0xff] }
 0x4ca   :  { %v5847_v10 = vpop.eup %5846 }
 0x4cb   :  { %v1394_v8 = vadd.f32 %v1393_v48, %v8977_v6  ;;  %v1396_v11 = vsub.f32 1.0, %v5847_v10  ;;  %v1398_v18 = vmul.f32 %v5847_v10, %v6830_v26  ;;  %v8982_v48 = vld [vmem:[#allocation7_spill] sm:$0xff] }
 0x4cc   :  { %v8984_v10 = vld [vmem:[#allocation27_spill] sm:$0xff] }
 0x4cd   :  { %5848 = vtanh.f32 %v1394_v8 }
 0x4da   :  { %v5849_v12 = vpop.eup %5848 }
 0x4db   :  { %v1397_v13 = vmul.f32 %v5849_v12, %v1396_v11 }
 0x4dd   :  { %v7111_v39 = vadd.f32 %v1398_v18, %v1397_v13 }
 0x4df   :  { %1521 = vmatmul.mubr.f32.vlgmr.msra.gmra.mxu1 %v7111_v39  ;;  %5317 = vmatmul.mubr.f32.vlgmr.msra.gmra.mxu0 %v7111_v39 }
 0x4e0   :  { %1676 = vmatpush1.msra.mxu1 %v6840_v27  ;;  %5320 = vmatpush3.msra.mxu0 %v6845_v28 }
 0x4e1   :  { %1677 = vmatprep.subr.mxu1 %v6852_v29  ;;  %5321 = vmatprep.subr.mxu0 %v8955_v41 }
 0x4e2   :  { %1678 = vmatpush1.msra.mxu1 %v6859_v30  ;;  %5322 = vmatpush3.msra.mxu0 %v6864_v31 }
 0x4e3   :  { %1679 = vmatprep.subr.mxu1 %v6871_v32  ;;  %5323 = vmatprep.subr.mxu0 %v8955_v41 }
 0x4e4   :  { %1680 = vmatpush1.msra.mxu1 %v6878_v33  ;;  %5324 = vmatpush3.msra.mxu0 %v6883_v49 }
 0x4e5   :  { %1681 = vmatprep.subr.mxu1 %v6890_v14  ;;  %5325 = vmatprep.subr.mxu0 %v8955_v41 }
 0x4e6   :  { %1682 = vmatpush1.msra.mxu1 %v6897_v45  ;;  %5326 = vmatpush3.msra.mxu0 %v6902_v51 }
 0x4e7   :  { %1683 = vmatprep.subr.mxu1 %v6909_v22  ;;  %5327 = vmatprep.subr.mxu0 %v8955_v41 }
 0x4e8   :  { %1684 = vmatpush1.msra.mxu1 %v6916_v1  ;;  %5328 = vmatpush3.msra.mxu0 %v6921_v21 }
 0x4e9   :  { %1685 = vmatprep.subr.mxu1 %v6928_v15  ;;  %5329 = vmatprep.subr.mxu0 %v8955_v41 }
 0x4ea   :  { %1686 = vmatpush1.msra.mxu1 %v6935_v20  ;;  %5330 = vmatpush3.msra.mxu0 %v6940_v24 }
 0x4eb   :  { %1687 = vmatprep.subr.mxu1 %v6947_v59  ;;  %5331 = vmatprep.subr.mxu0 %v8955_v41 }
 0x4ec   :  { %1688 = vmatpush1.msra.mxu1 %v6954_v38  ;;  %5332 = vmatpush3.msra.mxu0 %v6959_v35 }
 0x4ed   :  { %1689 = vmatprep.subr.mxu1 %v6966_v17  ;;  %5333 = vmatprep.subr.mxu0 %v8955_v41 }
 0x4ee   :  { %1690 = vmatpush1.msra.mxu1 %v6971_v50  ;;  %5334 = vmatpush3.msra.mxu0 %v6976_v57 }
 0x4ef   :  { %1691 = vmatprep.subr.mxu1 %v6983_v16  ;;  %5335 = vmatprep.subr.mxu0 %v8955_v41 }
 0x4f0   :  { %1692 = vmatpush1.msra.mxu1 %v6988_v63  ;;  %5336 = vmatpush3.msra.mxu0 %v6993_v19 }
 0x4f1   :  { %1693 = vmatprep.subr.mxu1 %v7000_v53  ;;  %5337 = vmatprep.subr.mxu0 %v8955_v41 }
 0x4f2   :  { %1694 = vmatpush1.msra.mxu1 %v7007_v54  ;;  %5338 = vmatpush3.msra.mxu0 %v7012_v55 }
 0x4f3   :  { %1695 = vmatprep.subr.mxu1 %v7019_v56  ;;  %5339 = vmatprep.subr.mxu0 %v8955_v41 }
 0x4f4   :  { %1696 = vmatpush1.msra.mxu1 %v7026_v58  ;;  %5340 = vmatpush3.msra.mxu0 %v7031_v60 }
 0x4f5   :  { %1697 = vmatprep.subr.mxu1 %v7038_v61  ;;  %5341 = vmatprep.subr.mxu0 %v8955_v41 }
 0x4f6   :  { %1698 = vmatpush1.msra.mxu1 %v7045_v62  ;;  %5342 = vmatpush3.msra.mxu0 %v7050_v0 }
 0x4f7   :  { %1699 = vmatprep.subr.mxu1 %v7057_v2  ;;  %5343 = vmatprep.subr.mxu0 %v8955_v41 }
 0x4f8   :  { %1700 = vmatpush1.msra.mxu1 %v7064_v3  ;;  %5344 = vmatpush3.msra.mxu0 %v7069_v4 }
 0x4f9   :  { %1701 = vmatprep.subr.mxu1 %v6789_v37  ;;  %5345 = vmatprep.subr.mxu0 %v8955_v41 }
 0x4fa   :  { %1702 = vmatpush1.msra.mxu1 %v6795_v40  ;;  %5346 = vmatpush3.msra.mxu0 %v7078_v5 }
 0x4fb   :  { %1703 = vmatprep.subr.mxu1 %v6801_v43  ;;  %5347 = vmatprep.subr.mxu0 %v8955_v41 }
 0x4fc   :  { %1704 = vmatpush1.msra.mxu1 %v6807_v47  ;;  %5348 = vmatpush3.msra.mxu0 %v8978_v34  ;;  %v8985_v34 = vld [vmem:[#allocation22_spill] sm:$0xff] }
 0x4fd   :  { %1705 = vmatprep.subr.mxu1 %v8979_v42  ;;  %5349 = vmatprep.subr.mxu0 %v8955_v41 }
 0x4fe   :  { %1706 = vmatpush1.msra.mxu1 %v8980_v36  ;;  %1739 = vmatprep.mubr.f32.mxu1 %v8955_v41 }
 0x4ff   :  { %5350 = vmatpush3.msra.mxu0 %v8981_v46  ;;  %5351 = vmatprep.mubr.msk.f32.mxu0 %vm6005_vm3, %v8955_v41 }
 0x500   :  { %1894 = vmatprep.subr.mxu1 %v8982_v48  ;;  %5354 = vmatprep.subr.mxu0 %v8955_v41 }
 0x59f   :  { %v1522_v52 = vpop.f32.mrf.mxu1  ;;  %v1593_v6 = vpop.f32.mrf.mxu0 }
 0x5a0   :  { %v1597_v9 = vadd.f32 %v1522_v52, %v8983_v7  ;;  %v1611_v48 = vadd.f32 %v6637_v44, %v1593_v6  ;;  %v8986_v44 = vld [vmem:[#allocation11_spill] sm:$0xff] }
 0x5a1   :  { %v5318_v23 = vpop.f32.mrf.mxu0  ;;  %v1524_v8 = vpop.f32.mrf.mxu1 }
 0x5a2   :  { %v4720_v25 = vmul.f32 -1.442695, %v1597_v9  ;;  %v1604_v11 = vadd.f32 %v1524_v8, %v8984_v10 }
 0x5a4   :  { %5850 = vpow2.f32 %v4720_v25  ;;  %v4721_v12 = vmul.f32 -1.442695, %v1604_v11  ;;  %v8991_v11 = vld [vmem:[#allocation29_spill] sm:$0xff] }
 0x5a6   :  { %5852 = vpow2.f32 %v4721_v12 }
 0x5b1   :  { %v5851_v13 = vpop.eup %5850 }
 0x5b2   :  { %v1601_v18 = vadd.f32 1.0, %v5851_v13 }
 0x5b3   :  { %v5853_v26 = vpop.eup %5852 }
 0x5b4   :  { %5854 = vrcp.f32 %v1601_v18  ;;  %v1608_v46 = vadd.f32 1.0, %v5853_v26  ;;  %v8987_v26 = vld [vmem:[#allocation10_spill] sm:$0xff] }
 0x5b6   :  { %5856 = vrcp.f32 %v1608_v46 }
 0x5c1   :  { %v5855_v36 = vpop.eup %5854 }
 0x5c2   :  { %v1612_v42 = vmul.f32 %v5855_v36, %v1611_v48 }
 0x5c3   :  { %v5857_v7 = vpop.eup %5856 }
 0x5c4   :  { %v1613_v52 = vadd.f32 %v1612_v42, %v8985_v34  ;;  %v1615_v9 = vsub.f32 1.0, %v5857_v7  ;;  %v1617_v8 = vmul.f32 %v5857_v7, %v7111_v39  ;;  %v8988_v34 = vld [vmem:[#allocation8_spill] sm:$0xff] }
 0x5c6   :  { %5858 = vtanh.f32 %v1613_v52 }
 0x5d3   :  { %v5859_v23 = vpop.eup %5858 }
 0x5d4   :  { %v1616_v25 = vmul.f32 %v5859_v23, %v1615_v9  ;;  %v7262_v9 = vld [vmem:[%s8850_s7] ss:$0 sm:$0xff] }
 0x5d6   :  { %v7187_v10 = vadd.f32 %v1617_v8, %v1616_v25 }
 0x5d8   :  { %1740 = vmatmul.mubr.f32.vlgmr.msra.gmra.mxu1 %v7187_v10  ;;  %5352 = vmatmul.mubr.f32.vlgmr.msra.gmra.mxu0 %v7187_v10 }
 0x5d9   :  { %1895 = vmatpush1.msra.mxu1 %v6840_v27  ;;  %5355 = vmatpush3.msra.mxu0 %v6845_v28 }
 0x5da   :  { %1896 = vmatprep.subr.mxu1 %v6852_v29  ;;  %5356 = vmatprep.subr.mxu0 %v8955_v41 }
 0x5db   :  { %1897 = vmatpush1.msra.mxu1 %v6859_v30  ;;  %5357 = vmatpush3.msra.mxu0 %v6864_v31 }
 0x5dc   :  { %1898 = vmatprep.subr.mxu1 %v6871_v32  ;;  %5358 = vmatprep.subr.mxu0 %v8955_v41 }
 0x5dd   :  { %1899 = vmatpush1.msra.mxu1 %v6878_v33  ;;  %5359 = vmatpush3.msra.mxu0 %v6883_v49 }
 0x5de   :  { %1900 = vmatprep.subr.mxu1 %v6890_v14  ;;  %5360 = vmatprep.subr.mxu0 %v8955_v41 }
 0x5df   :  { %1901 = vmatpush1.msra.mxu1 %v6897_v45  ;;  %5361 = vmatpush3.msra.mxu0 %v6902_v51 }
 0x5e0   :  { %1902 = vmatprep.subr.mxu1 %v6909_v22  ;;  %5362 = vmatprep.subr.mxu0 %v8955_v41 }
 0x5e1   :  { %1903 = vmatpush1.msra.mxu1 %v6916_v1  ;;  %5363 = vmatpush3.msra.mxu0 %v6921_v21 }
 0x5e2   :  { %1904 = vmatprep.subr.mxu1 %v6928_v15  ;;  %5364 = vmatprep.subr.mxu0 %v8955_v41 }
 0x5e3   :  { %1905 = vmatpush1.msra.mxu1 %v6935_v20  ;;  %5365 = vmatpush3.msra.mxu0 %v6940_v24 }
 0x5e4   :  { %1906 = vmatprep.subr.mxu1 %v6947_v59  ;;  %5366 = vmatprep.subr.mxu0 %v8955_v41 }
 0x5e5   :  { %1907 = vmatpush1.msra.mxu1 %v6954_v38  ;;  %5367 = vmatpush3.msra.mxu0 %v6959_v35 }
 0x5e6   :  { %1908 = vmatprep.subr.mxu1 %v6966_v17  ;;  %5368 = vmatprep.subr.mxu0 %v8955_v41 }
 0x5e7   :  { %1909 = vmatpush1.msra.mxu1 %v6971_v50  ;;  %5369 = vmatpush3.msra.mxu0 %v6976_v57 }
 0x5e8   :  { %1910 = vmatprep.subr.mxu1 %v6983_v16  ;;  %5370 = vmatprep.subr.mxu0 %v8955_v41 }
 0x5e9   :  { %1911 = vmatpush1.msra.mxu1 %v6988_v63  ;;  %5371 = vmatpush3.msra.mxu0 %v6993_v19 }
 0x5ea   :  { %1912 = vmatprep.subr.mxu1 %v7000_v53  ;;  %5372 = vmatprep.subr.mxu0 %v8955_v41 }
 0x5eb   :  { %1913 = vmatpush1.msra.mxu1 %v7007_v54  ;;  %5373 = vmatpush3.msra.mxu0 %v7012_v55 }
 0x5ec   :  { %1914 = vmatprep.subr.mxu1 %v7019_v56  ;;  %5374 = vmatprep.subr.mxu0 %v8955_v41 }
 0x5ed   :  { %1915 = vmatpush1.msra.mxu1 %v7026_v58  ;;  %5375 = vmatpush3.msra.mxu0 %v7031_v60 }
 0x5ee   :  { %1916 = vmatprep.subr.mxu1 %v7038_v61  ;;  %5376 = vmatprep.subr.mxu0 %v8955_v41 }
 0x5ef   :  { %1917 = vmatpush1.msra.mxu1 %v7045_v62  ;;  %5377 = vmatpush3.msra.mxu0 %v7050_v0 }
 0x5f0   :  { %1918 = vmatprep.subr.mxu1 %v7057_v2  ;;  %5378 = vmatprep.subr.mxu0 %v8955_v41 }
 0x5f1   :  { %1919 = vmatpush1.msra.mxu1 %v7064_v3  ;;  %5379 = vmatpush3.msra.mxu0 %v7069_v4 }
 0x5f2   :  { %1920 = vmatprep.subr.mxu1 %v6789_v37  ;;  %5380 = vmatprep.subr.mxu0 %v8955_v41  ;;  %v8989_v37 = vld [vmem:[#allocation14_spill] sm:$0xff] }
 0x5f3   :  { %1921 = vmatpush1.msra.mxu1 %v6795_v40  ;;  %5381 = vmatpush3.msra.mxu0 %v7078_v5 }
 0x5f4   :  { %1922 = vmatprep.subr.mxu1 %v6801_v43  ;;  %5382 = vmatprep.subr.mxu0 %v8955_v41 }
 0x5f5   :  { %1923 = vmatpush1.msra.mxu1 %v6807_v47  ;;  %5383 = vmatpush3.msra.mxu0 %v8986_v44  ;;  %v8990_v47 = vld [vmem:[#allocation28_spill] sm:$0xff] }
 0x5f6   :  { %1924 = vmatprep.subr.mxu1 %v8987_v26  ;;  %5384 = vmatprep.subr.mxu0 %v8955_v41  ;;  %v8992_v26 = vld [vmem:[#allocation20_spill] sm:$0xff] }
 0x5f7   :  { %1925 = vmatpush1.msra.mxu1 %v8988_v34  ;;  %1958 = vmatprep.mubr.f32.mxu1 %v8955_v41 }
 0x5f8   :  { %5385 = vmatpush3.msra.mxu0 %v8989_v37  ;;  %5386 = vmatprep.mubr.msk.f32.mxu0 %vm6005_vm3, %v8955_v41 }
 0x5f9   :  { %5389 = vmatprep.subr.mxu0 %v8955_v41 }
 0x698   :  { %v1741_v40 = vpop.f32.mrf.mxu1  ;;  %v1812_v43 = vpop.f32.mrf.mxu0 }
 0x699   :  { %v1816_v42 = vadd.f32 %v1741_v40, %v8990_v47  ;;  %v1830_v23 = vadd.f32 %v7262_v9, %v1812_v43  ;;  %v8996_v43 = vld [vmem:[#allocation34_spill] sm:$0xff] }
 0x69a   :  { %v5353_v36 = vpop.f32.mrf.mxu0  ;;  %v1743_v6 = vpop.f32.mrf.mxu1 }
 0x69b   :  { %v4722_v46 = vmul.f32 -1.442695, %v1816_v42  ;;  %v1823_v12 = vadd.f32 %v1743_v6, %v8991_v11  ;;  %v2324_v11 = vld [vmem:[%s8851_s8 + $0x128] sm:$0xff] }
 0x69d   :  { %5860 = vpow2.f32 %v4722_v46  ;;  %v4723_v13 = vmul.f32 -1.442695, %v1823_v12  ;;  %v2325_v12 = vld [vmem:[%s8851_s8 + $0x130] sm:$0xff] }
 0x69f   :  { %5862 = vpow2.f32 %v4723_v13  ;;  %v2323_v13 = vld [vmem:[%s8851_s8 + $0x120] sm:$0xff] }
 0x6aa   :  { %v5861_v18 = vpop.eup %5860 }
 0x6ab   :  { %v1820_v48 = vadd.f32 1.0, %v5861_v18  ;;  %v2321_v18 = vld [vmem:[%s8851_s8 + $0x110] sm:$0xff] }
 0x6ac   :  { %v5863_v52 = vpop.eup %5862 }
 0x6ad   :  { %5864 = vrcp.f32 %v1820_v48  ;;  %v1827_v7 = vadd.f32 1.0, %v5863_v52  ;;  %v2322_v48 = vld [vmem:[%s8851_s8 + $0x118] sm:$0xff]  ;;  %v2320_v52 = vld [vmem:[%s8851_s8 + $0x108] sm:$0xff] }
 0x6af   :  { %5866 = vrcp.f32 %v1827_v7  ;;  %v2318_v7 = vld [vmem:[%s8851_s8 + $0xf8] sm:$0xff] }
 0x6ba   :  { %v5865_v25 = vpop.eup %5864 }
 0x6bb   :  { %v1831_v8 = vmul.f32 %v5865_v25, %v1830_v23  ;;  %v2319_v23 = vld [vmem:[%s8851_s8 + $0x100] sm:$0xff]  ;;  %v2317_v25 = vld [vmem:[%s8851_s8 + $0xf0] sm:$0xff] }
 0x6bc   :  { %v5867_v40 = vpop.eup %5866 }
 0x6bd   :  { %v1832_v34 = vadd.f32 %v1831_v8, %v8992_v26  ;;  %v1834_v47 = vsub.f32 1.0, %v5867_v40  ;;  %v1836_v46 = vmul.f32 %v5867_v40, %v7187_v10  ;;  %v2315_v8 = vld [vmem:[%s8851_s8 + $0xe0] sm:$0xff]  ;;  %v2316_v26 = vld [vmem:[%s8851_s8 + $0xe8] sm:$0xff] }
 0x6be   :  { %v2312_v40 = vld [vmem:[%s8851_s8 + $0xc8] sm:$0xff] }
 0x6bf   :  { %5868 = vtanh.f32 %v1832_v34  ;;  %v2314_v34 = vld [vmem:[%s8851_s8 + $0xd8] sm:$0xff] }
 0x6cc   :  { %v5869_v42 = vpop.eup %5868 }
 0x6cd   :  { %v1835_v36 = vmul.f32 %v5869_v42, %v1834_v47  ;;  %v2313_v47 = vld [vmem:[%s8851_s8 + $0xd0] sm:$0xff]  ;;  %v2311_v42 = vld [vmem:[%s8851_s8 + $0xc0] sm:$0xff] }
 0x6cf   :  { %v7267_v6 = vadd.f32 %v1836_v46, %v1835_v36  ;;  %v2309_v36 = vld [vmem:[%s8851_s8 + $0xb0] sm:$0xff]  ;;  %v2310_v46 = vld [vmem:[%s8851_s8 + $0xb8] sm:$0xff] }
 0x6d1   :  { %1959 = vmatmul.mubr.f32.vlgmr.msra.gmra.mxu1 %v7267_v6  ;;  %5387 = vmatmul.mubr.f32.vlgmr.msra.gmra.mxu0 %v7267_v6 }
 0x6d2   :  { %5390 = vmatpush3.msra.mxu0 %v6845_v28  ;;  %2177 = vmatprep.mubr.f32.mxu1 %v8955_v41  ;;  %v2111_v28 = vld [vmem:[%s8846_s5 + $0x170] sm:$0xff] }
 0x6d3   :  { %5391 = vmatprep.subr.mxu0 %v8955_v41  ;;  %5421 = vmatprep.mubr.msk.f32.mxu0 %vm6005_vm3, %v8955_v41 }
 0x6d4   :  { %5392 = vmatpush3.msra.mxu0 %v6864_v31  ;;  %2113 = vmatprep.subr.mxu1 %v2111_v28  ;;  %v2069_v31 = vld [vmem:[%s8846_s5 + $0x20] sm:$0xff]  ;;  %v2308_v28 = vld [vmem:[%s8851_s8 + $0xa8] sm:$0xff] }
 0x6d5   :  { %5393 = vmatprep.subr.mxu0 %v8955_v41  ;;  %2114 = vmatpush1.msra.mxu1 %v6840_v27  ;;  %v2334_v27 = vld [vmem:[%s8851_s8 + $0x178] sm:$0xff] }
 0x6d6   :  { %5394 = vmatpush3.msra.mxu0 %v6883_v49  ;;  %2115 = vmatprep.subr.mxu1 %v6852_v29  ;;  %v2072_v29 = vld [vmem:[%s8846_s5 + $0x38] sm:$0xff]  ;;  %v2065_v49 = vld [vmem:[%s8846_s5] sm:$0xff] }
 0x6d7   :  { %5395 = vmatprep.subr.mxu0 %v8955_v41  ;;  %2116 = vmatpush1.msra.mxu1 %v6859_v30  ;;  %v2071_v30 = vld [vmem:[%s8846_s5 + $0x30] sm:$0xff] }
 0x6d8   :  { %5396 = vmatpush3.msra.mxu0 %v6902_v51  ;;  %2117 = vmatprep.subr.mxu1 %v6871_v32  ;;  %v2068_v32 = vld [vmem:[%s8846_s5 + $0x18] sm:$0xff] }
 0x6d9   :  { %5397 = vmatprep.subr.mxu0 %v8955_v41  ;;  %2118 = vmatpush1.msra.mxu1 %v6878_v33  ;;  %v2066_v33 = vld [vmem:[%s8846_s5 + $0x8] sm:$0xff] }
 0x6da   :  { %5398 = vmatpush3.msra.mxu0 %v6921_v21  ;;  %2119 = vmatprep.subr.mxu1 %v6890_v14  ;;  %v2333_v14 = vld [vmem:[%s8851_s8 + $0x170] sm:$0xff] }
 0x6db   :  { %5399 = vmatprep.subr.mxu0 %v8955_v41  ;;  %2120 = vmatpush1.msra.mxu1 %v6897_v45 }
 0x6dc   :  { %5400 = vmatpush3.msra.mxu0 %v6940_v24  ;;  %2121 = vmatprep.subr.mxu1 %v6909_v22  ;;  %v8993_v22 = vld [vmem:[#allocation30_spill] sm:$0xff]  ;;  %v8994_v24 = vld [vmem:[#allocation31_spill] sm:$0xff] }
 0x6dd   :  { %5401 = vmatprep.subr.mxu0 %v8955_v41  ;;  %2122 = vmatpush1.msra.mxu1 %v6916_v1 }
 0x6de   :  { %5402 = vmatpush3.msra.mxu0 %v6959_v35  ;;  %2123 = vmatprep.subr.mxu1 %v6928_v15 }
 0x6df   :  { %5403 = vmatprep.subr.mxu0 %v8955_v41  ;;  %2124 = vmatpush1.msra.mxu1 %v6935_v20 }
 0x6e0   :  { %5404 = vmatpush3.msra.mxu0 %v6976_v57  ;;  %2125 = vmatprep.subr.mxu1 %v6947_v59 }
 0x6e1   :  { %5405 = vmatprep.subr.mxu0 %v8955_v41  ;;  %2126 = vmatpush1.msra.mxu1 %v6954_v38 }
 0x6e2   :  { %5406 = vmatpush3.msra.mxu0 %v6993_v19  ;;  %2127 = vmatprep.subr.mxu1 %v6966_v17 }
 0x6e3   :  { %5407 = vmatprep.subr.mxu0 %v8955_v41  ;;  %2128 = vmatpush1.msra.mxu1 %v6971_v50 }
 0x6e4   :  { %5408 = vmatpush3.msra.mxu0 %v7012_v55  ;;  %2129 = vmatprep.subr.mxu1 %v6983_v16 }
 0x6e5   :  { %5409 = vmatprep.subr.mxu0 %v8955_v41  ;;  %2130 = vmatpush1.msra.mxu1 %v6988_v63 }
 0x6e6   :  { %5410 = vmatpush3.msra.mxu0 %v7031_v60  ;;  %2131 = vmatprep.subr.mxu1 %v7000_v53  ;;  %v8995_v53 = vld [vmem:[#allocation26_spill] sm:$0xff] }
 0x6e7   :  { %5411 = vmatprep.subr.mxu0 %v8955_v41  ;;  %2132 = vmatpush1.msra.mxu1 %v7007_v54 }
 0x6e8   :  { %5412 = vmatpush3.msra.mxu0 %v7050_v0  ;;  %2133 = vmatprep.subr.mxu1 %v7019_v56  ;;  %v2332_v0 = vld [vmem:[%s8851_s8 + $0x168] sm:$0xff] }
 0x6e9   :  { %5413 = vmatprep.subr.mxu0 %v8955_v41  ;;  %2134 = vmatpush1.msra.mxu1 %v7026_v58 }
 0x6ea   :  { %5414 = vmatpush3.msra.mxu0 %v7069_v4  ;;  %2135 = vmatprep.subr.mxu1 %v7038_v61  ;;  %v2329_v4 = vld [vmem:[%s8851_s8 + $0x150] sm:$0xff] }
 0x6eb   :  { %5415 = vmatprep.subr.mxu0 %v8955_v41  ;;  %2136 = vmatpush1.msra.mxu1 %v7045_v62 }
 0x6ec   :  { %5416 = vmatpush3.msra.mxu0 %v7078_v5  ;;  %2137 = vmatprep.subr.mxu1 %v7057_v2  ;;  %v2330_v2 = vld [vmem:[%s8851_s8 + $0x158] sm:$0xff]  ;;  %v2327_v5 = vld [vmem:[%s8851_s8 + $0x140] sm:$0xff] }
 0x6ed   :  { %5417 = vmatprep.subr.mxu0 %v8955_v41  ;;  %2138 = vmatpush1.msra.mxu1 %v7064_v3  ;;  %v2331_v3 = vld [vmem:[%s8851_s8 + $0x160] sm:$0xff] }
 0x6ee   :  { %5418 = vmatpush3.msra.mxu0 %v8986_v44  ;;  %2139 = vmatprep.subr.mxu1 %v2072_v29  ;;  %v2328_v44 = vld [vmem:[%s8851_s8 + $0x148] sm:$0xff]  ;;  %v2307_v29 = vld [vmem:[%s8851_s8 + $0xa0] sm:$0xff] }
 0x6ef   :  { %5419 = vmatprep.subr.mxu0 %v8955_v41  ;;  %2140 = vmatpush1.msra.mxu1 %v2071_v30  ;;  %v2305_v30 = vld [vmem:[%s8851_s8 + $0x90] sm:$0xff] }
 0x6f0   :  { %5420 = vmatpush3.msra.mxu0 %v8989_v37  ;;  %2141 = vmatprep.subr.mxu1 %v2069_v31  ;;  %v2326_v37 = vld [vmem:[%s8851_s8 + $0x138] sm:$0xff]  ;;  %v2303_v31 = vld [vmem:[%s8851_s8 + $0x80] sm:$0xff] }
 0x6f1   :  { %5424 = vmatprep.subr.mxu0 %v2334_v27  ;;  %2142 = vmatpush1.msra.mxu1 %v2068_v32  ;;  %v2304_v32 = vld [vmem:[%s8851_s8 + $0x88] sm:$0xff] }
 0x6f2   :  { %2143 = vmatprep.subr.mxu1 %v2066_v33  ;;  %v2302_v33 = vld [vmem:[%s8851_s8 + $0x78] sm:$0xff] }
 0x6f3   :  { %2144 = vmatpush1.msra.mxu1 %v2065_v49  ;;  %v2300_v49 = vld [vmem:[%s8851_s8 + $0x68] sm:$0xff] }
 0x6f4   :  { %2352 = vmatprep.subr.mxu1 %v2333_v14  ;;  %v2301_v14 = vld [vmem:[%s8851_s8 + $0x70] sm:$0xff] }
 0x791   :  { %v1960_v45 = vpop.f32.mrf.mxu1  ;;  %v2031_v51 = vpop.f32.mrf.mxu0 }
 0x792   :  { %v2035_v1 = vadd.f32 %v1960_v45, %v8993_v22  ;;  %v2049_v16 = vadd.f32 %v7262_v9, %v2031_v51  ;;  %v2299_v45 = vld [vmem:[%s8851_s8 + $0x60] sm:$0xff]  ;;  %v2297_v51 = vld [vmem:[%s8851_s8 + $0x50] sm:$0xff]  ;;  %v2298_v22 = vld [vmem:[%s8851_s8 + $0x58] sm:$0xff] }
 0x793   :  { %v5388_v21 = vpop.f32.mrf.mxu0  ;;  %v1962_v20 = vpop.f32.mrf.mxu1 }
 0x794   :  { %v4724_v15 = vmul.f32 -1.442695, %v2035_v1  ;;  %v2042_v59 = vadd.f32 %v1962_v20, %v8994_v24  ;;  %v2296_v1 = vld [vmem:[%s8851_s8 + $0x48] sm:$0xff]  ;;  %v2294_v21 = vld [vmem:[%s8851_s8 + $0x38] sm:$0xff]  ;;  %v2293_v20 = vld [vmem:[%s8851_s8 + $0x30] sm:$0xff] }
 0x795   :  { %v2291_v24 = vld [vmem:[%s8851_s8 + $0x20] sm:$0xff] }
 0x796   :  { %5870 = vpow2.f32 %v4724_v15  ;;  %v4725_v38 = vmul.f32 -1.442695, %v2042_v59  ;;  %v2295_v15 = vld [vmem:[%s8851_s8 + $0x40] sm:$0xff]  ;;  %v2292_v59 = vld [vmem:[%s8851_s8 + $0x28] sm:$0xff] }
 0x798   :  { %5872 = vpow2.f32 %v4725_v38  ;;  %v2290_v38 = vld [vmem:[%s8851_s8 + $0x18] sm:$0xff] }
 0x7a3   :  { %v5871_v35 = vpop.eup %5870 }
 0x7a4   :  { %v2039_v17 = vadd.f32 1.0, %v5871_v35  ;;  %v2288_v35 = vld [vmem:[%s8851_s8 + $0x8] sm:$0xff] }
 0x7a5   :  { %v5873_v50 = vpop.eup %5872 }
 0x7a6   :  { %5874 = vrcp.f32 %v2039_v17  ;;  %v2046_v57 = vadd.f32 1.0, %v5873_v50  ;;  %v2289_v17 = vld [vmem:[%s8851_s8 + $0x10] sm:$0xff]  ;;  %v2287_v50 = vld [vmem:[%s8851_s8] sm:$0xff] }
 0x7a8   :  { %5876 = vrcp.f32 %v2046_v57  ;;  %v8997_v57 = vld [vmem:[#allocation6_spill] sm:$0xff] }
 0x7b3   :  { %v5875_v63 = vpop.eup %5874 }
 0x7b4   :  { %v2050_v19 = vmul.f32 %v5875_v63, %v2049_v16  ;;  %v8998_v16 = vld [vmem:[#allocation9_spill] sm:$0xff]  ;;  %v7530_v63 = vld [vmem:[%s8852_s9 + $0x170] sm:$0xff] }
 0x7b5   :  { %v5877_v55 = vpop.eup %5876  ;;  %8999 = vst [vmem:[#allocation16_spill] sm:$0xff] %v7530_v63 }
 0x7b6   :  { %v2051_v54 = vadd.f32 %v2050_v19, %v8995_v53  ;;  %v2053_v56 = vsub.f32 1.0, %v5877_v55  ;;  %v2055_v61 = vmul.f32 %v5877_v55, %v7267_v6  ;;  %v7554_v19 = vld [vmem:[%s8852_s9 + $0x140] sm:$0xff]  ;;  %v7560_v53 = vld [vmem:[%s8852_s9 + $0x138] sm:$0xff] }
 0x7b7   :  { %v7572_v55 = vld [vmem:[%s8852_s9 + $0x120] sm:$0xff] }
 0x7b8   :  { %5878 = vtanh.f32 %v2051_v54  ;;  %v7566_v54 = vld [vmem:[%s8852_s9 + $0x128] sm:$0xff] }
 0x7c5   :  { %v5879_v58 = vpop.eup %5878 }
 0x7c6   :  { %v2054_v60 = vmul.f32 %v5879_v58, %v2053_v56  ;;  %v7578_v56 = vld [vmem:[%s8852_s9 + $0x110] sm:$0xff]  ;;  %v7584_v58 = vld [vmem:[%s8852_s9 + $0x108] sm:$0xff] }
 0x7c8   :  { %v7362_v62 = vadd.f32 %v2055_v61, %v2054_v60  ;;  %v7590_v60 = vld [vmem:[%s8852_s9 + $0xf8] sm:$0xff]  ;;  %v7596_v61 = vld [vmem:[%s8852_s9 + $0xf0] sm:$0xff] }
 0x7ca   :  { %2178 = vmatmul.mubr.f32.vlgmr.msra.gmra.mxu1 %v7362_v62  ;;  %5422 = vmatmul.mubr.f32.vlgmr.msra.gmra.mxu0 %v7362_v62 }
 0x7cb   :  { %2353 = vmatpush1.msra.mxu1 %v2332_v0  ;;  %5425 = vmatpush3.msra.mxu0 %v2334_v27  ;;  %v2306_v27 = vld [vmem:[%s8851_s8 + $0x98] sm:$0xff]  ;;  %v7602_v0 = vld [vmem:[%s8852_s9 + $0xe0] sm:$0xff] }
 0x7cc   :  { %2354 = vmatprep.subr.mxu1 %v2330_v2  ;;  %5426 = vmatprep.subr.mxu0 %v2331_v3  ;;  %v7608_v2 = vld [vmem:[%s8852_s9 + $0xd8] sm:$0xff] }
 0x7cd   :  { %5456 = vmatprep.mubr.f32.mxu0 %v8996_v43  ;;  %2355 = vmatpush1.msra.mxu1 %v2329_v4  ;;  %v7620_v4 = vld [vmem:[%s8852_s9 + $0xc0] sm:$0xff] }
 0x7ce   :  { %5427 = vmatpush3.msra.mxu0 %v2331_v3  ;;  %2356 = vmatprep.subr.mxu1 %v2327_v5  ;;  %v7614_v3 = vld [vmem:[%s8852_s9 + $0xc8] sm:$0xff]  ;;  %v7626_v5 = vld [vmem:[%s8852_s9 + $0xb0] sm:$0xff] }
 0x7cf   :  { %5428 = vmatprep.subr.mxu0 %v2328_v44  ;;  %2357 = vmatpush1.msra.mxu1 %v2326_v37  ;;  %v7638_v37 = vld [vmem:[%s8852_s9 + $0x98] sm:$0xff] }
 0x7d0   :  { %5429 = vmatpush3.msra.mxu0 %v2328_v44  ;;  %2358 = vmatprep.subr.mxu1 %v2324_v11  ;;  %v7632_v44 = vld [vmem:[%s8852_s9 + $0xa8] sm:$0xff]  ;;  %v7650_v11 = vld [vmem:[%s8852_s9 + $0x80] sm:$0xff] }
 0x7d1   :  { %5430 = vmatprep.subr.mxu0 %v2325_v12  ;;  %2359 = vmatpush1.msra.mxu1 %v2323_v13  ;;  %v7662_v13 = vld [vmem:[%s8852_s9 + $0x68] sm:$0xff] }
 0x7d2   :  { %5431 = vmatpush3.msra.mxu0 %v2325_v12  ;;  %2360 = vmatprep.subr.mxu1 %v2321_v18  ;;  %v7656_v12 = vld [vmem:[%s8852_s9 + $0x78] sm:$0xff]  ;;  %v7668_v18 = vld [vmem:[%s8852_s9 + $0x60] sm:$0xff] }
 0x7d3   :  { %5432 = vmatprep.subr.mxu0 %v2322_v48  ;;  %2361 = vmatpush1.msra.mxu1 %v2320_v52  ;;  %v7680_v52 = vld [vmem:[%s8852_s9 + $0x48] sm:$0xff] }
 0x7d4   :  { %5433 = vmatpush3.msra.mxu0 %v2322_v48  ;;  %2362 = vmatprep.subr.mxu1 %v2318_v7  ;;  %v7674_v48 = vld [vmem:[%s8852_s9 + $0x50] sm:$0xff]  ;;  %v7686_v7 = vld [vmem:[%s8852_s9 + $0x38] sm:$0xff] }
 0x7d5   :  { %5434 = vmatprep.subr.mxu0 %v2319_v23  ;;  %2363 = vmatpush1.msra.mxu1 %v2317_v25  ;;  %v7698_v25 = vld [vmem:[%s8852_s9 + $0x20] sm:$0xff] }
 0x7d6   :  { %5435 = vmatpush3.msra.mxu0 %v2319_v23  ;;  %2364 = vmatprep.subr.mxu1 %v2315_v8  ;;  %v7692_v23 = vld [vmem:[%s8852_s9 + $0x30] sm:$0xff]  ;;  %v7704_v8 = vld [vmem:[%s8852_s9 + $0x18] sm:$0xff] }
 0x7d7   :  { %5436 = vmatprep.subr.mxu0 %v2316_v26  ;;  %2365 = vmatpush1.msra.mxu1 %v2314_v34  ;;  %9000 = vst [vmem:[#allocation13_spill] sm:$0xff] %v7704_v8  ;;  %v7715_v34 = vld [vmem:[%s8852_s9] sm:$0xff] }
 0x7d8   :  { %5437 = vmatpush3.msra.mxu0 %v2316_v26  ;;  %2366 = vmatprep.subr.mxu1 %v2312_v40  ;;  %v7710_v26 = vld [vmem:[%s8852_s9 + $0x8] sm:$0xff]  ;;  %9002 = vst [vmem:[#allocation19_spill] sm:$0xff] %v7715_v34  ;;  %v7720_v40 = vld [vmem:[%s8852_s9 + $0x178] sm:$0xff] }
 0x7d9   :  { %5438 = vmatprep.subr.mxu0 %v2313_v47  ;;  %2367 = vmatpush1.msra.mxu1 %v2311_v42  ;;  %9001 = vst [vmem:[#allocation18_spill] sm:$0xff] %v7710_v26  ;;  %v7734_v42 = vld [vmem:[%s8852_s9 + $0x148] sm:$0xff] }
 0x7da   :  { %5439 = vmatpush3.msra.mxu0 %v2313_v47  ;;  %2368 = vmatprep.subr.mxu1 %v2309_v36  ;;  %v7727_v47 = vld [vmem:[%s8852_s9 + $0x160] sm:$0xff]  ;;  %v7742_v36 = vld [vmem:[%s8852_s9 + $0x130] sm:$0xff] }
 0x7db   :  { %5440 = vmatprep.subr.mxu0 %v2310_v46  ;;  %2369 = vmatpush1.msra.mxu1 %v2308_v28  ;;  %v7756_v28 = vld [vmem:[%s8852_s9 + $0x100] sm:$0xff] }
 0x7dc   :  { %5441 = vmatpush3.msra.mxu0 %v2310_v46  ;;  %2370 = vmatprep.subr.mxu1 %v2306_v27  ;;  %v7749_v46 = vld [vmem:[%s8852_s9 + $0x118] sm:$0xff]  ;;  %v7763_v27 = vld [vmem:[%s8852_s9 + $0xe8] sm:$0xff] }
 0x7dd   :  { %5442 = vmatprep.subr.mxu0 %v2307_v29  ;;  %2371 = vmatpush1.msra.mxu1 %v2305_v30  ;;  %v7777_v30 = vld [vmem:[%s8852_s9 + $0xb8] sm:$0xff] }
 0x7de   :  { %5443 = vmatpush3.msra.mxu0 %v2307_v29  ;;  %2372 = vmatprep.subr.mxu1 %v2303_v31  ;;  %v7770_v29 = vld [vmem:[%s8852_s9 + $0xd0] sm:$0xff]  ;;  %v7784_v31 = vld [vmem:[%s8852_s9 + $0xa0] sm:$0xff] }
 0x7df   :  { %5444 = vmatprep.subr.mxu0 %v2304_v32  ;;  %2373 = vmatpush1.msra.mxu1 %v2302_v33  ;;  %v7798_v33 = vld [vmem:[%s8852_s9 + $0x70] sm:$0xff] }
 0x7e0   :  { %5445 = vmatpush3.msra.mxu0 %v2304_v32  ;;  %2374 = vmatprep.subr.mxu1 %v2300_v49  ;;  %v7791_v32 = vld [vmem:[%s8852_s9 + $0x88] sm:$0xff]  ;;  %v7805_v49 = vld [vmem:[%s8852_s9 + $0x58] sm:$0xff] }
 0x7e1   :  { %5446 = vmatprep.subr.mxu0 %v2301_v14  ;;  %2375 = vmatpush1.msra.mxu1 %v2299_v45  ;;  %v7819_v45 = vld [vmem:[%s8852_s9 + $0x28] sm:$0xff] }
 0x7e2   :  { %5447 = vmatpush3.msra.mxu0 %v2301_v14  ;;  %2376 = vmatprep.subr.mxu1 %v2297_v51  ;;  %v7812_v14 = vld [vmem:[%s8852_s9 + $0x40] sm:$0xff]  ;;  %9003 = vst [vmem:[#allocation17_spill] sm:$0xff] %v7819_v45  ;;  %v7826_v51 = vld [vmem:[%s8852_s9 + $0x10] sm:$0xff] }
 0x7e3   :  { %5448 = vmatprep.subr.mxu0 %v2298_v22  ;;  %2377 = vmatpush1.msra.mxu1 %v2296_v1  ;;  %9004 = vst [vmem:[#allocation21_spill] sm:$0xff] %v7826_v51 }
 0x7e4   :  { %5449 = vmatpush3.msra.mxu0 %v2298_v22  ;;  %2378 = vmatprep.subr.mxu1 %v2294_v21  ;;  %v9005_v21 = vld [vmem:[#allocation32_spill] sm:$0xff] }
 0x7e5   :  { %5450 = vmatprep.subr.mxu0 %v2295_v15  ;;  %2379 = vmatpush1.msra.mxu1 %v2293_v20 }
 0x7e6   :  { %5451 = vmatpush3.msra.mxu0 %v2295_v15  ;;  %2380 = vmatprep.subr.mxu1 %v2291_v24 }
 0x7e7   :  { %5452 = vmatprep.subr.mxu0 %v2292_v59  ;;  %2381 = vmatpush1.msra.mxu1 %v2290_v38  ;;  %v9006_v38 = vld [vmem:[#allocation33_spill] sm:$0xff] }
 0x7e8   :  { %5453 = vmatpush3.msra.mxu0 %v2292_v59  ;;  %2382 = vmatprep.subr.mxu1 %v2288_v35 }
 0x7e9   :  { %5454 = vmatprep.subr.mxu0 %v2289_v17  ;;  %2383 = vmatpush1.msra.mxu1 %v2287_v50 }
 0x7ea   :  { %2416 = vmatprep.mubr.f32.mxu1 %v8955_v41  ;;  %5455 = vmatpush3.msra.mxu0 %v2289_v17 }
 0x7eb   :  { %2417 = vmatmul.mubr.f32.vlgmr.msra.gmra.mxu1 %v8996_v43  ;;  %5457 = vmatmul.mubr.f32.vlgmr.msra.gmra.mxu0 %v8997_v57  ;;  %v7644_v43 = vld [vmem:[%s8852_s9 + $0x90] sm:$0xff] }
 0x7ec   :  { %5459 = vmatprep.mubr.f32.mxu0 %v8998_v16  ;;  %2422 = vmatprep.mubr.f32.mxu1 %v8955_v41 }
 0x7ed   :  { %5468 = vmatprep.subr.mxu0 %v8955_v41  ;;  %2654 = vmatprep.subr.mxu1 %v7530_v63 }
 0x7ee   :  { %5469 = vmatpush3.msra.mxu0 %v7720_v40 }
 0x7ef   :  { %2423 = vmatmul.mubr.f32.gmra.mxu1 %v8997_v57  ;;  %5460 = vmatmul.mubr.f32.gmra.mxu0 %v7111_v39 }
 0x7f0   :  { %5462 = vmatprep.mubr.f32.mxu0 %v7187_v10  ;;  %2428 = vmatprep.mubr.f32.mxu1 %v8955_v41 }
 0x7f1   :  { %5470 = vmatprep.subr.mxu0 %v8955_v41 }
 0x7f2   :  { %5471 = vmatpush3.msra.mxu0 %v7727_v47 }
 0x7f3   :  { %2429 = vmatmul.mubr.f32.gmra.mxu1 %v8998_v16  ;;  %5463 = vmatmul.mubr.f32.gmra.mxu0 %v7267_v6 }
 0x7f4   :  { %5465 = vmatprep.mubr.f32.mxu0 %v7362_v62  ;;  %2434 = vmatprep.mubr.f32.mxu1 %v8955_v41 }
 0x7f5   :  { %5472 = vmatprep.subr.mxu0 %v8955_v41 }
 0x7f6   :  { %5473 = vmatpush3.msra.mxu0 %v7734_v42 }
 0x7f7   :  { %2435 = vmatmul.mubr.f32.gmra.mxu1 %v7111_v39  ;;  %v7536_v39 = vld [vmem:[%s8852_s9 + $0x168] sm:$0xff]  ;;  %5474 = vmatprep.subr.mxu0 %v8955_v41 }
 0x7f8   :  { %2440 = vmatprep.mubr.f32.mxu1 %v8955_v41  ;;  %2655 = vmatpush1.msra.mxu1 %v7536_v39 }
 0x7f9   :  { %5475 = vmatpush3.msra.mxu0 %v7742_v36 }
 0x7fa   :  { %5476 = vmatprep.subr.mxu0 %v8955_v41 }
 0x7fb   :  { %2441 = vmatmul.mubr.f32.gmra.mxu1 %v7187_v10  ;;  %v7542_v10 = vld [vmem:[%s8852_s9 + $0x158] sm:$0xff]  ;;  %5477 = vmatpush3.msra.mxu0 %v7749_v46 }
 0x7fc   :  { %2446 = vmatprep.mubr.f32.mxu1 %v8955_v41  ;;  %2656 = vmatprep.subr.mxu1 %v7542_v10 }
 0x7fd   :  { %5478 = vmatprep.subr.mxu0 %v8955_v41 }
 0x7fe   :  { %5479 = vmatpush3.msra.mxu0 %v7756_v28 }
 0x7ff   :  { %2447 = vmatmul.mubr.f32.gmra.mxu1 %v7267_v6  ;;  %v7548_v6 = vld [vmem:[%s8852_s9 + $0x150] sm:$0xff]  ;;  %5480 = vmatprep.subr.mxu0 %v8955_v41 }
 0x800   :  { %2452 = vmatprep.mubr.f32.mxu1 %v8955_v41  ;;  %2657 = vmatpush1.msra.mxu1 %v7548_v6 }
 0x801   :  { %2658 = vmatprep.subr.mxu1 %v7554_v19  ;;  %5481 = vmatpush3.msra.mxu0 %v7763_v27 }
 0x802   :  { %2659 = vmatpush1.msra.mxu1 %v7560_v53  ;;  %5482 = vmatprep.subr.mxu0 %v8955_v41 }
 0x803   :  { %2453 = vmatmul.mubr.f32.gmra.mxu1 %v7362_v62  ;;  %2660 = vmatprep.subr.mxu1 %v7566_v54 }
 0x804   :  { %2458 = vmatprep.mubr.f32.mxu1 %v8955_v41  ;;  %2661 = vmatpush1.msra.mxu1 %v7572_v55 }
 0x805   :  { %2662 = vmatprep.subr.mxu1 %v7578_v56  ;;  %5483 = vmatpush3.msra.mxu0 %v7770_v29 }
 0x806   :  { %2663 = vmatpush1.msra.mxu1 %v7584_v58  ;;  %5484 = vmatprep.subr.mxu0 %v8955_v41 }
 0x807   :  { %2664 = vmatprep.subr.mxu1 %v7590_v60  ;;  %5485 = vmatpush3.msra.mxu0 %v7777_v30 }
 0x808   :  { %2665 = vmatpush1.msra.mxu1 %v7596_v61  ;;  %5486 = vmatprep.subr.mxu0 %v8955_v41 }
 0x809   :  { %2666 = vmatprep.subr.mxu1 %v7602_v0  ;;  %5487 = vmatpush3.msra.mxu0 %v7784_v31 }
 0x80a   :  { %2667 = vmatpush1.msra.mxu1 %v7608_v2  ;;  %5488 = vmatprep.subr.mxu0 %v8955_v41 }
 0x80b   :  { %2668 = vmatprep.subr.mxu1 %v7614_v3  ;;  %5489 = vmatpush3.msra.mxu0 %v7791_v32 }
 0x80c   :  { %2669 = vmatpush1.msra.mxu1 %v7620_v4  ;;  %5490 = vmatprep.subr.mxu0 %v8955_v41 }
 0x80d   :  { %2670 = vmatprep.subr.mxu1 %v7626_v5  ;;  %5491 = vmatpush3.msra.mxu0 %v7798_v33 }
 0x80e   :  { %2671 = vmatpush1.msra.mxu1 %v7632_v44  ;;  %5492 = vmatprep.subr.mxu0 %v8955_v41 }
 0x80f   :  { %2672 = vmatprep.subr.mxu1 %v7638_v37  ;;  %5493 = vmatpush3.msra.mxu0 %v7805_v49 }
 0x810   :  { %2673 = vmatpush1.msra.mxu1 %v7644_v43  ;;  %5494 = vmatprep.subr.mxu0 %v8955_v41 }
 0x811   :  { %2674 = vmatprep.subr.mxu1 %v7650_v11  ;;  %5495 = vmatpush3.msra.mxu0 %v7812_v14 }
 0x812   :  { %2675 = vmatpush1.msra.mxu1 %v7656_v12  ;;  %5496 = vmatprep.subr.mxu0 %v8955_v41 }
 0x813   :  { %2676 = vmatprep.subr.mxu1 %v7662_v13  ;;  %5497 = vmatpush3.msra.mxu0 %v7819_v45  ;;  %v9007_v45 = vld [vmem:[#allocation24_spill] sm:$0xff] }
 0x814   :  { %2677 = vmatpush1.msra.mxu1 %v7668_v18  ;;  %5498 = vmatprep.subr.mxu0 %v8955_v41 }
 0x815   :  { %2678 = vmatprep.subr.mxu1 %v7674_v48  ;;  %5499 = vmatpush3.msra.mxu0 %v7826_v51 }
 0x816   :  { %2679 = vmatpush1.msra.mxu1 %v7680_v52  ;;  %5503 = vmatprep.subr.mxu0 %v8955_v41 }
 0x817   :  { %2680 = vmatprep.subr.mxu1 %v7686_v7 }
 0x818   :  { %2681 = vmatpush1.msra.mxu1 %v7692_v23 }
 0x819   :  { %2682 = vmatprep.subr.mxu1 %v7698_v25 }
 0x81a   :  { %2683 = vmatpush1.msra.mxu1 %v7704_v8 }
 0x81b   :  { %2684 = vmatprep.subr.mxu1 %v7710_v26 }
 0x81c   :  { %2685 = vmatpush1.msra.mxu1 %v7715_v34 }
 0x81d   :  { %2869 = vmatprep.subr.mxu1 %v7530_v63 }
 0x88a   :  { %v2179_v22 = vpop.f32.mrf.mxu1  ;;  %v2250_v1 = vpop.f32.mrf.mxu0 }
 0x88b   :  { %v2254_v15 = vadd.f32 %v2179_v22, %v9005_v21  ;;  %v2268_v51 = vadd.f32 %v7262_v9, %v2250_v1  ;;  %v7844_v9 = vld [vmem:[%s8848_s1 + $0x8] sm:$0xff] }
 0x88c   :  { %v5423_v20 = vpop.f32.mrf.mxu0  ;;  %v2181_v59 = vpop.f32.mrf.mxu1 }
 0x88d   :  { %v4726_v24 = vmul.f32 -1.442695, %v2254_v15  ;;  %v2261_v35 = vadd.f32 %v2181_v59, %v9006_v38 }
 0x88f   :  { %5880 = vpow2.f32 %v4726_v24  ;;  %v4727_v17 = vmul.f32 -1.442695, %v2261_v35 }
 0x891   :  { %5882 = vpow2.f32 %v4727_v17 }
 0x89c   :  { %v5881_v50 = vpop.eup %5880 }
 0x89d   :  { %v2258_v57 = vadd.f32 1.0, %v5881_v50 }
 0x89e   :  { %v5883_v16 = vpop.eup %5882 }
 0x89f   :  { %5884 = vrcp.f32 %v2258_v57  ;;  %v2265_v63 = vadd.f32 1.0, %v5883_v16 }
 0x8a1   :  { %5886 = vrcp.f32 %v2265_v63  ;;  %v9009_v63 = vld [vmem:[#allocation18_spill] sm:$0xff] }
 0x8ac   :  { %v5885_v34 = vpop.eup %5884 }
 0x8ad   :  { %v2269_v26 = vmul.f32 %v5885_v34, %v2268_v51  ;;  %v9011_v34 = vld [vmem:[#allocation21_spill] sm:$0xff]  ;;  %v2418_v51 = vpop.f32.mrf.mxu1 }
 0x8ae   :  { %v5887_v21 = vpop.eup %5886 }
 0x8af   :  { %v2270_v22 = vadd.f32 %v2269_v26, %v9007_v45  ;;  %v2272_v15 = vsub.f32 1.0, %v5887_v21  ;;  %v2274_v59 = vmul.f32 %v5887_v21, %v7362_v62  ;;  %v9008_v62 = vld [vmem:[#allocation17_spill] sm:$0xff]  ;;  %v9010_v26 = vld [vmem:[#allocation19_spill] sm:$0xff]  ;;  %v9012_v45 = vld [vmem:[#allocation16_spill] sm:$0xff]  ;;  %v2420_v1 = vpop.f32.mrf.mxu1  ;;  %v7929_v21 = vpop.f32.mrf.mxu0 }
 0x8b0   :  { %9019 = vst [vmem:[#allocation11_spill] sm:$0xff] %v7929_v21 }
 0x8b1   :  { %5888 = vtanh.f32 %v2270_v22  ;;  %v7917_v35 = vpop.f32.mrf.mxu1 }
 0x8b2   :  { %9013 = vst [vmem:[#allocation23_spill] sm:$0xff] %v7917_v35 }
 0x8b3   :  { %v7919_v17 = vpop.f32.mrf.mxu1 }
 0x8b4   :  { %9014 = vst [vmem:[#allocation15_spill] sm:$0xff] %v7919_v17 }
 0x8b5   :  { %v7921_v50 = vpop.f32.mrf.mxu1 }
 0x8b6   :  { %9015 = vst [vmem:[#allocation7_spill] sm:$0xff] %v7921_v50 }
 0x8b7   :  { %v7923_v57 = vpop.f32.mrf.mxu1 }
 0x8b8   :  { %9016 = vst [vmem:[#allocation25_spill] sm:$0xff] %v7923_v57 }
 0x8b9   :  { %v7925_v16 = vpop.f32.mrf.mxu1 }
 0x8ba   :  { %9017 = vst [vmem:[#allocation27_spill] sm:$0xff] %v7925_v16 }
 0x8bb   :  { %v7927_v22 = vpop.f32.mrf.mxu1 }
 0x8bc   :  { %9018 = vst [vmem:[#allocation22_spill] sm:$0xff] %v7927_v22  ;;  %v2335_v22 = vld [vmem:[%s8854_s10] sm:$0x7] }
 0x8be   :  { %v5889_v20 = vpop.eup %5888 }
 0x8bf   :  { %v2273_v24 = vmul.f32 %v5889_v20, %v2272_v15  ;;  %v7931_v15 = vpop.f32.mrf.mxu1  ;;  %v2531_v20 = vpop.f32.mrf.mxu0 }
 0x8c0   :  { %9020 = vst [vmem:[#allocation10_spill] sm:$0xff] %v7931_v15 }
 0x8c1   :  { %v2275_v38 = vadd.f32 %v2274_v59, %v2273_v24  ;;  %v7933_v24 = vpop.f32.mrf.mxu1  ;;  %v7935_v59 = vpop.f32.mrf.mxu0 }
 0x8c2   :  { %9021 = vst [vmem:[#allocation8_spill] sm:$0xff] %v7933_v24  ;;  %9022 = vst [vmem:[#allocation14_spill] sm:$0xff] %v7935_v59  ;;  %v9030_v24 = vld [vmem:[#allocation12_spill] sm:$0xff] }
 0x8c3   :  { %2459 = vmatmul.mubr.f32.gmra.mxu1 %v2275_v38  ;;  %5466 = vmatmul.mubr.f32.gmra.mxu0 %v2275_v38  ;;  %2278 = vst [vmem:[%s8853_s17] sm:$0xff] %v2275_v38  ;;  %v7937_v38 = vpop.f32.mrf.mxu1  ;;  %v7939_v17 = vpop.f32.mrf.mxu0  ;;  %v9031_v59 = vsub.s32 0, %v9030_v24 }
 0x8c4   :  { %2718 = vmatprep.mubr.f32.mxu1 %v8955_v41  ;;  %5500 = vmatprep.mubr.msk.f32.mxu0 %vm6005_vm3, %v8955_v41  ;;  %9023 = vst [vmem:[#allocation28_spill] sm:$0xff] %v7937_v38  ;;  %9024 = vst [vmem:[#allocation29_spill] sm:$0xff] %v7939_v17 }
 0x8c5   :  { %v7941_v50 = vpop.f32.mrf.mxu1  ;;  %v7943_v57 = vpop.f32.mrf.mxu0  ;;  %v7956_v35 = vrot.slane %v2335_v22, %v9031_v59 }
 0x8c6   :  { %9025 = vst [vmem:[#allocation20_spill] sm:$0xff] %v7941_v50  ;;  %9026 = vst [vmem:[#allocation30_spill] sm:$0xff] %v7943_v57 }
 0x8c7   :  { %2719 = vmatmul.mubr.f32.vlgmr.msra.gmra.mxu1 %v7844_v9  ;;  %5501 = vmatmul.mubr.f32.vlgmr.msra.gmra.mxu0 %v7844_v9  ;;  %v7945_v16 = vpop.f32.mrf.mxu1  ;;  %v7950_v15 = vpop.f32.mrf.mxu0  ;;  %9032 = vst [vmem:[#allocation6_spill] sm:$0xff] %v7956_v35 }
 0x8c8   :  { %2870 = vmatpush1.msra.mxu1 %v7536_v39  ;;  %5504 = vmatpush3.msra.mxu0 %v7720_v40  ;;  %9027 = vst [vmem:[#allocation31_spill] sm:$0xff] %v7945_v16  ;;  %9028 = vst [vmem:[#allocation26_spill] sm:$0xff] %v7950_v15  ;;  %v2419_v16 = vadd.f32 %v2418_v51, %v7956_v35  ;;  %v9037_v15 = vsub.s32 1, %v9030_v24  ;;  %v7975_v35 = vld [vmem:[%s8855_s11] ss:$0 sm:$0xff] }
 0x8c9   :  { %2871 = vmatprep.subr.mxu1 %v7542_v10  ;;  %5505 = vmatprep.subr.mxu0 %v8955_v41  ;;  %v7952_v21 = vpop.f32.mrf.mxu1 }
 0x8ca   :  { %2872 = vmatpush1.msra.mxu1 %v7548_v6  ;;  %5506 = vmatpush3.msra.mxu0 %v7727_v47  ;;  %9029 = vst [vmem:[#allocation34_spill] sm:$0xff] %v7952_v21 }
 0x8cb   :  { %2873 = vmatprep.subr.mxu1 %v7554_v19  ;;  %5507 = vmatprep.subr.mxu0 %v8955_v41 }
 0x8cc   :  { %2874 = vmatpush1.msra.mxu1 %v7560_v53  ;;  %5508 = vmatpush3.msra.mxu0 %v7734_v42 }
 0x8cd   :  { %2875 = vmatprep.subr.mxu1 %v7566_v54  ;;  %5509 = vmatprep.subr.mxu0 %v8955_v41 }
 0x8ce   :  { %2876 = vmatpush1.msra.mxu1 %v7572_v55  ;;  %5510 = vmatpush3.msra.mxu0 %v7742_v36 }
 0x8cf   :  { %2877 = vmatprep.subr.mxu1 %v7578_v56  ;;  %5511 = vmatprep.subr.mxu0 %v8955_v41 }
 0x8d0   :  { %2878 = vmatpush1.msra.mxu1 %v7584_v58  ;;  %5512 = vmatpush3.msra.mxu0 %v7749_v46 }
 0x8d1   :  { %2879 = vmatprep.subr.mxu1 %v7590_v60  ;;  %5513 = vmatprep.subr.mxu0 %v8955_v41 }
 0x8d2   :  { %2880 = vmatpush1.msra.mxu1 %v7596_v61  ;;  %5514 = vmatpush3.msra.mxu0 %v7756_v28 }
 0x8d3   :  { %2881 = vmatprep.subr.mxu1 %v7602_v0  ;;  %5515 = vmatprep.subr.mxu0 %v8955_v41 }
 0x8d4   :  { %2882 = vmatpush1.msra.mxu1 %v7608_v2  ;;  %5516 = vmatpush3.msra.mxu0 %v7763_v27 }
 0x8d5   :  { %2883 = vmatprep.subr.mxu1 %v7614_v3  ;;  %5517 = vmatprep.subr.mxu0 %v8955_v41 }
 0x8d6   :  { %2884 = vmatpush1.msra.mxu1 %v7620_v4  ;;  %5518 = vmatpush3.msra.mxu0 %v7770_v29 }
 0x8d7   :  { %2885 = vmatprep.subr.mxu1 %v7626_v5  ;;  %5519 = vmatprep.subr.mxu0 %v8955_v41 }
 0x8d8   :  { %2886 = vmatpush1.msra.mxu1 %v7632_v44  ;;  %5520 = vmatpush3.msra.mxu0 %v7777_v30 }
 0x8d9   :  { %2887 = vmatprep.subr.mxu1 %v7638_v37  ;;  %5521 = vmatprep.subr.mxu0 %v8955_v41 }
 0x8da   :  { %2888 = vmatpush1.msra.mxu1 %v7644_v43  ;;  %5522 = vmatpush3.msra.mxu0 %v7784_v31 }
 0x8db   :  { %2889 = vmatprep.subr.mxu1 %v7650_v11  ;;  %5523 = vmatprep.subr.mxu0 %v8955_v41 }
 0x8dc   :  { %2890 = vmatpush1.msra.mxu1 %v7656_v12  ;;  %5524 = vmatpush3.msra.mxu0 %v7791_v32 }
 0x8dd   :  { %2891 = vmatprep.subr.mxu1 %v7662_v13  ;;  %5525 = vmatprep.subr.mxu0 %v8955_v41 }
 0x8de   :  { %2892 = vmatpush1.msra.mxu1 %v7668_v18  ;;  %5526 = vmatpush3.msra.mxu0 %v7798_v33 }
 0x8df   :  { %2893 = vmatprep.subr.mxu1 %v7674_v48  ;;  %5527 = vmatprep.subr.mxu0 %v8955_v41 }
 0x8e0   :  { %2894 = vmatpush1.msra.mxu1 %v7680_v52  ;;  %5528 = vmatpush3.msra.mxu0 %v7805_v49 }
 0x8e1   :  { %2895 = vmatprep.subr.mxu1 %v7686_v7  ;;  %5529 = vmatprep.subr.mxu0 %v8955_v41 }
 0x8e2   :  { %2896 = vmatpush1.msra.mxu1 %v7692_v23  ;;  %5530 = vmatpush3.msra.mxu0 %v7812_v14 }
 0x8e3   :  { %2897 = vmatprep.subr.mxu1 %v7698_v25  ;;  %5531 = vmatprep.subr.mxu0 %v8955_v41 }
 0x8e4   :  { %2898 = vmatpush1.msra.mxu1 %v7704_v8  ;;  %5532 = vmatpush3.msra.mxu0 %v9008_v62 }
 0x8e5   :  { %2899 = vmatprep.subr.mxu1 %v9009_v63  ;;  %5533 = vmatprep.subr.mxu0 %v8955_v41 }
 0x8e6   :  { %2900 = vmatpush1.msra.mxu1 %v9010_v26  ;;  %2933 = vmatprep.mubr.f32.mxu1 %v8955_v41  ;;  %v7969_v26 = vrot.slane %v2335_v22, %v9037_v15 }
 0x8e7   :  { %5534 = vmatpush3.msra.mxu0 %v9011_v34  ;;  %5535 = vmatprep.mubr.msk.f32.mxu0 %vm6005_vm3, %v8955_v41 }
 0x8e8   :  { %3085 = vmatprep.subr.mxu1 %v9012_v45  ;;  %5538 = vmatprep.subr.mxu0 %v8955_v41 }
 0x983   :  { %v7958_v38 = vpop.f32.mrf.mxu1  ;;  %v7960_v17 = vpop.f32.mrf.mxu0 }
 0x984   :  { %9033 = vst [vmem:[#allocation9_spill] sm:$0xff] %v7958_v38  ;;  %9034 = vst [vmem:[#allocation32_spill] sm:$0xff] %v7960_v17  ;;  %v2421_v38 = vadd.f32 %v2420_v1, %v7969_v26 }
 0x985   :  { %v7962_v50 = vpop.f32.mrf.mxu1  ;;  %v7964_v57 = vpop.f32.mrf.mxu0 }
 0x986   :  { %9035 = vst [vmem:[#allocation33_spill] sm:$0xff] %v7962_v50  ;;  %9036 = vst [vmem:[#allocation24_spill] sm:$0xff] %v7964_v57 }
 0x987   :  { %v2720_v45 = vpop.f32.mrf.mxu1  ;;  %v2791_v34 = vpop.f32.mrf.mxu0 }
 0x988   :  { %v2795_v21 = vadd.f32 %v2720_v45, %v2419_v16  ;;  %v9038_v45 = vsub.s32 2, %v9030_v24  ;;  %v9044_v24 = vld [vmem:[#allocation21_spill] sm:$0xff] }
 0x989   :  { %v5502_v63 = vpop.f32.mrf.mxu0  ;;  %v2722_v62 = vpop.f32.mrf.mxu1 }
 0x98a   :  { %v4730_v59 = vmul.f32 -1.442695, %v2795_v21  ;;  %v2802_v17 = vadd.f32 %v2722_v62, %v2421_v38  ;;  %v2809_v63 = vadd.f32 %v7975_v35, %v2791_v34  ;;  %v7980_v16 = vrot.slane %v2335_v22, %v9038_v45  ;;  %v9041_v34 = vld [vmem:[#allocation17_spill] sm:$0xff]  ;;  %v9042_v22 = vld [vmem:[#allocation18_spill] sm:$0xff]  ;;  %v9047_v45 = vld [vmem:[#allocation23_spill] sm:$0xff] }
 0x98c   :  { %5890 = vpow2.f32 %v4730_v59  ;;  %v4731_v8 = vmul.f32 -1.442695, %v2802_v17  ;;  %v2532_v62 = vadd.f32 %v2531_v20, %v7980_v16  ;;  %v9043_v20 = vld [vmem:[#allocation19_spill] sm:$0xff] }
 0x98e   :  { %5892 = vpow2.f32 %v4731_v8 }
 0x999   :  { %v5891_v50 = vpop.eup %5890 }
 0x99a   :  { %v2799_v57 = vadd.f32 1.0, %v5891_v50 }
 0x99b   :  { %v5893_v51 = vpop.eup %5892 }
 0x99c   :  { %5894 = vrcp.f32 %v2799_v57  ;;  %v2806_v15 = vadd.f32 1.0, %v5893_v51 }
 0x99e   :  { %5896 = vrcp.f32 %v2806_v15  ;;  %v9045_v15 = vld [vmem:[#allocation16_spill] sm:$0xff] }
 0x9a9   :  { %v5895_v1 = vpop.eup %5894 }
 0x9aa   :  { %v2810_v8 = vmul.f32 %v5895_v1, %v2809_v63  ;;  %v9046_v63 = vld [vmem:[#allocation6_spill] sm:$0xff] }
 0x9ab   :  { %v5897_v50 = vpop.eup %5896  ;;  %v2425_v1 = vadd.f32 %v9047_v45, %v9046_v63 }
 0x9ac   :  { %v2811_v17 = vadd.f32 %v2810_v8, %v2532_v62  ;;  %v2813_v57 = vsub.f32 1.0, %v5897_v50  ;;  %v2815_v59 = vmul.f32 %v5897_v50, %v7844_v9  ;;  %v9040_v9 = vld [vmem:[#allocation13_spill] sm:$0xff] }
 0x9ae   :  { %5898 = vtanh.f32 %v2811_v17 }
 0x9bb   :  { %v5899_v21 = vpop.eup %5898 }
 0x9bc   :  { %v2814_v38 = vmul.f32 %v5899_v21, %v2813_v57 }
 0x9be   :  { %v7984_v51 = vadd.f32 %v2815_v59, %v2814_v38  ;;  %v9048_v38 = vld [vmem:[#allocation15_spill] sm:$0xff] }
 0x9bf   :  { %v2427_v59 = vadd.f32 %v9048_v38, %v7969_v26 }
 0x9c0   :  { %9039 = vst [vmem:[#allocation12_spill] sm:$0xff] %v7984_v51  ;;  %2934 = vmatmul.mubr.f32.vlgmr.msra.gmra.mxu1 %v7984_v51  ;;  %5536 = vmatmul.mubr.f32.vlgmr.msra.gmra.mxu0 %v7984_v51 }
 0x9c1   :  { %3086 = vmatpush1.msra.mxu1 %v7536_v39  ;;  %5539 = vmatpush3.msra.mxu0 %v7720_v40 }
 0x9c2   :  { %3087 = vmatprep.subr.mxu1 %v7542_v10  ;;  %5540 = vmatprep.subr.mxu0 %v8955_v41 }
 0x9c3   :  { %3088 = vmatpush1.msra.mxu1 %v7548_v6  ;;  %5541 = vmatpush3.msra.mxu0 %v7727_v47 }
 0x9c4   :  { %3089 = vmatprep.subr.mxu1 %v7554_v19  ;;  %5542 = vmatprep.subr.mxu0 %v8955_v41 }
 0x9c5   :  { %3090 = vmatpush1.msra.mxu1 %v7560_v53  ;;  %5543 = vmatpush3.msra.mxu0 %v7734_v42 }
 0x9c6   :  { %3091 = vmatprep.subr.mxu1 %v7566_v54  ;;  %5544 = vmatprep.subr.mxu0 %v8955_v41 }
 0x9c7   :  { %3092 = vmatpush1.msra.mxu1 %v7572_v55  ;;  %5545 = vmatpush3.msra.mxu0 %v7742_v36 }
 0x9c8   :  { %3093 = vmatprep.subr.mxu1 %v7578_v56  ;;  %5546 = vmatprep.subr.mxu0 %v8955_v41 }
 0x9c9   :  { %3094 = vmatpush1.msra.mxu1 %v7584_v58  ;;  %5547 = vmatpush3.msra.mxu0 %v7749_v46 }
 0x9ca   :  { %3095 = vmatprep.subr.mxu1 %v7590_v60  ;;  %5548 = vmatprep.subr.mxu0 %v8955_v41 }
 0x9cb   :  { %3096 = vmatpush1.msra.mxu1 %v7596_v61  ;;  %5549 = vmatpush3.msra.mxu0 %v7756_v28 }
 0x9cc   :  { %3097 = vmatprep.subr.mxu1 %v7602_v0  ;;  %5550 = vmatprep.subr.mxu0 %v8955_v41 }
 0x9cd   :  { %3098 = vmatpush1.msra.mxu1 %v7608_v2  ;;  %5551 = vmatpush3.msra.mxu0 %v7763_v27 }
 0x9ce   :  { %3099 = vmatprep.subr.mxu1 %v7614_v3  ;;  %5552 = vmatprep.subr.mxu0 %v8955_v41 }
 0x9cf   :  { %3100 = vmatpush1.msra.mxu1 %v7620_v4  ;;  %5553 = vmatpush3.msra.mxu0 %v7770_v29 }
 0x9d0   :  { %3101 = vmatprep.subr.mxu1 %v7626_v5  ;;  %5554 = vmatprep.subr.mxu0 %v8955_v41 }
 0x9d1   :  { %3102 = vmatpush1.msra.mxu1 %v7632_v44  ;;  %5555 = vmatpush3.msra.mxu0 %v7777_v30 }
 0x9d2   :  { %3103 = vmatprep.subr.mxu1 %v7638_v37  ;;  %5556 = vmatprep.subr.mxu0 %v8955_v41 }
 0x9d3   :  { %3104 = vmatpush1.msra.mxu1 %v7644_v43  ;;  %5557 = vmatpush3.msra.mxu0 %v7784_v31 }
 0x9d4   :  { %3105 = vmatprep.subr.mxu1 %v7650_v11  ;;  %5558 = vmatprep.subr.mxu0 %v8955_v41 }
 0x9d5   :  { %3106 = vmatpush1.msra.mxu1 %v7656_v12  ;;  %5559 = vmatpush3.msra.mxu0 %v7791_v32 }
 0x9d6   :  { %3107 = vmatprep.subr.mxu1 %v7662_v13  ;;  %5560 = vmatprep.subr.mxu0 %v8955_v41 }
 0x9d7   :  { %3108 = vmatpush1.msra.mxu1 %v7668_v18  ;;  %5561 = vmatpush3.msra.mxu0 %v7798_v33 }
 0x9d8   :  { %3109 = vmatprep.subr.mxu1 %v7674_v48  ;;  %5562 = vmatprep.subr.mxu0 %v8955_v41 }
 0x9d9   :  { %3110 = vmatpush1.msra.mxu1 %v7680_v52  ;;  %5563 = vmatpush3.msra.mxu0 %v7805_v49 }
 0x9da   :  { %3111 = vmatprep.subr.mxu1 %v7686_v7  ;;  %5564 = vmatprep.subr.mxu0 %v8955_v41 }
 0x9db   :  { %3112 = vmatpush1.msra.mxu1 %v7692_v23  ;;  %5565 = vmatpush3.msra.mxu0 %v7812_v14 }
 0x9dc   :  { %3113 = vmatprep.subr.mxu1 %v7698_v25  ;;  %5566 = vmatprep.subr.mxu0 %v8955_v41 }
 0x9dd   :  { %3114 = vmatpush1.msra.mxu1 %v9040_v9  ;;  %5567 = vmatpush3.msra.mxu0 %v9041_v34 }
 0x9de   :  { %3115 = vmatprep.subr.mxu1 %v9042_v22  ;;  %5568 = vmatprep.subr.mxu0 %v8955_v41 }
 0x9df   :  { %3116 = vmatpush1.msra.mxu1 %v9043_v20  ;;  %3149 = vmatprep.mubr.f32.mxu1 %v8955_v41 }
 0x9e0   :  { %5569 = vmatpush3.msra.mxu0 %v9044_v24  ;;  %5570 = vmatprep.mubr.msk.f32.mxu0 %vm6005_vm3, %v8955_v41 }
 0x9e1   :  { %3301 = vmatprep.subr.mxu1 %v9045_v15  ;;  %5573 = vmatprep.subr.mxu0 %v8955_v41 }
 0xa80   :  { %v2935_v62 = vpop.f32.mrf.mxu1  ;;  %v3006_v8 = vpop.f32.mrf.mxu0 }
 0xa81   :  { %v3010_v17 = vadd.f32 %v2935_v62, %v2425_v1  ;;  %v3024_v45 = vadd.f32 %v7975_v35, %v3006_v8  ;;  %v9049_v1 = vld [vmem:[#allocation11_spill] sm:$0xff]  ;;  %v8227_v8 = vld [vmem:[%s8852_s9 + $0xf0] sm:$0xff] }
 0xa82   :  { %v5537_v50 = vpop.f32.mrf.mxu0  ;;  %v2937_v21 = vpop.f32.mrf.mxu1  ;;  %v2537_v62 = vadd.f32 %v9049_v1, %v7980_v16  ;;  %v8251_v1 = vld [vmem:[%s8852_s9 + $0xe8] sm:$0xff] }
 0xa83   :  { %v4732_v57 = vmul.f32 -1.442695, %v3010_v17  ;;  %v3017_v24 = vadd.f32 %v2937_v21, %v2427_v59  ;;  %v8232_v59 = vld [vmem:[%s8852_s9 + $0x100] sm:$0xff] }
 0xa85   :  { %5900 = vpow2.f32 %v4732_v57  ;;  %v4733_v20 = vmul.f32 -1.442695, %v3017_v24 }
 0xa87   :  { %5902 = vpow2.f32 %v4733_v20 }
 0xa92   :  { %v5901_v22 = vpop.eup %5900 }
 0xa93   :  { %v3014_v15 = vadd.f32 1.0, %v5901_v22 }
 0xa94   :  { %v5903_v34 = vpop.eup %5902 }
 0xa95   :  { %5904 = vrcp.f32 %v3014_v15  ;;  %v3021_v9 = vadd.f32 1.0, %v5903_v34  ;;  %v8215_v34 = vld [vmem:[%s8852_s9 + $0x108] sm:$0xff]  ;;  %v8239_v15 = vld [vmem:[%s8852_s9 + $0xe0] sm:$0xff] }
 0xa97   :  { %5906 = vrcp.f32 %v3021_v9  ;;  %v8209_v9 = vld [vmem:[%s8852_s9 + $0x110] sm:$0xff] }
 0xaa2   :  { %v5905_v63 = vpop.eup %5904 }
 0xaa3   :  { %v3025_v17 = vmul.f32 %v5905_v63, %v3024_v45  ;;  %v8221_v63 = vld [vmem:[%s8852_s9 + $0xf8] sm:$0xff] }
 0xaa4   :  { %v5907_v38 = vpop.eup %5906  ;;  %v8246_v45 = vld [vmem:[%s8852_s9 + $0xd8] sm:$0xff] }
 0xaa5   :  { %v3026_v50 = vadd.f32 %v3025_v17, %v2537_v62  ;;  %v3028_v57 = vsub.f32 1.0, %v5907_v38  ;;  %v3030_v20 = vmul.f32 %v5907_v38, %v7984_v51  ;;  %v8256_v62 = vld [vmem:[%s8852_s9 + $0xc8] sm:$0xff]  ;;  %v8263_v17 = vld [vmem:[%s8852_s9 + $0xc0] sm:$0xff]  ;;  %v8273_v38 = vld [vmem:[%s8852_s9 + $0xb0] sm:$0xff] }
 0xaa7   :  { %5908 = vtanh.f32 %v3026_v50  ;;  %v8268_v50 = vld [vmem:[%s8852_s9 + $0xd0] sm:$0xff] }
 0xab4   :  { %v5909_v21 = vpop.eup %5908 }
 0xab5   :  { %v3029_v24 = vmul.f32 %v5909_v21, %v3028_v57  ;;  %v8280_v57 = vld [vmem:[%s8852_s9 + $0xa8] sm:$0xff]  ;;  %v8285_v21 = vld [vmem:[%s8852_s9 + $0xb8] sm:$0xff] }
 0xab7   :  { %v8063_v22 = vadd.f32 %v3030_v20, %v3029_v24  ;;  %v8292_v24 = vld [vmem:[%s8852_s9 + $0x98] sm:$0xff]  ;;  %v8299_v20 = vld [vmem:[%s8852_s9 + $0x90] sm:$0xff] }
 0xab9   :  { %9050 = vst [vmem:[#allocation16_spill] sm:$0xff] %v8063_v22  ;;  %3150 = vmatmul.mubr.f32.vlgmr.msra.gmra.mxu1 %v8063_v22  ;;  %5571 = vmatmul.mubr.f32.vlgmr.msra.gmra.mxu0 %v8063_v22 }
 0xaba   :  { %3302 = vmatpush1.msra.mxu1 %v7536_v39  ;;  %5574 = vmatpush3.msra.mxu0 %v7720_v40  ;;  %v9051_v39 = vld [vmem:[#allocation13_spill] sm:$0xff] }
 0xabb   :  { %3303 = vmatprep.subr.mxu1 %v7542_v10  ;;  %5575 = vmatprep.subr.mxu0 %v8955_v41  ;;  %v9052_v10 = vld [vmem:[#allocation17_spill] sm:$0xff] }
 0xabc   :  { %3304 = vmatpush1.msra.mxu1 %v7548_v6  ;;  %5576 = vmatpush3.msra.mxu0 %v7727_v47  ;;  %v9053_v6 = vld [vmem:[#allocation18_spill] sm:$0xff] }
 0xabd   :  { %3305 = vmatprep.subr.mxu1 %v7554_v19  ;;  %5577 = vmatprep.subr.mxu0 %v8955_v41  ;;  %v9054_v19 = vld [vmem:[#allocation19_spill] sm:$0xff] }
 0xabe   :  { %3306 = vmatpush1.msra.mxu1 %v7560_v53  ;;  %5578 = vmatpush3.msra.mxu0 %v7734_v42  ;;  %v9055_v53 = vld [vmem:[#allocation21_spill] sm:$0xff] }
 0xabf   :  { %3307 = vmatprep.subr.mxu1 %v7566_v54  ;;  %5579 = vmatprep.subr.mxu0 %v8955_v41  ;;  %v9056_v54 = vld [vmem:[#allocation6_spill] sm:$0xff] }
 0xac0   :  { %3308 = vmatpush1.msra.mxu1 %v7572_v55  ;;  %5580 = vmatpush3.msra.mxu0 %v7742_v36  ;;  %v9057_v55 = vld [vmem:[#allocation7_spill] sm:$0xff] }
 0xac1   :  { %3309 = vmatprep.subr.mxu1 %v7578_v56  ;;  %5581 = vmatprep.subr.mxu0 %v8955_v41  ;;  %v2431_v56 = vadd.f32 %v9057_v55, %v9056_v54  ;;  %v8337_v55 = vld [vmem:[%s8852_s9 + $0x60] sm:$0xff] }
 0xac2   :  { %3310 = vmatpush1.msra.mxu1 %v7584_v58  ;;  %5582 = vmatpush3.msra.mxu0 %v7749_v46 }
 0xac3   :  { %3311 = vmatprep.subr.mxu1 %v7590_v60  ;;  %5583 = vmatprep.subr.mxu0 %v8955_v41 }
 0xac4   :  { %3312 = vmatpush1.msra.mxu1 %v7596_v61  ;;  %5584 = vmatpush3.msra.mxu0 %v7756_v28 }
 0xac5   :  { %3313 = vmatprep.subr.mxu1 %v7602_v0  ;;  %5585 = vmatprep.subr.mxu0 %v8955_v41 }
 0xac6   :  { %3314 = vmatpush1.msra.mxu1 %v7608_v2  ;;  %5586 = vmatpush3.msra.mxu0 %v7763_v27 }
 0xac7   :  { %3315 = vmatprep.subr.mxu1 %v7614_v3  ;;  %5587 = vmatprep.subr.mxu0 %v8955_v41 }
 0xac8   :  { %3316 = vmatpush1.msra.mxu1 %v7620_v4  ;;  %5588 = vmatpush3.msra.mxu0 %v7770_v29  ;;  %v9058_v4 = vld [vmem:[#allocation25_spill] sm:$0xff] }
 0xac9   :  { %3317 = vmatprep.subr.mxu1 %v7626_v5  ;;  %5589 = vmatprep.subr.mxu0 %v8955_v41  ;;  %v2433_v5 = vadd.f32 %v9058_v4, %v7969_v26  ;;  %v8387_v4 = vld [vmem:[%s8852_s9 + $0x20] sm:$0xff] }
 0xaca   :  { %3318 = vmatpush1.msra.mxu1 %v7632_v44  ;;  %5590 = vmatpush3.msra.mxu0 %v7777_v30 }
 0xacb   :  { %3319 = vmatprep.subr.mxu1 %v7638_v37  ;;  %5591 = vmatprep.subr.mxu0 %v8955_v41 }
 0xacc   :  { %3320 = vmatpush1.msra.mxu1 %v7644_v43  ;;  %5592 = vmatpush3.msra.mxu0 %v7784_v31 }
 0xacd   :  { %3321 = vmatprep.subr.mxu1 %v7650_v11  ;;  %5593 = vmatprep.subr.mxu0 %v8955_v41 }
 0xace   :  { %3322 = vmatpush1.msra.mxu1 %v7656_v12  ;;  %5594 = vmatpush3.msra.mxu0 %v7791_v32 }
 0xacf   :  { %3323 = vmatprep.subr.mxu1 %v7662_v13  ;;  %5595 = vmatprep.subr.mxu0 %v8955_v41 }
 0xad0   :  { %3324 = vmatpush1.msra.mxu1 %v7668_v18  ;;  %5596 = vmatpush3.msra.mxu0 %v7798_v33  ;;  %v8191_v33 = vld [vmem:[%s8852_s9 + $0x138] sm:$0xff] }
 0xad1   :  { %3325 = vmatprep.subr.mxu1 %v7674_v48  ;;  %5597 = vmatprep.subr.mxu0 %v8955_v41 }
 0xad2   :  { %3326 = vmatpush1.msra.mxu1 %v7680_v52  ;;  %5598 = vmatpush3.msra.mxu0 %v7805_v49  ;;  %v9059_v52 = vld [vmem:[#allocation29_spill] sm:$0xff]  ;;  %v8197_v49 = vld [vmem:[%s8852_s9 + $0x128] sm:$0xff] }
 0xad3   :  { %3327 = vmatprep.subr.mxu1 %v7686_v7  ;;  %5599 = vmatprep.subr.mxu0 %v8955_v41  ;;  %v2542_v7 = vadd.f32 %v9059_v52, %v7980_v16 }
 0xad4   :  { %3328 = vmatpush1.msra.mxu1 %v7692_v23  ;;  %5600 = vmatpush3.msra.mxu0 %v7812_v14  ;;  %v8203_v14 = vld [vmem:[%s8852_s9 + $0x120] sm:$0xff] }
 0xad5   :  { %3329 = vmatprep.subr.mxu1 %v7698_v25  ;;  %5601 = vmatprep.subr.mxu0 %v8955_v41 }
 0xad6   :  { %3330 = vmatpush1.msra.mxu1 %v9051_v39  ;;  %5602 = vmatpush3.msra.mxu0 %v9052_v10  ;;  %v8304_v39 = vld [vmem:[%s8852_s9 + $0xa0] sm:$0xff] }
 0xad7   :  { %3331 = vmatprep.subr.mxu1 %v9053_v6  ;;  %5603 = vmatprep.subr.mxu0 %v8955_v41  ;;  %v8311_v10 = vld [vmem:[%s8852_s9 + $0x80] sm:$0xff]  ;;  %v8318_v6 = vld [vmem:[%s8852_s9 + $0x78] sm:$0xff] }
 0xad8   :  { %3332 = vmatpush1.msra.mxu1 %v9054_v19  ;;  %3365 = vmatprep.mubr.f32.mxu1 %v8955_v41  ;;  %v8323_v19 = vld [vmem:[%s8852_s9 + $0x88] sm:$0xff] }
 0xad9   :  { %5604 = vmatpush3.msra.mxu0 %v9055_v53  ;;  %5605 = vmatprep.mubr.msk.f32.mxu0 %vm6005_vm3, %v8955_v41  ;;  %v8330_v53 = vld [vmem:[%s8852_s9 + $0x68] sm:$0xff] }
 0xada   :  { %5608 = vmatprep.subr.mxu0 %v8955_v41 }
 0xb79   :  { %v3151_v58 = vpop.f32.mrf.mxu1  ;;  %v3222_v60 = vpop.f32.mrf.mxu0 }
 0xb7a   :  { %v3226_v61 = vadd.f32 %v3151_v58, %v2431_v56  ;;  %v3240_v18 = vadd.f32 %v7975_v35, %v3222_v60  ;;  %v8342_v56 = vld [vmem:[%s8852_s9 + $0x70] sm:$0xff]  ;;  %v8356_v60 = vld [vmem:[%s8852_s9 + $0x48] sm:$0xff] }
 0xb7b   :  { %v5572_v0 = vpop.f32.mrf.mxu0  ;;  %v3153_v3 = vpop.f32.mrf.mxu1  ;;  %v8349_v58 = vld [vmem:[%s8852_s9 + $0x50] sm:$0xff] }
 0xb7c   :  { %v4734_v2 = vmul.f32 -1.442695, %v3226_v61  ;;  %v3233_v44 = vadd.f32 %v3153_v3, %v2433_v5  ;;  %v8361_v61 = vld [vmem:[%s8852_s9 + $0x58] sm:$0xff]  ;;  %v8380_v3 = vld [vmem:[%s8852_s9 + $0x40] sm:$0xff] }
 0xb7d   :  { %v8368_v0 = vld [vmem:[%s8852_s9 + $0x38] sm:$0xff] }
 0xb7e   :  { %5910 = vpow2.f32 %v4734_v2  ;;  %v4735_v37 = vmul.f32 -1.442695, %v3233_v44  ;;  %v8375_v2 = vld [vmem:[%s8852_s9 + $0x30] sm:$0xff]  ;;  %v8394_v5 = vld [vmem:[%s8852_s9 + $0x18] sm:$0xff]  ;;  %v8399_v44 = vld [vmem:[%s8852_s9 + $0x28] sm:$0xff] }
 0xb7f   :  { %9062 = vst [vmem:[#allocation11_spill] sm:$0xff] %v8394_v5  ;;  %9063 = vst [vmem:[#allocation13_spill] sm:$0xff] %v8399_v44 }
 0xb80   :  { %5912 = vpow2.f32 %v4735_v37  ;;  %v8406_v37 = vld [vmem:[%s8852_s9 + $0x8] sm:$0xff] }
 0xb81   :  { %9064 = vst [vmem:[#allocation17_spill] sm:$0xff] %v8406_v37 }
 0xb8b   :  { %v5911_v43 = vpop.eup %5910 }
 0xb8c   :  { %v3230_v11 = vadd.f32 1.0, %v5911_v43  ;;  %v8413_v43 = vld [vmem:[%s8852_s9] sm:$0xff] }
 0xb8d   :  { %v5913_v12 = vpop.eup %5912  ;;  %9065 = vst [vmem:[#allocation18_spill] sm:$0xff] %v8413_v43 }
 0xb8e   :  { %5914 = vrcp.f32 %v3230_v11  ;;  %v3237_v13 = vadd.f32 1.0, %v5913_v12  ;;  %v8418_v11 = vld [vmem:[%s8852_s9 + $0x10] sm:$0xff]  ;;  %v9067_v12 = vld [vmem:[#allocation27_spill] sm:$0xff] }
 0xb8f   :  { %9066 = vst [vmem:[#allocation19_spill] sm:$0xff] %v8418_v11 }
 0xb90   :  { %5916 = vrcp.f32 %v3237_v13  ;;  %v2437_v13 = vadd.f32 %v9067_v12, %v9056_v54 }
 0xb9b   :  { %v5915_v48 = vpop.eup %5914 }
 0xb9c   :  { %v3241_v23 = vmul.f32 %v5915_v48, %v3240_v18 }
 0xb9d   :  { %v5917_v28 = vpop.eup %5916 }
 0xb9e   :  { %v3242_v25 = vadd.f32 %v3241_v23, %v2542_v7  ;;  %v3244_v27 = vsub.f32 1.0, %v5917_v28  ;;  %v3246_v31 = vmul.f32 %v5917_v28, %v8063_v22  ;;  %v9068_v28 = vld [vmem:[#allocation22_spill] sm:$0xff] }
 0xba0   :  { %5918 = vtanh.f32 %v3242_v25 }
 0xbad   :  { %v5919_v29 = vpop.eup %5918 }
 0xbae   :  { %v3245_v30 = vmul.f32 %v5919_v29, %v3244_v27  ;;  %v2439_v27 = vadd.f32 %v9068_v28, %v7969_v26 }
 0xbb0   :  { %v8141_v32 = vadd.f32 %v3246_v31, %v3245_v30 }
 0xbb2   :  { %9060 = vst [vmem:[#allocation23_spill] sm:$0xff] %v8141_v32  ;;  %3366 = vmatmul.mubr.f32.vlgmr.msra.gmra.mxu1 %v8141_v32  ;;  %5606 = vmatmul.mubr.f32.vlgmr.msra.gmra.mxu0 %v8141_v32 }
 0xbb3   :  { %5609 = vmatpush3.msra.mxu0 %v7720_v40  ;;  %3581 = vmatprep.mubr.f32.mxu1 %v8955_v41  ;;  %v8161_v40 = vld [vmem:[%s8852_s9 + $0x170] sm:$0xff] }
 0xbb4   :  { %5610 = vmatprep.subr.mxu0 %v8955_v41  ;;  %5640 = vmatprep.mubr.msk.f32.mxu0 %vm6005_vm3, %v8955_v41  ;;  %9061 = vst [vmem:[#allocation15_spill] sm:$0xff] %v8161_v40 }
 0xbb5   :  { %5611 = vmatpush3.msra.mxu0 %v7727_v47  ;;  %3517 = vmatprep.subr.mxu1 %v8161_v40  ;;  %v8167_v47 = vld [vmem:[%s8852_s9 + $0x168] sm:$0xff] }
 0xbb6   :  { %5612 = vmatprep.subr.mxu0 %v8955_v41  ;;  %3518 = vmatpush1.msra.mxu1 %v8167_v47 }
 0xbb7   :  { %5613 = vmatpush3.msra.mxu0 %v7734_v42  ;;  %v8173_v42 = vld [vmem:[%s8852_s9 + $0x158] sm:$0xff] }
 0xbb8   :  { %5614 = vmatprep.subr.mxu0 %v8955_v41  ;;  %3519 = vmatprep.subr.mxu1 %v8173_v42 }
 0xbb9   :  { %5615 = vmatpush3.msra.mxu0 %v7742_v36  ;;  %v8179_v36 = vld [vmem:[%s8852_s9 + $0x150] sm:$0xff] }
 0xbba   :  { %5616 = vmatprep.subr.mxu0 %v8955_v41  ;;  %3520 = vmatpush1.msra.mxu1 %v8179_v36 }
 0xbbb   :  { %5617 = vmatpush3.msra.mxu0 %v7749_v46  ;;  %v8185_v46 = vld [vmem:[%s8852_s9 + $0x140] sm:$0xff] }
 0xbbc   :  { %5618 = vmatprep.subr.mxu0 %v8955_v41  ;;  %3521 = vmatprep.subr.mxu1 %v8185_v46 }
 0xbbd   :  { %3522 = vmatpush1.msra.mxu1 %v8191_v33  ;;  %5619 = vmatpush3.msra.mxu0 %v8232_v59 }
 0xbbe   :  { %3523 = vmatprep.subr.mxu1 %v8197_v49  ;;  %5620 = vmatprep.subr.mxu0 %v8955_v41 }
 0xbbf   :  { %3524 = vmatpush1.msra.mxu1 %v8203_v14  ;;  %5621 = vmatpush3.msra.mxu0 %v8251_v1 }
 0xbc0   :  { %3525 = vmatprep.subr.mxu1 %v8209_v9  ;;  %5622 = vmatprep.subr.mxu0 %v8955_v41 }
 0xbc1   :  { %3526 = vmatpush1.msra.mxu1 %v8215_v34  ;;  %5623 = vmatpush3.msra.mxu0 %v8268_v50 }
 0xbc2   :  { %3527 = vmatprep.subr.mxu1 %v8221_v63  ;;  %5624 = vmatprep.subr.mxu0 %v8955_v41 }
 0xbc3   :  { %3528 = vmatpush1.msra.mxu1 %v8227_v8  ;;  %5625 = vmatpush3.msra.mxu0 %v8285_v21 }
 0xbc4   :  { %3529 = vmatprep.subr.mxu1 %v8239_v15  ;;  %5626 = vmatprep.subr.mxu0 %v8955_v41 }
 0xbc5   :  { %3530 = vmatpush1.msra.mxu1 %v8246_v45  ;;  %5627 = vmatpush3.msra.mxu0 %v8304_v39 }
 0xbc6   :  { %3531 = vmatprep.subr.mxu1 %v8256_v62  ;;  %5628 = vmatprep.subr.mxu0 %v8955_v41 }
 0xbc7   :  { %3532 = vmatpush1.msra.mxu1 %v8263_v17  ;;  %5629 = vmatpush3.msra.mxu0 %v8323_v19 }
 0xbc8   :  { %3533 = vmatprep.subr.mxu1 %v8273_v38  ;;  %5630 = vmatprep.subr.mxu0 %v8955_v41 }
 0xbc9   :  { %3534 = vmatpush1.msra.mxu1 %v8280_v57  ;;  %5631 = vmatpush3.msra.mxu0 %v8342_v56 }
 0xbca   :  { %3535 = vmatprep.subr.mxu1 %v8292_v24  ;;  %5632 = vmatprep.subr.mxu0 %v8955_v41 }
 0xbcb   :  { %3536 = vmatpush1.msra.mxu1 %v8299_v20  ;;  %5633 = vmatpush3.msra.mxu0 %v8361_v61 }
 0xbcc   :  { %3537 = vmatprep.subr.mxu1 %v8311_v10  ;;  %5634 = vmatprep.subr.mxu0 %v8955_v41 }
 0xbcd   :  { %3538 = vmatpush1.msra.mxu1 %v8318_v6  ;;  %5635 = vmatpush3.msra.mxu0 %v8380_v3 }
 0xbce   :  { %3539 = vmatprep.subr.mxu1 %v8330_v53  ;;  %5636 = vmatprep.subr.mxu0 %v8955_v41 }
 0xbcf   :  { %3540 = vmatpush1.msra.mxu1 %v8337_v55  ;;  %5637 = vmatpush3.msra.mxu0 %v8399_v44 }
 0xbd0   :  { %3541 = vmatprep.subr.mxu1 %v8349_v58  ;;  %5638 = vmatprep.subr.mxu0 %v8955_v41 }
 0xbd1   :  { %3542 = vmatpush1.msra.mxu1 %v8356_v60  ;;  %5639 = vmatpush3.msra.mxu0 %v8418_v11 }
 0xbd2   :  { %3543 = vmatprep.subr.mxu1 %v8368_v0  ;;  %5643 = vmatprep.subr.mxu0 %v8955_v41 }
 0xbd3   :  { %3544 = vmatpush1.msra.mxu1 %v8375_v2 }
 0xbd4   :  { %3545 = vmatprep.subr.mxu1 %v8387_v4 }
 0xbd5   :  { %3546 = vmatpush1.msra.mxu1 %v8394_v5 }
 0xbd6   :  { %3547 = vmatprep.subr.mxu1 %v8406_v37 }
 0xbd7   :  { %3548 = vmatpush1.msra.mxu1 %v8413_v43 }
 0xbd8   :  { %3733 = vmatprep.subr.mxu1 %v8161_v40 }
 0xc72   :  { %v3367_v18 = vpop.f32.mrf.mxu1  ;;  %v3438_v48 = vpop.f32.mrf.mxu0 }
 0xc73   :  { %v3442_v52 = vadd.f32 %v3367_v18, %v2437_v13  ;;  %v3456_v12 = vadd.f32 %v7975_v35, %v3438_v48  ;;  %v9069_v13 = vld [vmem:[#allocation14_spill] sm:$0xff]  ;;  %v8506_v48 = vld [vmem:[%s8852_s9 + $0x118] sm:$0xff] }
 0xc74   :  { %v5607_v7 = vpop.f32.mrf.mxu0  ;;  %v3369_v25 = vpop.f32.mrf.mxu1  ;;  %v2547_v18 = vadd.f32 %v9069_v13, %v7980_v16  ;;  %v9073_v13 = vld [vmem:[#allocation10_spill] sm:$0xff] }
 0xc75   :  { %v4736_v23 = vmul.f32 -1.442695, %v3442_v52  ;;  %v3449_v29 = vadd.f32 %v3369_v25, %v2439_v27 }
 0xc77   :  { %5920 = vpow2.f32 %v4736_v23  ;;  %v4737_v30 = vmul.f32 -1.442695, %v3449_v29 }
 0xc79   :  { %5922 = vpow2.f32 %v4737_v30 }
 0xc84   :  { %v5921_v31 = vpop.eup %5920 }
 0xc85   :  { %v3446_v22 = vadd.f32 1.0, %v5921_v31  ;;  %v9071_v31 = vld [vmem:[#allocation19_spill] sm:$0xff] }
 0xc86   :  { %v5923_v51 = vpop.eup %5922 }
 0xc87   :  { %5924 = vrcp.f32 %v3446_v22  ;;  %v3453_v11 = vadd.f32 1.0, %v5923_v51  ;;  %v8478_v51 = vld [vmem:[%s8852_s9 + $0x178] sm:$0xff]  ;;  %v8485_v22 = vld [vmem:[%s8852_s9 + $0x160] sm:$0xff] }
 0xc89   :  { %5926 = vrcp.f32 %v3453_v11  ;;  %v8499_v11 = vld [vmem:[%s8852_s9 + $0x130] sm:$0xff] }
 0xc94   :  { %v5925_v54 = vpop.eup %5924 }
 0xc95   :  { %v3457_v52 = vmul.f32 %v5925_v54, %v3456_v12  ;;  %v8492_v54 = vld [vmem:[%s8852_s9 + $0x148] sm:$0xff]  ;;  %v9072_v12 = vld [vmem:[#allocation6_spill] sm:$0xff] }
 0xc96   :  { %v5927_v28 = vpop.eup %5926 }
 0xc97   :  { %v3458_v7 = vadd.f32 %v3457_v52, %v2547_v18  ;;  %v3460_v23 = vsub.f32 1.0, %v5927_v28  ;;  %v3462_v29 = vmul.f32 %v5927_v28, %v8141_v32  ;;  %v2443_v18 = vadd.f32 %v9073_v13, %v9072_v12 }
 0xc99   :  { %5928 = vtanh.f32 %v3458_v7 }
 0xca6   :  { %v5929_v25 = vpop.eup %5928 }
 0xca7   :  { %v3461_v27 = vmul.f32 %v5929_v25, %v3460_v23 }
 0xca9   :  { %v8436_v30 = vadd.f32 %v3462_v29, %v3461_v27  ;;  %v9074_v29 = vld [vmem:[#allocation8_spill] sm:$0xff] }
 0xcaa   :  { %v2445_v32 = vadd.f32 %v9074_v29, %v7969_v26 }
 0xcab   :  { %9070 = vst [vmem:[#allocation21_spill] sm:$0xff] %v8436_v30  ;;  %3582 = vmatmul.mubr.f32.vlgmr.msra.gmra.mxu1 %v8436_v30  ;;  %5641 = vmatmul.mubr.f32.vlgmr.msra.gmra.mxu0 %v8436_v30 }
 0xcac   :  { %3734 = vmatpush1.msra.mxu1 %v8167_v47  ;;  %3797 = vmatprep.mubr.f32.mxu1 %v8955_v41 }
 0xcad   :  { %3735 = vmatprep.subr.mxu1 %v8173_v42  ;;  %5675 = vmatprep.mubr.msk.f32.mxu0 %vm6005_vm3, %v8955_v41 }
 0xcae   :  { %3736 = vmatpush1.msra.mxu1 %v8179_v36  ;;  %5644 = vmatpush3.msra.mxu0 %v8478_v51 }
 0xcaf   :  { %3737 = vmatprep.subr.mxu1 %v8185_v46  ;;  %5645 = vmatprep.subr.mxu0 %v8955_v41 }
 0xcb0   :  { %3738 = vmatpush1.msra.mxu1 %v8191_v33  ;;  %5646 = vmatpush3.msra.mxu0 %v8485_v22 }
 0xcb1   :  { %3739 = vmatprep.subr.mxu1 %v8197_v49  ;;  %5647 = vmatprep.subr.mxu0 %v8955_v41 }
 0xcb2   :  { %3740 = vmatpush1.msra.mxu1 %v8203_v14  ;;  %5648 = vmatpush3.msra.mxu0 %v8492_v54 }
 0xcb3   :  { %3741 = vmatprep.subr.mxu1 %v8209_v9  ;;  %5649 = vmatprep.subr.mxu0 %v8955_v41 }
 0xcb4   :  { %3742 = vmatpush1.msra.mxu1 %v8215_v34  ;;  %5650 = vmatpush3.msra.mxu0 %v8499_v11 }
 0xcb5   :  { %3743 = vmatprep.subr.mxu1 %v8221_v63  ;;  %5651 = vmatprep.subr.mxu0 %v8955_v41 }
 0xcb6   :  { %3744 = vmatpush1.msra.mxu1 %v8227_v8  ;;  %5652 = vmatpush3.msra.mxu0 %v8506_v48 }
 0xcb7   :  { %3745 = vmatprep.subr.mxu1 %v8239_v15  ;;  %5653 = vmatprep.subr.mxu0 %v8955_v41 }
 0xcb8   :  { %3746 = vmatpush1.msra.mxu1 %v8246_v45  ;;  %5654 = vmatpush3.msra.mxu0 %v8232_v59 }
 0xcb9   :  { %3747 = vmatprep.subr.mxu1 %v8256_v62  ;;  %5655 = vmatprep.subr.mxu0 %v8955_v41 }
 0xcba   :  { %3748 = vmatpush1.msra.mxu1 %v8263_v17  ;;  %5656 = vmatpush3.msra.mxu0 %v8251_v1 }
 0xcbb   :  { %3749 = vmatprep.subr.mxu1 %v8273_v38  ;;  %5657 = vmatprep.subr.mxu0 %v8955_v41 }
 0xcbc   :  { %3750 = vmatpush1.msra.mxu1 %v8280_v57  ;;  %5658 = vmatpush3.msra.mxu0 %v8268_v50 }
 0xcbd   :  { %3751 = vmatprep.subr.mxu1 %v8292_v24  ;;  %5659 = vmatprep.subr.mxu0 %v8955_v41 }
 0xcbe   :  { %3752 = vmatpush1.msra.mxu1 %v8299_v20  ;;  %5660 = vmatpush3.msra.mxu0 %v8285_v21 }
 0xcbf   :  { %3753 = vmatprep.subr.mxu1 %v8311_v10  ;;  %5661 = vmatprep.subr.mxu0 %v8955_v41 }
 0xcc0   :  { %3754 = vmatpush1.msra.mxu1 %v8318_v6  ;;  %5662 = vmatpush3.msra.mxu0 %v8304_v39 }
 0xcc1   :  { %3755 = vmatprep.subr.mxu1 %v8330_v53  ;;  %5663 = vmatprep.subr.mxu0 %v8955_v41 }
 0xcc2   :  { %3756 = vmatpush1.msra.mxu1 %v8337_v55  ;;  %5664 = vmatpush3.msra.mxu0 %v8323_v19 }
 0xcc3   :  { %3757 = vmatprep.subr.mxu1 %v8349_v58  ;;  %5665 = vmatprep.subr.mxu0 %v8955_v41 }
 0xcc4   :  { %3758 = vmatpush1.msra.mxu1 %v8356_v60  ;;  %5666 = vmatpush3.msra.mxu0 %v8342_v56 }
 0xcc5   :  { %3759 = vmatprep.subr.mxu1 %v8368_v0  ;;  %5667 = vmatprep.subr.mxu0 %v8955_v41 }
 0xcc6   :  { %3760 = vmatpush1.msra.mxu1 %v8375_v2  ;;  %5668 = vmatpush3.msra.mxu0 %v8361_v61 }
 0xcc7   :  { %3761 = vmatprep.subr.mxu1 %v8387_v4  ;;  %5669 = vmatprep.subr.mxu0 %v8955_v41 }
 0xcc8   :  { %3762 = vmatpush1.msra.mxu1 %v8394_v5  ;;  %5670 = vmatpush3.msra.mxu0 %v8380_v3 }
 0xcc9   :  { %3763 = vmatprep.subr.mxu1 %v8406_v37  ;;  %5671 = vmatprep.subr.mxu0 %v8955_v41 }
 0xcca   :  { %3764 = vmatpush1.msra.mxu1 %v8413_v43  ;;  %5672 = vmatpush3.msra.mxu0 %v8399_v44 }
 0xccb   :  { %3949 = vmatprep.subr.mxu1 %v8161_v40  ;;  %5673 = vmatprep.subr.mxu0 %v8955_v41 }
 0xccc   :  { %5674 = vmatpush3.msra.mxu0 %v9071_v31 }
 0xccd   :  { %5678 = vmatprep.subr.mxu0 %v8955_v41 }
 0xd6b   :  { %v3583_v52 = vpop.f32.mrf.mxu1  ;;  %v3654_v7 = vpop.f32.mrf.mxu0 }
 0xd6c   :  { %v3658_v28 = vadd.f32 %v3583_v52, %v2443_v18  ;;  %v3672_v13 = vadd.f32 %v7975_v35, %v3654_v7  ;;  %v9075_v18 = vld [vmem:[#allocation26_spill] sm:$0xff]  ;;  %v9076_v35 = vld [vmem:[#allocation11_spill] sm:$0xff] }
 0xd6d   :  { %v5642_v23 = vpop.f32.mrf.mxu0  ;;  %v3585_v27 = vpop.f32.mrf.mxu1  ;;  %v2552_v52 = vadd.f32 %v9075_v18, %v7980_v16  ;;  %v9081_v7 = vld [vmem:[#allocation15_spill] sm:$0xff] }
 0xd6e   :  { %v4738_v25 = vmul.f32 -1.442695, %v3658_v28  ;;  %v3665_v40 = vadd.f32 %v3585_v27, %v2445_v32  ;;  %v9082_v27 = vld [vmem:[#allocation6_spill] sm:$0xff] }
 0xd70   :  { %5930 = vpow2.f32 %v4738_v25  ;;  %v4739_v43 = vmul.f32 -1.442695, %v3665_v40 }
 0xd72   :  { %5932 = vpow2.f32 %v4739_v43 }
 0xd7d   :  { %v5931_v37 = vpop.eup %5930 }
 0xd7e   :  { %v3662_v31 = vadd.f32 1.0, %v5931_v37 }
 0xd7f   :  { %v5933_v44 = vpop.eup %5932 }
 0xd80   :  { %5934 = vrcp.f32 %v3662_v31  ;;  %v3669_v5 = vadd.f32 1.0, %v5933_v44  ;;  %v9078_v44 = vld [vmem:[#allocation17_spill] sm:$0xff]  ;;  %v9079_v31 = vld [vmem:[#allocation18_spill] sm:$0xff] }
 0xd82   :  { %5936 = vrcp.f32 %v3669_v5  ;;  %v9077_v5 = vld [vmem:[#allocation13_spill] sm:$0xff] }
 0xd8d   :  { %v5935_v12 = vpop.eup %5934 }
 0xd8e   :  { %v3673_v28 = vmul.f32 %v5935_v12, %v3672_v13  ;;  %v9080_v12 = vld [vmem:[#allocation19_spill] sm:$0xff]  ;;  %v9083_v13 = vld [vmem:[#allocation28_spill] sm:$0xff] }
 0xd8f   :  { %v5937_v29 = vpop.eup %5936  ;;  %v2449_v18 = vadd.f32 %v9083_v13, %v9082_v27  ;;  %v8618_v13 = vld [vmem:[%s8855_s11] ss:$0 sm:$0xff] }
 0xd90   :  { %v3674_v23 = vadd.f32 %v3673_v28, %v2552_v52  ;;  %v3676_v25 = vsub.f32 1.0, %v5937_v29  ;;  %v3678_v43 = vmul.f32 %v5937_v29, %v8436_v30 }
 0xd92   :  { %5938 = vtanh.f32 %v3674_v23 }
 0xd9f   :  { %v5939_v32 = vpop.eup %5938 }
 0xda0   :  { %v3677_v40 = vmul.f32 %v5939_v32, %v3676_v25 }
 0xda2   :  { %v8540_v37 = vadd.f32 %v3678_v43, %v3677_v40  ;;  %v9084_v40 = vld [vmem:[#allocation20_spill] sm:$0xff] }
 0xda3   :  { %v2451_v43 = vadd.f32 %v9084_v40, %v7969_v26 }
 0xda4   :  { %3798 = vmatmul.mubr.f32.vlgmr.msra.gmra.mxu1 %v8540_v37  ;;  %5676 = vmatmul.mubr.f32.vlgmr.msra.gmra.mxu0 %v8540_v37 }
 0xda5   :  { %3950 = vmatpush1.msra.mxu1 %v8167_v47  ;;  %5679 = vmatpush3.msra.mxu0 %v8478_v51 }
 0xda6   :  { %3951 = vmatprep.subr.mxu1 %v8173_v42  ;;  %5680 = vmatprep.subr.mxu0 %v8955_v41 }
 0xda7   :  { %3952 = vmatpush1.msra.mxu1 %v8179_v36  ;;  %5681 = vmatpush3.msra.mxu0 %v8485_v22 }
 0xda8   :  { %3953 = vmatprep.subr.mxu1 %v8185_v46  ;;  %5682 = vmatprep.subr.mxu0 %v8955_v41 }
 0xda9   :  { %3954 = vmatpush1.msra.mxu1 %v8191_v33  ;;  %5683 = vmatpush3.msra.mxu0 %v8492_v54 }
 0xdaa   :  { %3955 = vmatprep.subr.mxu1 %v8197_v49  ;;  %5684 = vmatprep.subr.mxu0 %v8955_v41 }
 0xdab   :  { %3956 = vmatpush1.msra.mxu1 %v8203_v14  ;;  %5685 = vmatpush3.msra.mxu0 %v8499_v11 }
 0xdac   :  { %3957 = vmatprep.subr.mxu1 %v8209_v9  ;;  %5686 = vmatprep.subr.mxu0 %v8955_v41 }
 0xdad   :  { %3958 = vmatpush1.msra.mxu1 %v8215_v34  ;;  %5687 = vmatpush3.msra.mxu0 %v8506_v48 }
 0xdae   :  { %3959 = vmatprep.subr.mxu1 %v8221_v63  ;;  %5688 = vmatprep.subr.mxu0 %v8955_v41 }
 0xdaf   :  { %3960 = vmatpush1.msra.mxu1 %v8227_v8  ;;  %5689 = vmatpush3.msra.mxu0 %v8232_v59 }
 0xdb0   :  { %3961 = vmatprep.subr.mxu1 %v8239_v15  ;;  %5690 = vmatprep.subr.mxu0 %v8955_v41 }
 0xdb1   :  { %3962 = vmatpush1.msra.mxu1 %v8246_v45  ;;  %5691 = vmatpush3.msra.mxu0 %v8251_v1 }
 0xdb2   :  { %3963 = vmatprep.subr.mxu1 %v8256_v62  ;;  %5692 = vmatprep.subr.mxu0 %v8955_v41 }
 0xdb3   :  { %3964 = vmatpush1.msra.mxu1 %v8263_v17  ;;  %5693 = vmatpush3.msra.mxu0 %v8268_v50 }
 0xdb4   :  { %3965 = vmatprep.subr.mxu1 %v8273_v38  ;;  %5694 = vmatprep.subr.mxu0 %v8955_v41 }
 0xdb5   :  { %3966 = vmatpush1.msra.mxu1 %v8280_v57  ;;  %5695 = vmatpush3.msra.mxu0 %v8285_v21 }
 0xdb6   :  { %3967 = vmatprep.subr.mxu1 %v8292_v24  ;;  %5696 = vmatprep.subr.mxu0 %v8955_v41 }
 0xdb7   :  { %3968 = vmatpush1.msra.mxu1 %v8299_v20  ;;  %5697 = vmatpush3.msra.mxu0 %v8304_v39 }
 0xdb8   :  { %3969 = vmatprep.subr.mxu1 %v8311_v10  ;;  %5698 = vmatprep.subr.mxu0 %v8955_v41 }
 0xdb9   :  { %3970 = vmatpush1.msra.mxu1 %v8318_v6  ;;  %5699 = vmatpush3.msra.mxu0 %v8323_v19 }
 0xdba   :  { %3971 = vmatprep.subr.mxu1 %v8330_v53  ;;  %5700 = vmatprep.subr.mxu0 %v8955_v41 }
 0xdbb   :  { %3972 = vmatpush1.msra.mxu1 %v8337_v55  ;;  %5701 = vmatpush3.msra.mxu0 %v8342_v56 }
 0xdbc   :  { %3973 = vmatprep.subr.mxu1 %v8349_v58  ;;  %5702 = vmatprep.subr.mxu0 %v8955_v41 }
 0xdbd   :  { %3974 = vmatpush1.msra.mxu1 %v8356_v60  ;;  %5703 = vmatpush3.msra.mxu0 %v8361_v61 }
 0xdbe   :  { %3975 = vmatprep.subr.mxu1 %v8368_v0  ;;  %5704 = vmatprep.subr.mxu0 %v8955_v41 }
 0xdbf   :  { %3976 = vmatpush1.msra.mxu1 %v8375_v2  ;;  %5705 = vmatpush3.msra.mxu0 %v8380_v3 }
 0xdc0   :  { %3977 = vmatprep.subr.mxu1 %v8387_v4  ;;  %5706 = vmatprep.subr.mxu0 %v8955_v41 }
 0xdc1   :  { %3978 = vmatpush1.msra.mxu1 %v9076_v35  ;;  %5707 = vmatpush3.msra.mxu0 %v9077_v5 }
 0xdc2   :  { %3979 = vmatprep.subr.mxu1 %v9078_v44  ;;  %5708 = vmatprep.subr.mxu0 %v8955_v41 }
 0xdc3   :  { %3980 = vmatpush1.msra.mxu1 %v9079_v31  ;;  %4013 = vmatprep.mubr.f32.mxu1 %v8955_v41 }
 0xdc4   :  { %5709 = vmatpush3.msra.mxu0 %v9080_v12  ;;  %5710 = vmatprep.mubr.msk.f32.mxu0 %vm6005_vm3, %v8955_v41 }
 0xdc5   :  { %4165 = vmatprep.subr.mxu1 %v9081_v7  ;;  %5713 = vmatprep.subr.mxu0 %v8955_v41 }
 0xe64   :  { %v3799_v52 = vpop.f32.mrf.mxu1  ;;  %v3870_v28 = vpop.f32.mrf.mxu0 }
 0xe65   :  { %v3874_v23 = vadd.f32 %v3799_v52, %v2449_v18  ;;  %v3888_v18 = vadd.f32 %v8618_v13, %v3870_v28  ;;  %v4343_v28 = vld [vmem:[%s8856_s12 + $0x18] sm:$0xff] }
 0xe66   :  { %v5677_v29 = vpop.f32.mrf.mxu0  ;;  %v3801_v32 = vpop.f32.mrf.mxu1 }
 0xe67   :  { %v4740_v25 = vmul.f32 -1.442695, %v3874_v23  ;;  %v3881_v30 = vadd.f32 %v3801_v32, %v2451_v43  ;;  %v9085_v23 = vld [vmem:[#allocation30_spill] sm:$0xff] }
 0xe68   :  { %v2557_v29 = vadd.f32 %v9085_v23, %v7980_v16  ;;  %v9094_v23 = vld [vmem:[#allocation16_spill] sm:$0xff] }
 0xe69   :  { %5940 = vpow2.f32 %v4740_v25  ;;  %v4741_v12 = vmul.f32 -1.442695, %v3881_v30 }
 0xe6b   :  { %5942 = vpow2.f32 %v4741_v12 }
 0xe76   :  { %v5941_v31 = vpop.eup %5940 }
 0xe77   :  { %v3878_v7 = vadd.f32 1.0, %v5941_v31 }
 0xe78   :  { %v5943_v44 = vpop.eup %5942 }
 0xe79   :  { %5944 = vrcp.f32 %v3878_v7  ;;  %v3885_v5 = vadd.f32 1.0, %v5943_v44  ;;  %v4342_v7 = vld [vmem:[%s8856_s12 + $0x10] sm:$0xff] }
 0xe7b   :  { %5946 = vrcp.f32 %v3885_v5  ;;  %v4344_v5 = vld [vmem:[%s8856_s12 + $0x20] sm:$0xff] }
 0xe86   :  { %v5945_v52 = vpop.eup %5944 }
 0xe87   :  { %v3889_v25 = vmul.f32 %v5945_v52, %v3888_v18  ;;  %v4341_v18 = vld [vmem:[%s8856_s12 + $0x8] sm:$0xff]  ;;  %v4340_v52 = vld [vmem:[%s8856_s12] sm:$0xff] }
 0xe88   :  { %v5947_v12 = vpop.eup %5946 }
 0xe89   :  { %v3890_v30 = vadd.f32 %v3889_v25, %v2557_v29  ;;  %v3892_v31 = vsub.f32 1.0, %v5947_v12  ;;  %v3894_v44 = vmul.f32 %v5947_v12, %v8540_v37  ;;  %v9095_v29 = vld [vmem:[#allocation23_spill] sm:$0xff]  ;;  %v9096_v25 = vld [vmem:[#allocation21_spill] sm:$0xff]  ;;  %v4476_v12 = vld [vmem:[%s8857_s14] sm:$0xff] }
 0xe8b   :  { %5948 = vtanh.f32 %v3890_v30  ;;  %v4477_v30 = vld [vmem:[%s8857_s14 + $0x8] sm:$0xff] }
 0xe98   :  { %v5949_v32 = vpop.eup %5948 }
 0xe99   :  { %v3893_v40 = vmul.f32 %v5949_v32, %v3892_v31  ;;  %v9097_v31 = vld [vmem:[#allocation9_spill] sm:$0xff] }
 0xe9a   :  { %v2461_v32 = vadd.f32 %v9097_v31, %v9082_v27 }
 0xe9b   :  { %v8624_v43 = vadd.f32 %v3894_v44, %v3893_v40 }
 0xe9d   :  { %4014 = vmatmul.mubr.f32.vlgmr.msra.gmra.mxu1 %v8624_v43  ;;  %5711 = vmatmul.mubr.f32.vlgmr.msra.gmra.mxu0 %v8624_v43 }
 0xe9e   :  { %4166 = vmatpush1.msra.mxu1 %v8167_v47  ;;  %5714 = vmatpush3.msra.mxu0 %v8478_v51  ;;  %v9086_v47 = vld [vmem:[#allocation13_spill] sm:$0xff]  ;;  %v4350_v51 = vld [vmem:[%s8856_s12 + $0x50] sm:$0xff] }
 0xe9f   :  { %4167 = vmatprep.subr.mxu1 %v8173_v42  ;;  %5715 = vmatprep.subr.mxu0 %v8955_v41  ;;  %v9087_v42 = vld [vmem:[#allocation17_spill] sm:$0xff] }
 0xea0   :  { %4168 = vmatpush1.msra.mxu1 %v8179_v36  ;;  %5716 = vmatpush3.msra.mxu0 %v8485_v22  ;;  %v9088_v36 = vld [vmem:[#allocation18_spill] sm:$0xff]  ;;  %v4349_v22 = vld [vmem:[%s8856_s12 + $0x48] sm:$0xff] }
 0xea1   :  { %4169 = vmatprep.subr.mxu1 %v8185_v46  ;;  %5717 = vmatprep.subr.mxu0 %v8955_v41  ;;  %v9089_v46 = vld [vmem:[#allocation19_spill] sm:$0xff] }
 0xea2   :  { %4170 = vmatpush1.msra.mxu1 %v8191_v33  ;;  %5718 = vmatpush3.msra.mxu0 %v8492_v54  ;;  %v4355_v33 = vld [vmem:[%s8856_s12 + $0x78] sm:$0xff]  ;;  %v4348_v54 = vld [vmem:[%s8856_s12 + $0x40] sm:$0xff] }
 0xea3   :  { %4171 = vmatprep.subr.mxu1 %v8197_v49  ;;  %5719 = vmatprep.subr.mxu0 %v8955_v41  ;;  %v9090_v49 = vld [vmem:[#allocation31_spill] sm:$0xff] }
 0xea4   :  { %4172 = vmatpush1.msra.mxu1 %v8203_v14  ;;  %5720 = vmatpush3.msra.mxu0 %v8499_v11  ;;  %v2455_v14 = vadd.f32 %v9090_v49, %v9082_v27  ;;  %v4347_v11 = vld [vmem:[%s8856_s12 + $0x38] sm:$0xff]  ;;  %v8773_v27 = vld [vmem:[%s8858_s13] ss:$0 sm:$0xff] }
 0xea5   :  { %4173 = vmatprep.subr.mxu1 %v8209_v9  ;;  %5721 = vmatprep.subr.mxu0 %v8955_v41 }
 0xea6   :  { %4174 = vmatpush1.msra.mxu1 %v8215_v34  ;;  %5722 = vmatpush3.msra.mxu0 %v8506_v48  ;;  %v4346_v48 = vld [vmem:[%s8856_s12 + $0x30] sm:$0xff] }
 0xea7   :  { %4175 = vmatprep.subr.mxu1 %v8221_v63  ;;  %5723 = vmatprep.subr.mxu0 %v8955_v41 }
 0xea8   :  { %4176 = vmatpush1.msra.mxu1 %v8227_v8  ;;  %5724 = vmatpush3.msra.mxu0 %v8232_v59 }
 0xea9   :  { %4177 = vmatprep.subr.mxu1 %v8239_v15  ;;  %5725 = vmatprep.subr.mxu0 %v8955_v41 }
 0xeaa   :  { %4178 = vmatpush1.msra.mxu1 %v8246_v45  ;;  %5726 = vmatpush3.msra.mxu0 %v8251_v1  ;;  %v9091_v45 = vld [vmem:[#allocation34_spill] sm:$0xff] }
 0xeab   :  { %4179 = vmatprep.subr.mxu1 %v8256_v62  ;;  %5727 = vmatprep.subr.mxu0 %v8955_v41  ;;  %v2457_v1 = vadd.f32 %v9091_v45, %v7969_v26 }
 0xeac   :  { %4180 = vmatpush1.msra.mxu1 %v8263_v17  ;;  %5728 = vmatpush3.msra.mxu0 %v8268_v50 }
 0xead   :  { %4181 = vmatprep.subr.mxu1 %v8273_v38  ;;  %5729 = vmatprep.subr.mxu0 %v8955_v41 }
 0xeae   :  { %4182 = vmatpush1.msra.mxu1 %v8280_v57  ;;  %5730 = vmatpush3.msra.mxu0 %v8285_v21 }
 0xeaf   :  { %4183 = vmatprep.subr.mxu1 %v8292_v24  ;;  %5731 = vmatprep.subr.mxu0 %v8955_v41 }
 0xeb0   :  { %4184 = vmatpush1.msra.mxu1 %v8299_v20  ;;  %5732 = vmatpush3.msra.mxu0 %v8304_v39  ;;  %v9092_v20 = vld [vmem:[#allocation24_spill] sm:$0xff] }
 0xeb1   :  { %4185 = vmatprep.subr.mxu1 %v8311_v10  ;;  %5733 = vmatprep.subr.mxu0 %v8955_v41  ;;  %v2562_v39 = vadd.f32 %v9092_v20, %v7980_v16 }
 0xeb2   :  { %4186 = vmatpush1.msra.mxu1 %v8318_v6  ;;  %5734 = vmatpush3.msra.mxu0 %v8323_v19 }
 0xeb3   :  { %4187 = vmatprep.subr.mxu1 %v8330_v53  ;;  %5735 = vmatprep.subr.mxu0 %v8955_v41 }
 0xeb4   :  { %4188 = vmatpush1.msra.mxu1 %v8337_v55  ;;  %5736 = vmatpush3.msra.mxu0 %v8342_v56 }
 0xeb5   :  { %4189 = vmatprep.subr.mxu1 %v8349_v58  ;;  %5737 = vmatprep.subr.mxu0 %v8955_v41 }
 0xeb6   :  { %4190 = vmatpush1.msra.mxu1 %v8356_v60  ;;  %5738 = vmatpush3.msra.mxu0 %v8361_v61  ;;  %v4354_v61 = vld [vmem:[%s8856_s12 + $0x70] sm:$0xff] }
 0xeb7   :  { %4191 = vmatprep.subr.mxu1 %v8368_v0  ;;  %5739 = vmatprep.subr.mxu0 %v8955_v41  ;;  %v9093_v0 = vld [vmem:[#allocation12_spill] sm:$0xff] }
 0xeb8   :  { %4192 = vmatpush1.msra.mxu1 %v8375_v2  ;;  %5740 = vmatpush3.msra.mxu0 %v8380_v3  ;;  %v4353_v2 = vld [vmem:[%s8856_s12 + $0x68] sm:$0xff]  ;;  %v4352_v3 = vld [vmem:[%s8856_s12 + $0x60] sm:$0xff] }
 0xeb9   :  { %4193 = vmatprep.subr.mxu1 %v8387_v4  ;;  %5741 = vmatprep.subr.mxu0 %v8955_v41  ;;  %v4351_v4 = vld [vmem:[%s8856_s12 + $0x58] sm:$0xff] }
 0xeba   :  { %4194 = vmatpush1.msra.mxu1 %v9076_v35  ;;  %5742 = vmatpush3.msra.mxu0 %v9086_v47  ;;  %v4345_v35 = vld [vmem:[%s8856_s12 + $0x28] sm:$0xff] }
 0xebb   :  { %4195 = vmatprep.subr.mxu1 %v9087_v42  ;;  %5743 = vmatprep.subr.mxu0 %v8955_v41 }
 0xebc   :  { %4196 = vmatpush1.msra.mxu1 %v9088_v36  ;;  %4229 = vmatprep.mubr.f32.mxu1 %v8955_v41  ;;  %v9098_v36 = vld [vmem:[#allocation33_spill] sm:$0xff] }
 0xebd   :  { %5744 = vmatpush3.msra.mxu0 %v9089_v46  ;;  %5745 = vmatprep.mubr.msk.f32.mxu0 %vm6005_vm3, %v8955_v41  ;;  %v2463_v46 = vadd.f32 %v9098_v36, %v7969_v26 }
 0xebe   :  { %5748 = vmatprep.subr.mxu1 %v4355_v33  ;;  %5792 = vmatprep.subr.mxu0 %v4477_v30 }
 0xf5d   :  { %v4015_v9 = vpop.f32.mrf.mxu1  ;;  %v4086_v34 = vpop.f32.mrf.mxu0 }
 0xf5e   :  { %v4090_v63 = vadd.f32 %v4015_v9, %v2455_v14  ;;  %v4104_v21 = vadd.f32 %v8618_v13, %v4086_v34 }
 0xf5f   :  { %v5712_v8 = vpop.f32.mrf.mxu0  ;;  %v4017_v15 = vpop.f32.mrf.mxu1 }
 0xf60   :  { %v4742_v59 = vmul.f32 -1.442695, %v4090_v63  ;;  %v4097_v62 = vadd.f32 %v4017_v15, %v2457_v1  ;;  %v9099_v1 = vld [vmem:[#allocation32_spill] sm:$0xff] }
 0xf62   :  { %5950 = vpow2.f32 %v4742_v59  ;;  %v4743_v41 = vmul.f32 -1.442695, %v4097_v62  ;;  %v2567_v62 = vadd.f32 %v9099_v1, %v7980_v16 }
 0xf64   :  { %5952 = vpow2.f32 %v4743_v41 }
 0xf6f   :  { %v5951_v17 = vpop.eup %5950 }
 0xf70   :  { %v4094_v50 = vadd.f32 1.0, %v5951_v17 }
 0xf71   :  { %v5953_v38 = vpop.eup %5952 }
 0xf72   :  { %5954 = vrcp.f32 %v4094_v50  ;;  %v4101_v57 = vadd.f32 1.0, %v5953_v38 }
 0xf74   :  { %5956 = vrcp.f32 %v4101_v57 }
 0xf7f   :  { %v5955_v24 = vpop.eup %5954 }
 0xf80   :  { %v4105_v10 = vmul.f32 %v5955_v24, %v4104_v21 }
 0xf81   :  { %v5957_v19 = vpop.eup %5956 }
 0xf82   :  { %v4106_v6 = vadd.f32 %v4105_v10, %v2562_v39  ;;  %v4108_v53 = vsub.f32 1.0, %v5957_v19  ;;  %v4110_v58 = vmul.f32 %v5957_v19, %v8624_v43 }
 0xf84   :  { %5958 = vtanh.f32 %v4106_v6 }
 0xf91   :  { %v5959_v55 = vpop.eup %5958 }
 0xf92   :  { %v4109_v56 = vmul.f32 %v5959_v55, %v4108_v53 }
 0xf94   :  { %v8704_v60 = vadd.f32 %v4110_v58, %v4109_v56 }
 0xf96   :  { %4230 = vmatmul.mubr.f32.vlgmr.msra.gmra.mxu1 %v8704_v60  ;;  %5746 = vmatmul.mubr.f32.vlgmr.msra.gmra.mxu0 %v8704_v60 }
 0xf97   :  { %5749 = vmatpush3.msra.mxu1 %v4355_v33  ;;  %5780 = vmatprep.mubr.f32.mxu1 %v9093_v0 }
 0xf98   :  { %5750 = vmatprep.subr.mxu1 %v4354_v61  ;;  %5793 = vmatpush3.msra.mxu0 %v4477_v30 }
 0xf99   :  { %5751 = vmatpush3.msra.mxu1 %v4354_v61  ;;  %5794 = vmatprep.subr.mxu0 %v4476_v12 }
 0xf9a   :  { %5752 = vmatprep.subr.mxu1 %v4353_v2  ;;  %5795 = vmatpush3.msra.mxu0 %v4476_v12 }
 0xf9b   :  { %5753 = vmatpush3.msra.mxu1 %v4353_v2 }
 0xf9c   :  { %5754 = vmatprep.subr.mxu1 %v4352_v3 }
 0xf9d   :  { %5755 = vmatpush3.msra.mxu1 %v4352_v3 }
 0xf9e   :  { %5756 = vmatprep.subr.mxu1 %v4351_v4 }
 0xf9f   :  { %5757 = vmatpush3.msra.mxu1 %v4351_v4 }
 0xfa0   :  { %5758 = vmatprep.subr.mxu1 %v4350_v51 }
 0xfa1   :  { %5759 = vmatpush3.msra.mxu1 %v4350_v51  ;;  %v8797_v51 = vld [vmem:[%s8859_s15] ss:$0 sm:$0xff] }
 0xfa2   :  { %5760 = vmatprep.subr.mxu1 %v4349_v22 }
 0xfa3   :  { %5761 = vmatpush3.msra.mxu1 %v4349_v22 }
 0xfa4   :  { %5762 = vmatprep.subr.mxu1 %v4348_v54 }
 0xfa5   :  { %5763 = vmatpush3.msra.mxu1 %v4348_v54 }
 0xfa6   :  { %5764 = vmatprep.subr.mxu1 %v4347_v11 }
 0xfa7   :  { %5765 = vmatpush3.msra.mxu1 %v4347_v11 }
 0xfa8   :  { %5766 = vmatprep.subr.mxu1 %v4346_v48 }
 0xfa9   :  { %5767 = vmatpush3.msra.mxu1 %v4346_v48 }
 0xfaa   :  { %5768 = vmatprep.subr.mxu1 %v4345_v35 }
 0xfab   :  { %5769 = vmatpush3.msra.mxu1 %v4345_v35 }
 0xfac   :  { %5770 = vmatprep.subr.mxu1 %v4344_v5 }
 0xfad   :  { %5771 = vmatpush3.msra.mxu1 %v4344_v5 }
 0xfae   :  { %5772 = vmatprep.subr.mxu1 %v4343_v28 }
 0xfaf   :  { %5773 = vmatpush3.msra.mxu1 %v4343_v28 }
 0xfb0   :  { %5774 = vmatprep.subr.mxu1 %v4342_v7 }
 0xfb1   :  { %5775 = vmatpush3.msra.mxu1 %v4342_v7 }
 0xfb2   :  { %5776 = vmatprep.subr.mxu1 %v4341_v18 }
 0xfb3   :  { %5777 = vmatpush3.msra.mxu1 %v4341_v18 }
 0xfb4   :  { %5778 = vmatprep.subr.mxu1 %v4340_v52 }
 0xfb5   :  { %5779 = vmatpush3.msra.mxu1 %v4340_v52 }
 0xfb6   :  { %5781 = vmatmul.mubr.f32.vlgmr.msra.gmra.mxu1 %v9094_v23 }
 0xfb7   :  { %5783 = vmatprep.mubr.f32.mxu1 %v9095_v29 }
 0xfba   :  { %5784 = vmatmul.mubr.f32.gmra.mxu1 %v9096_v25 }
 0xfbb   :  { %5786 = vmatprep.mubr.f32.mxu1 %v8540_v37 }
 0xfbe   :  { %5787 = vmatmul.mubr.f32.gmra.mxu1 %v8624_v43 }
 0xfbf   :  { %5789 = vmatprep.mubr.f32.mxu1 %v8704_v60 }
0x1056   :  { %v4231_v37 = vpop.f32.mrf.mxu1  ;;  %v4302_v40 = vpop.f32.mrf.mxu0 }
0x1057   :  { %v4306_v44 = vadd.f32 %v4231_v37, %v2461_v32  ;;  %v4320_v59 = vadd.f32 %v8618_v13, %v4302_v40 }
0x1058   :  { %v5747_v43 = vpop.f32.mrf.mxu0  ;;  %v4233_v42 = vpop.f32.mrf.mxu1 }
0x1059   :  { %v4744_v47 = vmul.f32 -1.442695, %v4306_v44  ;;  %v4313_v33 = vadd.f32 %v4233_v42, %v2463_v46 }
0x105b   :  { %5960 = vpow2.f32 %v4744_v47  ;;  %v4745_v49 = vmul.f32 -1.442695, %v4313_v33 }
0x105d   :  { %5962 = vpow2.f32 %v4745_v49 }
0x1068   :  { %v5961_v14 = vpop.eup %5960 }
0x1069   :  { %v4310_v9 = vadd.f32 1.0, %v5961_v14 }
0x106a   :  { %v5963_v34 = vpop.eup %5962 }
0x106b   :  { %5964 = vrcp.f32 %v4310_v9  ;;  %v4317_v63 = vadd.f32 1.0, %v5963_v34 }
0x106d   :  { %5966 = vrcp.f32 %v4317_v63 }
0x1076   :  { %v5782_v8 = vpop.f32.mrf.mxu1 }
0x1077   :  { %v4435_v26 = vadd.f32 %v5782_v8, %v8773_v27 }
0x1078   :  { %v5965_v15 = vpop.eup %5964  ;;  %v4429_v45 = vpop.f32.mrf.mxu1 }
0x1079   :  { %v4321_v41 = vmul.f32 %v5965_v15, %v4320_v59  ;;  %v4430_v17 = vadd.f32 %v8773_v27, %v4429_v45  ;;  %v4469_v21 = vmax.f32 %v4435_v26, 0.0 }
0x107a   :  { %v5785_v50 = vpop.f32.mrf.mxu1  ;;  %v5967_v58 = vpop.eup %5966 }
0x107b   :  { %v4322_v38 = vadd.f32 %v4321_v41, %v2567_v62  ;;  %v4468_v57 = vmax.f32 %v4430_v17, 0.0  ;;  %v4445_v24 = vadd.f32 %v5785_v50, %v8773_v27  ;;  %v4324_v61 = vsub.f32 1.0, %v5967_v58 }
0x107c   :  { %v4439_v20 = vpop.f32.mrf.mxu1  ;;  %v4326_v3 = vmul.f32 %v5967_v58, %v8704_v60 }
0x107d   :  { %5968 = vtanh.f32 %v4322_v38  ;;  %v4440_v13 = vadd.f32 %v8773_v27, %v4439_v20  ;;  %5796 = vmatprep.mubr.msk.f32.mxu0 %vm213_vm2, %v4468_v57  ;;  %v4471_v10 = vmax.f32 %v4445_v24, 0.0 }
0x107e   :  { %v5788_v39 = vpop.f32.mrf.mxu1  ;;  %5797 = vmatmul.mubr.msk.f32.vlgmr.msra.gmra.mxu0 %vm213_vm2, %v4469_v21 }
0x107f   :  { %v4470_v16 = vmax.f32 %v4440_v13, 0.0  ;;  %v4455_v6 = vadd.f32 %v5788_v39, %v8773_v27 }
0x1080   :  { %v4449_v19 = vpop.f32.mrf.mxu1 }
0x1081   :  { %v4450_v53 = vadd.f32 %v8773_v27, %v4449_v19  ;;  %5799 = vmatprep.mubr.msk.f32.mxu0 %vm213_vm2, %v4470_v16  ;;  %v4473_v56 = vmax.f32 %v4455_v6, 0.0 }
0x1082   :  { %5800 = vmatmul.mubr.msk.f32.gmra.mxu0 %vm213_vm2, %v4471_v10 }
0x1083   :  { %v4472_v55 = vmax.f32 %v4450_v53, 0.0 }
0x1085   :  { %5802 = vmatprep.mubr.msk.f32.mxu0 %vm213_vm2, %v4472_v55 }
0x1086   :  { %5803 = vmatmul.mubr.msk.f32.gmra.mxu0 %vm213_vm2, %v4473_v56 }
0x108a   :  { %v5969_v0 = vpop.eup %5968 }
0x108b   :  { %v4325_v2 = vmul.f32 %v5969_v0, %v4324_v61 }
0x108d   :  { %v4327_v4 = vadd.f32 %v4326_v3, %v4325_v2 }
0x108f   :  { %4746 = vst [vmem:[%s8853_s17 + $0x8] sm:$0xff] %v4327_v4  ;;  %5790 = vmatmul.mubr.f32.gmra.mxu1 %v4327_v4 }
0x113e   :  { %v5798_v22 = vpop.f32.mrf.mxu0 }
0x113f   :  { %v4581_v54 = vadd.f32 %v5798_v22, %v8797_v51 }
0x1140   :  { %v4575_v11 = vpop.f32.mrf.mxu0 }
0x1141   :  { %v4758_v48 = vmul.f32 -1.442695, %v4581_v54  ;;  %v4576_v35 = vadd.f32 %v8797_v51, %v4575_v11 }
0x1142   :  { %v5801_v5 = vpop.f32.mrf.mxu0 }
0x1143   :  { %5970 = vpow2.f32 %v4758_v48  ;;  %v4757_v60 = vmul.f32 -1.442695, %v4576_v35  ;;  %v4591_v28 = vadd.f32 %v5801_v5, %v8797_v51 }
0x1144   :  { %v4585_v7 = vpop.f32.mrf.mxu0 }
0x1145   :  { %5972 = vpow2.f32 %v4757_v60  ;;  %v4760_v18 = vmul.f32 -1.442695, %v4591_v28  ;;  %v4586_v52 = vadd.f32 %v8797_v51, %v4585_v7 }
0x1146   :  { %v5804_v23 = vpop.f32.mrf.mxu0 }
0x1147   :  { %5974 = vpow2.f32 %v4760_v18  ;;  %v4759_v29 = vmul.f32 -1.442695, %v4586_v52  ;;  %v4601_v25 = vadd.f32 %v5804_v23, %v8797_v51 }
0x1148   :  { %v4595_v30 = vpop.f32.mrf.mxu0 }
0x1149   :  { %5976 = vpow2.f32 %v4759_v29  ;;  %v4762_v12 = vmul.f32 -1.442695, %v4601_v25  ;;  %v4596_v31 = vadd.f32 %v8797_v51, %v4595_v30 }
0x114b   :  { %5978 = vpow2.f32 %v4762_v12  ;;  %v4761_v32 = vmul.f32 -1.442695, %v4596_v31 }
0x114d   :  { %5980 = vpow2.f32 %v4761_v32 }
0x114f   :  { %v5791_v37 = vpop.f32.mrf.mxu1 }
0x1150   :  { %v5971_v40 = vpop.eup %5970  ;;  %v4465_v43 = vadd.f32 %v5791_v37, %v8773_v27 }
0x1151   :  { %v4639_v44 = vadd.f32 1.0, %v5971_v40  ;;  %v4459_v47 = vpop.f32.mrf.mxu1 }
0x1152   :  { %v5973_v42 = vpop.eup %5972  ;;  %v4460_v36 = vadd.f32 %v8773_v27, %v4459_v47  ;;  %v4475_v9 = vmax.f32 %v4465_v43, 0.0 }
0x1153   :  { %5982 = vrcp.f32 %v4639_v44  ;;  %v4638_v46 = vadd.f32 1.0, %v5973_v42 }
0x1154   :  { %v5975_v33 = vpop.eup %5974  ;;  %v4474_v49 = vmax.f32 %v4460_v36, 0.0 }
0x1155   :  { %5984 = vrcp.f32 %v4638_v46  ;;  %v4641_v14 = vadd.f32 1.0, %v5975_v33 }
0x1156   :  { %v5977_v34 = vpop.eup %5976  ;;  %5805 = vmatprep.mubr.msk.f32.mxu0 %vm213_vm2, %v4474_v49 }
0x1157   :  { %5986 = vrcp.f32 %v4641_v14  ;;  %v4640_v63 = vadd.f32 1.0, %v5977_v34  ;;  %5806 = vmatmul.mubr.msk.f32.gmra.mxu0 %vm213_vm2, %v4475_v9 }
0x1158   :  { %v5979_v8 = vpop.eup %5978 }
0x1159   :  { %5988 = vrcp.f32 %v4640_v63  ;;  %v4643_v59 = vadd.f32 1.0, %v5979_v8 }
0x115a   :  { %v5981_v15 = vpop.eup %5980 }
0x115b   :  { %5990 = vrcp.f32 %v4643_v59  ;;  %v4642_v27 = vadd.f32 1.0, %v5981_v15 }
0x115d   :  { %5992 = vrcp.f32 %v4642_v27 }
0x1160   :  { %v5983_v26 = vpop.eup %5982 }
0x1161   :  { %4663 = vst.msk [vmem:[%s8860_s16 + $0x8] sm:$0xff] %vm71_vm1, %v5983_v26 }
0x1162   :  { %v5985_v45 = vpop.eup %5984 }
0x1163   :  { %4662 = vst.msk [vmem:[%s8860_s16] sm:$0xff] %vm71_vm1, %v5985_v45 }
0x1164   :  { %v5987_v1 = vpop.eup %5986 }
0x1165   :  { %4665 = vst.msk [vmem:[%s8860_s16 + $0x18] sm:$0xff] %vm71_vm1, %v5987_v1 }
0x1166   :  { %v5989_v62 = vpop.eup %5988 }
0x1167   :  { %4664 = vst.msk [vmem:[%s8860_s16 + $0x10] sm:$0xff] %vm71_vm1, %v5989_v62 }
0x1168   :  { %v5991_v41 = vpop.eup %5990 }
0x1169   :  { %4667 = vst.msk [vmem:[%s8860_s16 + $0x28] sm:$0xff] %vm71_vm1, %v5991_v41 }
0x116a   :  { %v5993_v17 = vpop.eup %5992 }
0x116b   :  { %4666 = vst.msk [vmem:[%s8860_s16 + $0x20] sm:$0xff] %vm71_vm1, %v5993_v17 }
0x1217   :  { %v5807_v50 = vpop.f32.mrf.mxu0 }
0x1218   :  { %v4611_v38 = vadd.f32 %v5807_v50, %v8797_v51 }
0x1219   :  { %v4605_v57 = vpop.f32.mrf.mxu0 }
0x121a   :  { %v4764_v21 = vmul.f32 -1.442695, %v4611_v38  ;;  %v4606_v24 = vadd.f32 %v8797_v51, %v4605_v57 }
0x121c   :  { %5994 = vpow2.f32 %v4764_v21  ;;  %v4763_v20 = vmul.f32 -1.442695, %v4606_v24 }
0x121e   :  { %5996 = vpow2.f32 %v4763_v20 }
0x1229   :  { %v5995_v13 = vpop.eup %5994 }
0x122a   :  { %v4645_v39 = vadd.f32 1.0, %v5995_v13 }
0x122b   :  { %v5997_v16 = vpop.eup %5996 }
0x122c   :  { %5998 = vrcp.f32 %v4645_v39  ;;  %v4644_v10 = vadd.f32 1.0, %v5997_v16 }
0x122e   :  { %6000 = vrcp.f32 %v4644_v10 }
0x1239   :  { %v5999_v6 = vpop.eup %5998 }
0x123a   :  { %4669 = vst.msk [vmem:[%s8860_s16 + $0x38] sm:$0xff] %vm71_vm1, %v5999_v6 }
0x123b   :  { %v6001_v19 = vpop.eup %6000 }
0x123c   :  { %4668 = vst.msk [vmem:[%s8860_s16 + $0x30] sm:$0xff] %vm71_vm1, %v6001_v19 }

</bundles_post_ra>
